<compile_context>
chip_gen: v6e
topology: v6e:2x2x1
jax: 0.10.0
libtpu: 0.0.40
codegen_flags: <defaults>
</compile_context>

<pallas_src>
import functools

import jax
import jax.numpy as jnp
import numpy as np
from jax import lax
from jax.experimental import pallas as pl
from jax.experimental.pallas import tpu as pltpu


# ----------------------------------------------------------------------------
# Host-side (weights-only) preprocessing helpers
# ----------------------------------------------------------------------------
def _conv_gmat(w_oihw, win):
    """Expand OIHW conv weights into a stacked banded (KH*Win*Cin, Wo*Cout)
    matmul operand used for the in-kernel im2col (one concat-K matmul per
    conv layer).

    Column order is (dw, wp, cout) with wo = 2*wp + dw, so a max over the two
    column halves of the conv output performs the W half of the 2x2 pool."""
    cout, cin, kh, kw = w_oihw.shape
    wo = win - kw + 1
    w_hwio = jnp.transpose(w_oihw, (2, 3, 1, 0)).reshape(kh, kw * cin, cout)
    w_pad = jnp.pad(w_hwio, ((0, 0), (0, (win - kw) * cin), (0, 0)))
    r = jnp.arange(win * cin)
    idx = r[None, :] - (jnp.arange(wo) * cin)[:, None]           # (wo, win*cin)
    valid = ((idx >= 0) & (idx < kw * cin)).astype(w_pad.dtype)
    blocks = jnp.take(w_pad, jnp.clip(idx, 0, win * cin - 1), axis=1)
    blocks = blocks * valid[None, :, :, None]                    # (kh, wo, win*cin, cout)
    order = jnp.concatenate([jnp.arange(0, wo, 2), jnp.arange(1, wo, 2)])
    blocks = blocks[:, order]                                    # (dw, wp) column order
    g = jnp.transpose(blocks, (0, 2, 1, 3)).reshape(kh, win * cin, wo * cout)
    return g.reshape(kh * win * cin, wo * cout)                  # stacked along K


def _pool_rows_bmajor(bblk, hin, kh):
    """0/1 matrix selecting rows b*hin + 2*i (batch-major) out of the
    adjacent-row-maxed conv output; also drops image-boundary garbage rows."""
    hp = (hin - kh + 1) // 2
    s = np.zeros((bblk * hp, bblk * hin - kh), np.float32)
    for b in range(bblk):
        for i in range(hp):
            s[b * hp + i, b * hin + 2 * i] = 1.0
    return s


def _pool_rows_hmajor(bblk, hin, kh):
    """Same selection, rows ordered (h, b) so the fused f/g matmul can gather
    one sublane-aligned (bblk, .) block per feature row h."""
    hp = (hin - kh + 1) // 2
    s = np.zeros((hp * bblk, bblk * hin - kh), np.float32)
    for h in range(hp):
        for b in range(bblk):
            s[h * bblk + b, b * hin + 2 * h] = 1.0
    return s


def _perm_chw_to_hwc(w, c, h, wd):
    """Permute a Linear weight's input features from (c,h,w) to (h,w,c)."""
    return w.reshape(-1, c, h, wd).transpose(0, 2, 3, 1).reshape(w.shape[0], -1)


# ----------------------------------------------------------------------------
# Kernel 1: conv1+ReLU+pool -> conv2+ReLU+pool -> fused f/g linear
# ----------------------------------------------------------------------------
def _conv_fg_kernel(xf_ref, g1_ref, b1_ref, s1_ref, g2_ref, b2_ref, s2_ref,
                    w5_ref, bfg_ref, y_ref, *, kh, bblk):

    def conv_relu_pool(x, g_ref, b_ref):
        # x: (rows, win*cin) bf16.  The kh row-shifted banded matmuls are
        # fused into ONE matmul with concatenated K = kh*win*cin (f32
        # accumulation on the MXU), then bias, ReLU, W half of the 2x2 pool
        # (column halves) and adjacent-row max (H half of the pool).
        rv = x.shape[0] - (kh - 1)
        xcat = jnp.concatenate([x[ki:ki + rv, :] for ki in range(kh)], axis=1)
        acc = jnp.dot(xcat, g_ref[...], preferred_element_type=jnp.float32)
        acc = jnp.maximum(acc + b_ref[...], 0.0)
        half = acc.shape[1] // 2
        p = jnp.maximum(acc[:, :half], acc[:, half:])            # max over dw
        return jnp.maximum(p[:-1, :], p[1:, :])                  # max over dh

    p1 = conv_relu_pool(xf_ref[...], g1_ref, b1_ref)             # (bblk*H1-kh, Wp1*C1) f32
    # Row selection / compaction of the pooled rows as a matmul; one bf16
    # downcast per stage (no per-ki casts, no f32 round-trip).
    x2 = jnp.dot(s1_ref[...], p1.astype(jnp.bfloat16),
                 preferred_element_type=jnp.float32)             # (bblk*H2, W2*C1)
    p2 = conv_relu_pool(x2.astype(jnp.bfloat16), g2_ref, b2_ref) # (bblk*H2-kh, Wp2*C2)
    feats = jnp.dot(s2_ref[...], p2.astype(jnp.bfloat16),
                    preferred_element_type=jnp.float32)          # (Hp2*bblk, Wp2*C2) f32

    # Gather each image's (h, w, c) feature row via a lane concat of the
    # sublane-aligned per-h blocks, then run the fused, lane-padded f/g
    # linear as a single K=400, N=256 matmul (unmasked lane-dense store).
    hp2 = feats.shape[0] // bblk
    fcat = jnp.concatenate(
        [feats[h * bblk:(h + 1) * bblk, :] for h in range(hp2)],
        axis=1).astype(jnp.bfloat16)                             # (bblk, Hp2*Wp2*C2)
    y = jnp.dot(fcat, w5_ref[...], preferred_element_type=jnp.float32)
    y_ref[0] = y + bfg_ref[...]


def conv_fg_pallas(xf, g1, b1, s1, g2, b2, s2, w5, bfg, *, bblk, nblk, kh):
    nfg_pad = w5.shape[1]
    rb = xf.shape[0] // nblk
    kernel = functools.partial(_conv_fg_kernel, kh=kh, bblk=bblk)
    return pl.pallas_call(
        kernel,
        out_shape=jax.ShapeDtypeStruct((nblk, bblk, nfg_pad), jnp.float32),
        grid=(nblk,),
        in_specs=[
            pl.BlockSpec((rb, xf.shape[1]), lambda i: (i, 0)),
            pl.BlockSpec(g1.shape, lambda i: (0, 0)),
            pl.BlockSpec(b1.shape, lambda i: (0, 0)),
            pl.BlockSpec(s1.shape, lambda i: (0, 0)),
            pl.BlockSpec(g2.shape, lambda i: (0, 0)),
            pl.BlockSpec(b2.shape, lambda i: (0, 0)),
            pl.BlockSpec(s2.shape, lambda i: (0, 0)),
            pl.BlockSpec(w5.shape, lambda i: (0, 0)),
            pl.BlockSpec(bfg.shape, lambda i: (0, 0)),
        ],
        out_specs=pl.BlockSpec((1, bblk, nfg_pad), lambda i: (i, 0, 0)),
        compiler_params=pltpu.CompilerParams(
            dimension_semantics=("parallel",)),
    )(xf, g1, b1, s1, g2, b2, s2, w5, bfg)


# ----------------------------------------------------------------------------
# Kernel 2: m-linear + MAD head, ALL queries in a single grid step
# ----------------------------------------------------------------------------
def _mad_head_kernel(x_ref, xr_ref, grad_ref, mem_ref, mwt_ref, mb_ref, o_ref):
    nq = x_ref.shape[0]
    S = xr_ref.shape[0] // nq

    # m-linear computed once for the whole (n*S, C) memory gather.
    memlin = jnp.dot(mem_ref[...], mwt_ref[...],
                     preferred_element_type=jnp.float32) + mb_ref[...]   # (n*S, C)

    outs = []
    for i in range(nq):                                    # unrolled, n is small/static
        diff = x_ref[i:i + 1, :] - xr_ref[i * S:(i + 1) * S, :]          # (S, hid)
        neg = -jnp.sqrt(jnp.sum(diff * diff, axis=1, keepdims=True))     # (S, 1)
        mmax = jnp.max(neg, axis=0, keepdims=True)
        e = jnp.exp(neg - mmax)
        dist = e * pl.reciprocal(jnp.sum(e, axis=0, keepdims=True), approx=True)
        logits = memlin[i * S:(i + 1) * S, :] + jnp.dot(
            diff, grad_ref[i], preferred_element_type=jnp.float32)       # (S, C)
        outs.append(jnp.sum(logits * dist, axis=0, keepdims=True))       # (1, C)
    o_ref[...] = jnp.concatenate(outs, axis=0)                           # (n, C)


def mad_head_pallas(x2d, xr2d, grad3, mem2, m_wt, m_b2):
    n = x2d.shape[0]
    C = m_wt.shape[1]
    return pl.pallas_call(
        _mad_head_kernel,
        out_shape=jax.ShapeDtypeStruct((n, C), jnp.float32),
    )(x2d, xr2d, grad3, mem2, m_wt, m_b2)


# ----------------------------------------------------------------------------
# MAD forward
# ----------------------------------------------------------------------------
def mad_forward(params, mem, train, idx, img, refs):
    del idx  # unused by the PyTorch forward as well (kept for signature parity)
    n = img.shape[0]
    S = refs.shape[1]
    hid = params['f_w'].shape[0]
    C = mem.shape[1]

    # gather ref images, build the conv input in "tall image" (B*H, W*Cin) layout
    ref_imgs = train[refs.reshape(-1)]
    allimg = jnp.concatenate([img, ref_imgs], axis=0)            # (B, Cin, H, W)
    B, Cin, H, W = allimg.shape

    KH = params['conv1_w'].shape[2]
    C2 = params['conv2_w'].shape[0]
    Wo1 = W - KH + 1
    Hp1, Wp1 = (H - KH + 1) // 2, Wo1 // 2                       # 14, 14
    H2, W2 = Hp1, Wp1
    Wo2 = W2 - KH + 1
    Hp2, Wp2 = (H2 - KH + 1) // 2, Wo2 // 2                      # 5, 5

    # fixed batch block: per-step VMEM and the 0/1 selection matrices stay
    # O(1) in batch size; pad the batch with zero images to a whole number of
    # blocks (padded rows are discarded after the kernel).
    bblk = 8
    B_pad = ((B + bblk - 1) // bblk) * bblk
    nblk = B_pad // bblk
    if B_pad != B:
        allimg = jnp.concatenate(
            [allimg, jnp.zeros((B_pad - B, Cin, H, W), allimg.dtype)], axis=0)

    xf = jnp.transpose(allimg, (0, 2, 3, 1)).reshape(B_pad * H, W * Cin)
    xf = xf.astype(jnp.bfloat16)                                 # stays bf16 in-kernel

    # concat-K banded conv matmul operands (in-kernel im2col) + tiled biases
    g1 = _conv_gmat(params['conv1_w'], W).astype(jnp.bfloat16)   # (480, 168)
    g2 = _conv_gmat(params['conv2_w'], W2).astype(jnp.bfloat16)  # (420, 160)
    b1 = jnp.tile(params['conv1_b'], Wo1)[None, :].astype(jnp.float32)
    b2 = jnp.tile(params['conv2_b'], Wo2)[None, :].astype(jnp.float32)

    # 0/1 pooled-row selection matrices (static, numpy, fixed bblk)
    s1 = jnp.asarray(_pool_rows_bmajor(bblk, H, KH), dtype=jnp.bfloat16)
    s2 = jnp.asarray(_pool_rows_hmajor(bblk, H2, KH), dtype=jnp.bfloat16)

    # fused f/g weights in (h,w,c) feature order, N zero-padded 132 -> 256
    f_wp = _perm_chw_to_hwc(params['f_w'], C2, Hp2, Wp2)
    g_wp = _perm_chw_to_hwc(params['g_w'], C2, Hp2, Wp2)
    w_all = jnp.concatenate([f_wp, g_wp], axis=0).T              # (400, 132)
    nfg = w_all.shape[1]
    nfg_pad = ((nfg + 127) // 128) * 128                         # 256
    w5 = jnp.pad(w_all, ((0, 0), (0, nfg_pad - nfg))).astype(jnp.bfloat16)
    bfg = jnp.pad(jnp.concatenate([params['f_b'], params['g_b']]),
                  (0, nfg_pad - nfg))[None, :].astype(jnp.float32)

    # kernel 1: whole conv path + fused f/g linear
    y = conv_fg_pallas(xf, g1, b1, s1, g2, b2, s2, w5, bfg,
                       bblk=bblk, nblk=nblk, kh=KH)
    y = y.reshape(B_pad, nfg_pad)

    # kernel 2: m-linear + MAD head (single grid step, all queries at once)
    x2d = y[:n, :hid]                                            # (n, hid)
    xr2d = y[n:B, :hid]                                          # (n*S, hid)
    grad3 = y[:n, hid:hid + hid * C].reshape(n, hid, C)          # (n, hid, C)
    mem2 = mem[refs.reshape(-1)]                                 # (n*S, C)
    out = mad_head_pallas(x2d, xr2d, grad3, mem2,
                          params['m_w'].T, params['m_b'][None, :])
    return out


# ----------------------------------------------------------------------------
# Pure-JAX reference (for correctness check)
# ----------------------------------------------------------------------------
def reference_forward(params, mem, train, idx, img, refs):
    n = idx.shape[0]
    S = refs.shape[1]
    hid = params['f_w'].shape[0]
    C = mem.shape[1]

    def conv(xn):
        y = lax.conv_general_dilated(xn, params['conv1_w'], (1, 1), 'VALID',
                                     dimension_numbers=('NCHW', 'OIHW', 'NCHW'))
        y = jnp.maximum(y + params['conv1_b'][None, :, None, None], 0.0)
        y = lax.reduce_window(y, -jnp.inf, lax.max, (1, 1, 2, 2), (1, 1, 2, 2), 'VALID')
        y = lax.conv_general_dilated(y, params['conv2_w'], (1, 1), 'VALID',
                                     dimension_numbers=('NCHW', 'OIHW', 'NCHW'))
        y = jnp.maximum(y + params['conv2_b'][None, :, None, None], 0.0)
        y = lax.reduce_window(y, -jnp.inf, lax.max, (1, 1, 2, 2), (1, 1, 2, 2), 'VALID')
        return y.reshape(y.shape[0], -1)

    pos = lambda z: conv(z) @ params['f_w'].T + params['f_b']
    x = pos(img)
    xr = pos(train[refs.reshape(-1)]).reshape(n, S, hid)
    diff = x[:, None, :] - xr
    grad = (conv(img) @ params['g_w'].T + params['g_b']).reshape(n, 1, hid, C)
    logits = mem[refs] @ params['m_w'].T + params['m_b'] + \
        jnp.squeeze(diff[:, :, None, :] @ grad, axis=-2)
    dist = jax.nn.softmax(-jnp.linalg.norm(diff, axis=-1), axis=-1)
    logits = jnp.concatenate([logits, jnp.zeros((n, 1, C), jnp.float32)], axis=1)
    dist = jnp.concatenate([dist, jnp.zeros((n, 1), jnp.float32)], axis=1)
    return jnp.squeeze(jnp.swapaxes(logits, 1, 2) @ dist[..., None], axis=-1)


# ----------------------------------------------------------------------------
# Deterministic parameter init (shapes from MAD.__init__ / the conv Sequential)
# ----------------------------------------------------------------------------
def init_params(key):
    ks = jax.random.split(key, 10)

    def lin(k, fan_in, shape):
        bound = 1.0 / np.sqrt(fan_in)
        return jax.random.uniform(k, shape, jnp.float32, -bound, bound)

    return {
        'conv1_w': lin(ks[0], 3 * 5 * 5, (6, 3, 5, 5)),     # Conv2d(3, 6, 5)
        'conv1_b': lin(ks[1], 3 * 5 * 5, (6,)),
        'conv2_w': lin(ks[2], 6 * 5 * 5, (16, 6, 5, 5)),    # Conv2d(6, 16, 5)
        'conv2_b': lin(ks[3], 6 * 5 * 5, (16,)),
        'f_w': lin(ks[4], 400, (12, 400)),                  # Linear(400, 12)
        'f_b': lin(ks[5], 400, (12,)),
        'g_w': lin(ks[6], 400, (120, 400)),                 # Linear(400, 12*10)
        'g_b': lin(ks[7], 400, (120,)),
        'm_w': lin(ks[8], 10, (10, 10)),                    # Linear(10, 10)
        'm_b': lin(ks[9], 10, (10,)),
    }


if __name__ == "__main__":
    n, n_samples = 2, 8
    chans, H, W = 3, 32, 32          # 32x32 input -> in_feats = 16*5*5 = 400
    n_classes, n_data = 10, 64

    key = jax.random.PRNGKey(0)
    kp, kmem, ktrain, kimg, kidx, kref = jax.random.split(key, 6)

    params = init_params(kp)
    mem = 0.1 * jax.random.normal(kmem, (n_data, n_classes), jnp.float32)
    train = jax.random.normal(ktrain, (n_data, chans, H, W), jnp.float32)
    img = jax.random.normal(kimg, (n, chans, H, W), jnp.float32)
    idx = jax.random.randint(kidx, (n,), 0, n_data)
    # forward-time torch.randint sample, drawn deterministically here
    refs = jax.random.randint(kref, (n, n_samples), 0, n_data)

    out = jax.jit(mad_forward)(params, mem, train, idx, img, refs)
    out = jax.block_until_ready(out)
    assert out.shape == (n, n_classes)

    ref = reference_forward(params, mem, train, idx, img, refs)
    np.testing.assert_allclose(np.asarray(out), np.asarray(ref),
                               atol=3e-2, rtol=3e-2)
    print("KERNEL_OK")
</pallas_src>

<mosaic_0001>
module attributes {stable_mosaic.version = 11 : i64} {
  func.func @_conv_fg_kernel(%arg0: i32, %arg1: memref<256x96xbf16, #tpu.memory_space<vmem>>, %arg2: memref<480x168xbf16, #tpu.memory_space<vmem>>, %arg3: memref<1x168xf32, #tpu.memory_space<vmem>>, %arg4: memref<112x251xbf16, #tpu.memory_space<vmem>>, %arg5: memref<420x160xbf16, #tpu.memory_space<vmem>>, %arg6: memref<1x160xf32, #tpu.memory_space<vmem>>, %arg7: memref<40x107xbf16, #tpu.memory_space<vmem>>, %arg8: memref<400x256xbf16, #tpu.memory_space<vmem>>, %arg9: memref<1x256xf32, #tpu.memory_space<vmem>>, %arg10: memref<1x8x256xf32, #tpu.memory_space<vmem>>) attributes {dimension_semantics = [#tpu.dimension_semantics<parallel>], iteration_bounds = array<i64: 3>, scalar_prefetch = 0 : i64, scratch_operands = 0 : i64, tpu.core_type = #tpu.core_type<tc>, window_params = [{transform_indices = @transform_0, window_bounds = array<i64: 256, 96>}, {pipeline_mode = #tpu.pipeline_mode<synchronous>, transform_indices = @transform_1, window_bounds = array<i64: 480, 168>}, {pipeline_mode = #tpu.pipeline_mode<synchronous>, transform_indices = @transform_2, window_bounds = array<i64: 1, 168>}, {pipeline_mode = #tpu.pipeline_mode<synchronous>, transform_indices = @transform_3, window_bounds = array<i64: 112, 251>}, {pipeline_mode = #tpu.pipeline_mode<synchronous>, transform_indices = @transform_4, window_bounds = array<i64: 420, 160>}, {pipeline_mode = #tpu.pipeline_mode<synchronous>, transform_indices = @transform_5, window_bounds = array<i64: 1, 160>}, {pipeline_mode = #tpu.pipeline_mode<synchronous>, transform_indices = @transform_6, window_bounds = array<i64: 40, 107>}, {pipeline_mode = #tpu.pipeline_mode<synchronous>, transform_indices = @transform_7, window_bounds = array<i64: 400, 256>}, {pipeline_mode = #tpu.pipeline_mode<synchronous>, transform_indices = @transform_8, window_bounds = array<i64: 1, 256>}, {transform_indices = @transform_9, window_bounds = array<i64: 1, 8, 256>}]} {
    %c0 = arith.constant 0 : index
    %c0_0 = arith.constant 0 : index
    %0 = vector.load %arg1[%c0, %c0_0] : memref<256x96xbf16, #tpu.memory_space<vmem>>, vector<256x96xbf16>
    %1 = vector.extract_strided_slice %0 {offsets = [0, 0], sizes = [252, 96], strides = [1, 1]} : vector<256x96xbf16> to vector<252x96xbf16>
    %2 = vector.extract_strided_slice %0 {offsets = [1, 0], sizes = [252, 96], strides = [1, 1]} : vector<256x96xbf16> to vector<252x96xbf16>
    %3 = vector.extract_strided_slice %0 {offsets = [2, 0], sizes = [252, 96], strides = [1, 1]} : vector<256x96xbf16> to vector<252x96xbf16>
    %4 = vector.extract_strided_slice %0 {offsets = [3, 0], sizes = [252, 96], strides = [1, 1]} : vector<256x96xbf16> to vector<252x96xbf16>
    %5 = vector.extract_strided_slice %0 {offsets = [4, 0], sizes = [252, 96], strides = [1, 1]} : vector<256x96xbf16> to vector<252x96xbf16>
    %6 = tpu.concatenate %1, %2, %3, %4, %5 in 1 : vector<252x96xbf16>, vector<252x96xbf16>, vector<252x96xbf16>, vector<252x96xbf16>, vector<252x96xbf16> -> vector<252x480xbf16>
    %c0_1 = arith.constant 0 : index
    %c0_2 = arith.constant 0 : index
    %7 = vector.load %arg2[%c0_1, %c0_2] : memref<480x168xbf16, #tpu.memory_space<vmem>>, vector<480x168xbf16>
    %cst = arith.constant dense<0.000000e+00> : vector<252x168xf32>
    %8 = tpu.matmul %6, %7, %cst {dimension_numbers = #tpu.dot_dimension_numbers<[1], [0], [0], [1], [0, 0, 1, 1], [], []>} : vector<252x480xbf16>, vector<480x168xbf16>, vector<252x168xf32> -> vector<252x168xf32>
    %c0_3 = arith.constant 0 : index
    %c0_4 = arith.constant 0 : index
    %9 = vector.load %arg3[%c0_3, %c0_4] : memref<1x168xf32, #tpu.memory_space<vmem>>, vector<1x168xf32>
    %10 = vector.broadcast %9 : vector<1x168xf32> to vector<252x168xf32>
    %11 = arith.addf %8, %10 : vector<252x168xf32>
    %cst_5 = arith.constant 0.000000e+00 : f32
    %12 = vector.broadcast %cst_5 : f32 to vector<252x168xf32>
    %13 = arith.maximumf %11, %12 : vector<252x168xf32>
    %14 = vector.extract_strided_slice %13 {offsets = [0, 0], sizes = [252, 84], strides = [1, 1]} : vector<252x168xf32> to vector<252x84xf32>
    %15 = vector.extract_strided_slice %13 {offsets = [0, 84], sizes = [252, 84], strides = [1, 1]} : vector<252x168xf32> to vector<252x84xf32>
    %16 = arith.maximumf %14, %15 : vector<252x84xf32>
    %17 = vector.extract_strided_slice %16 {offsets = [0, 0], sizes = [251, 84], strides = [1, 1]} : vector<252x84xf32> to vector<251x84xf32>
    %18 = vector.extract_strided_slice %16 {offsets = [1, 0], sizes = [251, 84], strides = [1, 1]} : vector<252x84xf32> to vector<251x84xf32>
    %19 = arith.maximumf %17, %18 : vector<251x84xf32>
    %c0_6 = arith.constant 0 : index
    %c0_7 = arith.constant 0 : index
    %20 = vector.load %arg4[%c0_6, %c0_7] : memref<112x251xbf16, #tpu.memory_space<vmem>>, vector<112x251xbf16>
    %21 = arith.truncf %19 : vector<251x84xf32> to vector<251x84xbf16>
    %cst_8 = arith.constant dense<0.000000e+00> : vector<112x84xf32>
    %22 = tpu.matmul %20, %21, %cst_8 {dimension_numbers = #tpu.dot_dimension_numbers<[1], [0], [0], [1], [0, 0, 1, 1], [], []>} : vector<112x251xbf16>, vector<251x84xbf16>, vector<112x84xf32> -> vector<112x84xf32>
    %23 = arith.truncf %22 : vector<112x84xf32> to vector<112x84xbf16>
    %24 = vector.extract_strided_slice %23 {offsets = [0, 0], sizes = [108, 84], strides = [1, 1]} : vector<112x84xbf16> to vector<108x84xbf16>
    %25 = vector.extract_strided_slice %23 {offsets = [1, 0], sizes = [108, 84], strides = [1, 1]} : vector<112x84xbf16> to vector<108x84xbf16>
    %26 = vector.extract_strided_slice %23 {offsets = [2, 0], sizes = [108, 84], strides = [1, 1]} : vector<112x84xbf16> to vector<108x84xbf16>
    %27 = vector.extract_strided_slice %23 {offsets = [3, 0], sizes = [108, 84], strides = [1, 1]} : vector<112x84xbf16> to vector<108x84xbf16>
    %28 = vector.extract_strided_slice %23 {offsets = [4, 0], sizes = [108, 84], strides = [1, 1]} : vector<112x84xbf16> to vector<108x84xbf16>
    %29 = tpu.concatenate %24, %25, %26, %27, %28 in 1 : vector<108x84xbf16>, vector<108x84xbf16>, vector<108x84xbf16>, vector<108x84xbf16>, vector<108x84xbf16> -> vector<108x420xbf16>
    %c0_9 = arith.constant 0 : index
    %c0_10 = arith.constant 0 : index
    %30 = vector.load %arg5[%c0_9, %c0_10] : memref<420x160xbf16, #tpu.memory_space<vmem>>, vector<420x160xbf16>
    %cst_11 = arith.constant dense<0.000000e+00> : vector<108x160xf32>
    %31 = tpu.matmul %29, %30, %cst_11 {dimension_numbers = #tpu.dot_dimension_numbers<[1], [0], [0], [1], [0, 0, 1, 1], [], []>} : vector<108x420xbf16>, vector<420x160xbf16>, vector<108x160xf32> -> vector<108x160xf32>
    %c0_12 = arith.constant 0 : index
    %c0_13 = arith.constant 0 : index
    %32 = vector.load %arg6[%c0_12, %c0_13] : memref<1x160xf32, #tpu.memory_space<vmem>>, vector<1x160xf32>
    %33 = vector.broadcast %32 : vector<1x160xf32> to vector<108x160xf32>
    %34 = arith.addf %31, %33 : vector<108x160xf32>
    %cst_14 = arith.constant 0.000000e+00 : f32
    %35 = vector.broadcast %cst_14 : f32 to vector<108x160xf32>
    %36 = arith.maximumf %34, %35 : vector<108x160xf32>
    %37 = vector.extract_strided_slice %36 {offsets = [0, 0], sizes = [108, 80], strides = [1, 1]} : vector<108x160xf32> to vector<108x80xf32>
    %38 = vector.extract_strided_slice %36 {offsets = [0, 80], sizes = [108, 80], strides = [1, 1]} : vector<108x160xf32> to vector<108x80xf32>
    %39 = arith.maximumf %37, %38 : vector<108x80xf32>
    %40 = vector.extract_strided_slice %39 {offsets = [0, 0], sizes = [107, 80], strides = [1, 1]} : vector<108x80xf32> to vector<107x80xf32>
    %41 = vector.extract_strided_slice %39 {offsets = [1, 0], sizes = [107, 80], strides = [1, 1]} : vector<108x80xf32> to vector<107x80xf32>
    %42 = arith.maximumf %40, %41 : vector<107x80xf32>
    %c0_15 = arith.constant 0 : index
    %c0_16 = arith.constant 0 : index
    %43 = vector.load %arg7[%c0_15, %c0_16] : memref<40x107xbf16, #tpu.memory_space<vmem>>, vector<40x107xbf16>
    %44 = arith.truncf %42 : vector<107x80xf32> to vector<107x80xbf16>
    %cst_17 = arith.constant dense<0.000000e+00> : vector<40x80xf32>
    %45 = tpu.matmul %43, %44, %cst_17 {dimension_numbers = #tpu.dot_dimension_numbers<[1], [0], [0], [1], [0, 0, 1, 1], [], []>} : vector<40x107xbf16>, vector<107x80xbf16>, vector<40x80xf32> -> vector<40x80xf32>
    %46 = vector.extract_strided_slice %45 {offsets = [0, 0], sizes = [8, 80], strides = [1, 1]} : vector<40x80xf32> to vector<8x80xf32>
    %47 = vector.extract_strided_slice %45 {offsets = [8, 0], sizes = [8, 80], strides = [1, 1]} : vector<40x80xf32> to vector<8x80xf32>
    %48 = vector.extract_strided_slice %45 {offsets = [16, 0], sizes = [8, 80], strides = [1, 1]} : vector<40x80xf32> to vector<8x80xf32>
    %49 = vector.extract_strided_slice %45 {offsets = [24, 0], sizes = [8, 80], strides = [1, 1]} : vector<40x80xf32> to vector<8x80xf32>
    %50 = vector.extract_strided_slice %45 {offsets = [32, 0], sizes = [8, 80], strides = [1, 1]} : vector<40x80xf32> to vector<8x80xf32>
    %51 = tpu.concatenate %46, %47, %48, %49, %50 in 1 : vector<8x80xf32>, vector<8x80xf32>, vector<8x80xf32>, vector<8x80xf32>, vector<8x80xf32> -> vector<8x400xf32>
    %52 = arith.truncf %51 : vector<8x400xf32> to vector<8x400xbf16>
    %c0_18 = arith.constant 0 : index
    %c0_19 = arith.constant 0 : index
    %53 = vector.load %arg8[%c0_18, %c0_19] : memref<400x256xbf16, #tpu.memory_space<vmem>>, vector<400x256xbf16>
    %cst_20 = arith.constant dense<0.000000e+00> : vector<8x256xf32>
    %54 = tpu.matmul %52, %53, %cst_20 {dimension_numbers = #tpu.dot_dimension_numbers<[1], [0], [0], [1], [0, 0, 1, 1], [], []>} : vector<8x400xbf16>, vector<400x256xbf16>, vector<8x256xf32> -> vector<8x256xf32>
    %c0_21 = arith.constant 0 : index
    %c0_22 = arith.constant 0 : index
    %55 = vector.load %arg9[%c0_21, %c0_22] : memref<1x256xf32, #tpu.memory_space<vmem>>, vector<1x256xf32>
    %56 = vector.broadcast %55 : vector<1x256xf32> to vector<8x256xf32>
    %57 = arith.addf %54, %56 : vector<8x256xf32>
    %c0_23 = arith.constant 0 : index
    %c0_24 = arith.constant 0 : index
    %c0_25 = arith.constant 0 : index
    %58 = vector.load %arg10[%c0_23, %c0_24, %c0_25] : memref<1x8x256xf32, #tpu.memory_space<vmem>>, vector<1x8x256xf32>
    %59 = vector.shape_cast %58 : vector<1x8x256xf32> to vector<8x256xf32>
    %60 = vector.shape_cast %57 : vector<8x256xf32> to vector<1x8x256xf32>
    tpu.vector_store %arg10[%c0_23, %c0_24, %c0_25], %60 {strides = array<i32>} : memref<1x8x256xf32, #tpu.memory_space<vmem>>, vector<1x8x256xf32>,
    return
  }
  func.func @transform_0(%arg0: i32) -> (i32, i32) {
    %c0_i32 = arith.constant 0 : i32
    %c0_i32_0 = arith.constant 0 : i32
    return %arg0, %c0_i32 : i32, i32
  }
  func.func @transform_1(%arg0: i32) -> (i32, i32) {
    %c0_i32 = arith.constant 0 : i32
    %c0_i32_0 = arith.constant 0 : i32
    %c0_i32_1 = arith.constant 0 : i32
    return %c0_i32, %c0_i32_0 : i32, i32
  }
  func.func @transform_2(%arg0: i32) -> (i32, i32) {
    %c0_i32 = arith.constant 0 : i32
    %c0_i32_0 = arith.constant 0 : i32
    %c0_i32_1 = arith.constant 0 : i32
    return %c0_i32, %c0_i32_0 : i32, i32
  }
  func.func @transform_3(%arg0: i32) -> (i32, i32) {
    %c0_i32 = arith.constant 0 : i32
    %c0_i32_0 = arith.constant 0 : i32
    %c0_i32_1 = arith.constant 0 : i32
    return %c0_i32, %c0_i32_0 : i32, i32
  }
  func.func @transform_4(%arg0: i32) -> (i32, i32) {
    %c0_i32 = arith.constant 0 : i32
    %c0_i32_0 = arith.constant 0 : i32
    %c0_i32_1 = arith.constant 0 : i32
    return %c0_i32, %c0_i32_0 : i32, i32
  }
  func.func @transform_5(%arg0: i32) -> (i32, i32) {
    %c0_i32 = arith.constant 0 : i32
    %c0_i32_0 = arith.constant 0 : i32
    %c0_i32_1 = arith.constant 0 : i32
    return %c0_i32, %c0_i32_0 : i32, i32
  }
  func.func @transform_6(%arg0: i32) -> (i32, i32) {
    %c0_i32 = arith.constant 0 : i32
    %c0_i32_0 = arith.constant 0 : i32
    %c0_i32_1 = arith.constant 0 : i32
    return %c0_i32, %c0_i32_0 : i32, i32
  }
  func.func @transform_7(%arg0: i32) -> (i32, i32) {
    %c0_i32 = arith.constant 0 : i32
    %c0_i32_0 = arith.constant 0 : i32
    %c0_i32_1 = arith.constant 0 : i32
    return %c0_i32, %c0_i32_0 : i32, i32
  }
  func.func @transform_8(%arg0: i32) -> (i32, i32) {
    %c0_i32 = arith.constant 0 : i32
    %c0_i32_0 = arith.constant 0 : i32
    %c0_i32_1 = arith.constant 0 : i32
    return %c0_i32, %c0_i32_0 : i32, i32
  }
  func.func @transform_9(%arg0: i32) -> (i32, i32, i32) {
    %c0_i32 = arith.constant 0 : i32
    %c0_i32_0 = arith.constant 0 : i32
    %c0_i32_1 = arith.constant 0 : i32
    return %arg0, %c0_i32, %c0_i32_0 : i32, i32, i32
  }
}

module attributes {stable_mosaic.version = 11 : i64} {
  func.func @_mad_head_kernel(%arg0: memref<2x12xf32, #tpu.memory_space<vmem>>, %arg1: memref<16x12xf32, #tpu.memory_space<vmem>>, %arg2: memref<2x12x10xf32, #tpu.memory_space<vmem>>, %arg3: memref<16x10xf32, #tpu.memory_space<vmem>>, %arg4: memref<10x10xf32, #tpu.memory_space<vmem>>, %arg5: memref<1x10xf32, #tpu.memory_space<vmem>>, %arg6: memref<2x10xf32, #tpu.memory_space<vmem>>) attributes {dimension_semantics = [], scalar_prefetch = 0 : i64, scratch_operands = 0 : i64, tpu.core_type = #tpu.core_type<tc>} {
    %c0 = arith.constant 0 : index
    %c0_0 = arith.constant 0 : index
    %0 = vector.load %arg3[%c0, %c0_0] : memref<16x10xf32, #tpu.memory_space<vmem>>, vector<16x10xf32>
    %c0_1 = arith.constant 0 : index
    %c0_2 = arith.constant 0 : index
    %1 = vector.load %arg4[%c0_1, %c0_2] : memref<10x10xf32, #tpu.memory_space<vmem>>, vector<10x10xf32>
    %cst = arith.constant dense<0.000000e+00> : vector<16x10xf32>
    %2 = tpu.matmul %0, %1, %cst {dimension_numbers = #tpu.dot_dimension_numbers<[1], [0], [0], [1], [0, 0, 1, 1], [], []>} : vector<16x10xf32>, vector<10x10xf32>, vector<16x10xf32> -> vector<16x10xf32>
    %c0_3 = arith.constant 0 : index
    %c0_4 = arith.constant 0 : index
    %3 = vector.load %arg5[%c0_3, %c0_4] : memref<1x10xf32, #tpu.memory_space<vmem>>, vector<1x10xf32>
    %4 = vector.broadcast %3 : vector<1x10xf32> to vector<16x10xf32>
    %5 = arith.addf %2, %4 : vector<16x10xf32>
    %c0_5 = arith.constant 0 : index
    %c0_6 = arith.constant 0 : index
    %6 = vector.load %arg0[%c0_5, %c0_6] : memref<2x12xf32, #tpu.memory_space<vmem>>, vector<1x12xf32>
    %c0_7 = arith.constant 0 : index
    %c0_8 = arith.constant 0 : index
    %7 = vector.load %arg1[%c0_7, %c0_8] : memref<16x12xf32, #tpu.memory_space<vmem>>, vector<8x12xf32>
    %8 = vector.broadcast %6 : vector<1x12xf32> to vector<8x12xf32>
    %9 = arith.subf %8, %7 : vector<8x12xf32>
    %10 = arith.mulf %9, %9 : vector<8x12xf32>
    %cst_9 = arith.constant dense<0.000000e+00> : vector<8xf32>
    %11 = vector.multi_reduction <add>, %10, %cst_9 [1] : vector<8x12xf32> to vector<8xf32>
    %12 = vector.shape_cast %11 : vector<8xf32> to vector<8x1xf32>
    %13 = math.sqrt %12 : vector<8x1xf32>
    %cst_10 = arith.constant 0.000000e+00 : f32
    %14 = vector.broadcast %cst_10 : f32 to vector<8x1xf32>
    %15 = arith.subf %14, %13 : vector<8x1xf32>
    %cst_11 = arith.constant dense<0xFF800000> : vector<1xf32>
    %16 = vector.multi_reduction <maximumf>, %15, %cst_11 [0] : vector<8x1xf32> to vector<1xf32>
    %17 = vector.shape_cast %16 : vector<1xf32> to vector<1x1xf32>
    %18 = vector.broadcast %17 : vector<1x1xf32> to vector<8x1xf32>
    %19 = arith.subf %15, %18 : vector<8x1xf32>
    %20 = math.exp %19 : vector<8x1xf32>
    %cst_12 = arith.constant dense<0.000000e+00> : vector<1xf32>
    %21 = vector.multi_reduction <add>, %20, %cst_12 [0] : vector<8x1xf32> to vector<1xf32>
    %22 = vector.shape_cast %21 : vector<1xf32> to vector<1x1xf32>
    %23 = tpu.reciprocal %22 {approx = true} : vector<1x1xf32> -> vector<1x1xf32>
    %24 = vector.broadcast %23 : vector<1x1xf32> to vector<8x1xf32>
    %25 = arith.mulf %20, %24 : vector<8x1xf32>
    %26 = vector.extract_strided_slice %5 {offsets = [0, 0], sizes = [8, 10], strides = [1, 1]} : vector<16x10xf32> to vector<8x10xf32>
    %c0_13 = arith.constant 0 : index
    %c0_14 = arith.constant 0 : index
    %c0_15 = arith.constant 0 : index
    %27 = vector.load %arg2[%c0_13, %c0_14, %c0_15] : memref<2x12x10xf32, #tpu.memory_space<vmem>>, vector<1x12x10xf32>
    %28 = vector.shape_cast %27 : vector<1x12x10xf32> to vector<12x10xf32>
    %cst_16 = arith.constant dense<0.000000e+00> : vector<8x10xf32>
    %29 = tpu.matmul %9, %28, %cst_16 {dimension_numbers = #tpu.dot_dimension_numbers<[1], [0], [0], [1], [0, 0, 1, 1], [], []>} : vector<8x12xf32>, vector<12x10xf32>, vector<8x10xf32> -> vector<8x10xf32>
    %30 = arith.addf %26, %29 : vector<8x10xf32>
    %31 = vector.broadcast %25 : vector<8x1xf32> to vector<8x10xf32>
    %32 = arith.mulf %30, %31 : vector<8x10xf32>
    %cst_17 = arith.constant dense<0.000000e+00> : vector<10xf32>
    %33 = vector.multi_reduction <add>, %32, %cst_17 [0] : vector<8x10xf32> to vector<10xf32>
    %34 = vector.shape_cast %33 : vector<10xf32> to vector<1x10xf32>
    %c1 = arith.constant 1 : index
    %c0_18 = arith.constant 0 : index
    %35 = vector.load %arg0[%c1, %c0_18] : memref<2x12xf32, #tpu.memory_space<vmem>>, vector<1x12xf32>
    %c8 = arith.constant 8 : index
    %c0_19 = arith.constant 0 : index
    %36 = vector.load %arg1[%c8, %c0_19] : memref<16x12xf32, #tpu.memory_space<vmem>>, vector<8x12xf32>
    %37 = vector.broadcast %35 : vector<1x12xf32> to vector<8x12xf32>
    %38 = arith.subf %37, %36 : vector<8x12xf32>
    %39 = arith.mulf %38, %38 : vector<8x12xf32>
    %cst_20 = arith.constant dense<0.000000e+00> : vector<8xf32>
    %40 = vector.multi_reduction <add>, %39, %cst_20 [1] : vector<8x12xf32> to vector<8xf32>
    %41 = vector.shape_cast %40 : vector<8xf32> to vector<8x1xf32>
    %42 = math.sqrt %41 : vector<8x1xf32>
    %cst_21 = arith.constant 0.000000e+00 : f32
    %43 = vector.broadcast %cst_21 : f32 to vector<8x1xf32>
    %44 = arith.subf %43, %42 : vector<8x1xf32>
    %cst_22 = arith.constant dense<0xFF800000> : vector<1xf32>
    %45 = vector.multi_reduction <maximumf>, %44, %cst_22 [0] : vector<8x1xf32> to vector<1xf32>
    %46 = vector.shape_cast %45 : vector<1xf32> to vector<1x1xf32>
    %47 = vector.broadcast %46 : vector<1x1xf32> to vector<8x1xf32>
    %48 = arith.subf %44, %47 : vector<8x1xf32>
    %49 = math.exp %48 : vector<8x1xf32>
    %cst_23 = arith.constant dense<0.000000e+00> : vector<1xf32>
    %50 = vector.multi_reduction <add>, %49, %cst_23 [0] : vector<8x1xf32> to vector<1xf32>
    %51 = vector.shape_cast %50 : vector<1xf32> to vector<1x1xf32>
    %52 = tpu.reciprocal %51 {approx = true} : vector<1x1xf32> -> vector<1x1xf32>
    %53 = vector.broadcast %52 : vector<1x1xf32> to vector<8x1xf32>
    %54 = arith.mulf %49, %53 : vector<8x1xf32>
    %55 = vector.extract_strided_slice %5 {offsets = [8, 0], sizes = [8, 10], strides = [1, 1]} : vector<16x10xf32> to vector<8x10xf32>
    %c1_24 = arith.constant 1 : index
    %c0_25 = arith.constant 0 : index
    %c0_26 = arith.constant 0 : index
    %56 = vector.load %arg2[%c1_24, %c0_25, %c0_26] : memref<2x12x10xf32, #tpu.memory_space<vmem>>, vector<1x12x10xf32>
    %57 = vector.shape_cast %56 : vector<1x12x10xf32> to vector<12x10xf32>
    %cst_27 = arith.constant dense<0.000000e+00> : vector<8x10xf32>
    %58 = tpu.matmul %38, %57, %cst_27 {dimension_numbers = #tpu.dot_dimension_numbers<[1], [0], [0], [1], [0, 0, 1, 1], [], []>} : vector<8x12xf32>, vector<12x10xf32>, vector<8x10xf32> -> vector<8x10xf32>
    %59 = arith.addf %55, %58 : vector<8x10xf32>
    %60 = vector.broadcast %54 : vector<8x1xf32> to vector<8x10xf32>
    %61 = arith.mulf %59, %60 : vector<8x10xf32>
    %cst_28 = arith.constant dense<0.000000e+00> : vector<10xf32>
    %62 = vector.multi_reduction <add>, %61, %cst_28 [0] : vector<8x10xf32> to vector<10xf32>
    %63 = vector.shape_cast %62 : vector<10xf32> to vector<1x10xf32>
    %64 = tpu.concatenate %34, %63 in 0 : vector<1x10xf32>, vector<1x10xf32> -> vector<2x10xf32>
    %c0_29 = arith.constant 0 : index
    %c0_30 = arith.constant 0 : index
    %65 = vector.load %arg6[%c0_29, %c0_30] : memref<2x10xf32, #tpu.memory_space<vmem>>, vector<2x10xf32>
    tpu.vector_store %arg6[%c0_29, %c0_30], %64 {strides = array<i32>} : memref<2x10xf32, #tpu.memory_space<vmem>>, vector<2x10xf32>,
    return
  }
}

</mosaic_0001>

<bundles_post_ra>
// kernel: tile.13
= control target key start
LH: loop header
LB: loop body
LE: loop exit
PB: predicated region body
PF: predicated region fallthrough
CT: control target
= control target key end

     0   :  { %s40_s0 = inlined_call_operand.vmem [shape: f32[6], index: 0, kind: input, shape index: {}]   ;;  %s41_s1 = inlined_call_operand.vmem [shape: f32[28,6], index: 1, kind: output, shape index: {}]  }
   0x1   :  { %v4_v0 = vld [vmem:[%s40_s0] ss:$0 sm:$0xff] }
   0x2   :  { %5 = vst [vmem:[%s41_s1] sm:$0xff] %v4_v0  ;;  %12 = vst [vmem:[%s41_s1 + $0x8] sm:$0xff] %v4_v0 }
   0x3   :  { %13 = vst [vmem:[%s41_s1 + $0x10] sm:$0xff] %v4_v0  ;;  %14 = vst [vmem:[%s41_s1 + $0x18] sm:$0xff] %v4_v0 }

// kernel: tile.14
= control target key start
LH: loop header
LB: loop body
LE: loop exit
PB: predicated region body
PF: predicated region fallthrough
CT: control target
= control target key end

     0   :  { %vm9_vm0 = vcmask 15360   ;;  %s250_s12 = smov 126   ;;  %s251_s13 = smov 114   ;;  %vm3_vm1 = vcmask 48128   ;;  %vm13_vm2 = vcmask 31744   ;;  %vm16_vm3 = vcmask 1048560   ;;  %s380_s0 = inlined_call_operand.vmem [shape: f32[28,6], index: 0, kind: input, shape index: {}]   ;;  %s381_s1 = inlined_call_operand.vmem [shape: f32[1,168], index: 1, kind: output, shape index: {}]  }
   0x1   :  { %v194_v0 = vld [vmem:[%s380_s0 + $0x15] sm:$0x1]   ;;  %v197_v3 = vld [vmem:[%s380_s0 + $0x13] sm:$0x1]   ;;  %v196_v4 = vld [vmem:[%s380_s0 + $0x14] sm:$0x1]  }
   0x2   :  { %v195_v1 = vld [vmem:[%s380_s0 + $0x15] sm:$0x1]   ;;  %26 = vrot.lane.b32.xlu1 %v197_v3, %s251_s13  ;;  %v198_v5 = vld [vmem:[%s380_s0 + $0x12] sm:$0x1]   ;;  %s252_s18 = smov 120   ;;  %s253_s19 = smov 108  }
   0x3   :  { %v10_v2 = vsel %vm9_vm0, %v195_v1, %v194_v0  ;;  %v199_v6 = vld [vmem:[%s380_s0 + $0x11] sm:$0x1]   ;;  %v200_v7 = vld [vmem:[%s380_s0 + $0x10] sm:$0x1]   ;;  %s254_s24 = smov 102   ;;  %s255_s25 = smov 96  }
   0x4   :  { %11 = vrot.lane.b32.xlu0 %v10_v2, %s250_s12  ;;  %v201_v8 = vld [vmem:[%s380_s0 + $0xf] sm:$0x1]   ;;  %v202_v9 = vld [vmem:[%s380_s0 + $0xe] sm:$0x1]   ;;  %s256_s30 = smov 90   ;;  %s257_s2 = smov 84  }
   0x5   :  { %v2_v10 = vld [vmem:[%s380_s0] sm:$0x1]   ;;  %v203_v11 = vld [vmem:[%s380_s0 + $0xd] sm:$0x1]   ;;  %v204_v12 = vld [vmem:[%s380_s0 + $0xc] sm:$0x1]  }
   0x6   :  { %32 = vrot.lane.b32.xlu1 %v198_v5, %s253_s19  ;;  %4 = vst.msk [vmem:[#allocation0] sm:$0x1] %vm3_vm1, %v2_v10   ;;  %s258_s9 = smov 78   ;;  %s259_s10 = smov 72   ;;  %v205_v13 = vld [vmem:[%s380_s0 + $0xb] sm:$0x1]  }
   0x7   :  { %v206_v14 = vld [vmem:[%s380_s0 + $0xa] sm:$0x1]   ;;  %s260_s15 = smov 66   ;;  %s261_s16 = smov 60   ;;  %v207_v15 = vld [vmem:[%s380_s0 + $0x9] sm:$0x1]  }
   0x8   :  { %20 = vrot.lane.b32.xlu0 %v196_v4, %s252_s18  ;;  %v208_v16 = vld [vmem:[%s380_s0 + $0x8] sm:$0x1]   ;;  %s262_s21 = smov 54   ;;  %s263_s22 = smov 48   ;;  %v209_v17 = vld [vmem:[%s380_s0 + $0x7] sm:$0x1]  }
   0x9   :  { %v210_v18 = vld [vmem:[%s380_s0 + $0x6] sm:$0x1]   ;;  %s264_s27 = smov 42   ;;  %s265_s28 = smov 36   ;;  %v211_v19 = vld [vmem:[%s380_s0 + $0x1b] sm:$0x1]  }
   0xa   :  { %44 = vrot.lane.b32.xlu1 %v200_v7, %s255_s25  ;;  %v212_v20 = vld [vmem:[%s380_s0 + $0x5] sm:$0x1]   ;;  %s266_s4 = smov 34   ;;  %s267_s5 = smov 30   ;;  %v213_v21 = vld [vmem:[%s380_s0 + $0x1a] sm:$0x1]  }
   0xb   :  { %v214_v22 = vld [vmem:[%s380_s0 + $0x4] sm:$0x1]   ;;  %s269_s11 = smov 24   ;;  %v215_v23 = vld [vmem:[%s380_s0 + $0x19] sm:$0x1]   ;;  %s271_s17 = smov 18  }
   0xc   :  { %38 = vrot.lane.b32.xlu0 %v199_v6, %s254_s24  ;;  %v216_v24 = vld [vmem:[%s380_s0 + $0x3] sm:$0x1]   ;;  %v217_v25 = vld [vmem:[%s380_s0 + $0x18] sm:$0x1]   ;;  %v218_v26 = vld [vmem:[%s380_s0 + $0x2] sm:$0x1]  }
   0xd   :  { %s273_s23 = smov 12   ;;  %v219_v27 = vld [vmem:[%s380_s0 + $0x17] sm:$0x1]   ;;  %v220_v28 = vld [vmem:[%s380_s0 + $0x1] sm:$0x1]   ;;  %s275_s29 = smov 6  }
   0xe   :  { %56 = vrot.lane.b32.xlu1 %v202_v9, %s257_s2  ;;  %v221_v29 = vld [vmem:[%s380_s0 + $0x16] sm:$0x1]   ;;  %s276_s0 = smov 4   ;;  %vm22_vm4 = vcmask 1032128   ;;  %vm28_vm5 = vcmask 982928   ;;  %vm34_vm6 = vcmask 933728  }
   0xf   :  { %vm40_vm7 = vcmask 884528   ;;  %vm46_vm8 = vcmask 835328   ;;  %vm52_vm9 = vcmask 786128   ;;  %vm58_vm10 = vcmask 736928  }
  0x10   :  { %50 = vrot.lane.b32.xlu0 %v201_v8, %s256_s30  ;;  %vm64_vm11 = vcmask 687728   ;;  %vm70_vm12 = vcmask 638528   ;;  %vm76_vm13 = vcmask 589328   ;;  %vm82_vm14 = vcmask 540128  }
  0x11   :  { %vm88_vm15 = vcmask 490928   ;;  %vm94_vm0 = vcmask 441728   ;;  %vm100_vm1 = vcmask 392528  }
  0x12   :  { %68 = vrot.lane.b32.xlu1 %v204_v12, %s259_s10  ;;  %s268_s10 = smov 28  }
  0x14   :  { %62 = vrot.lane.b32.xlu0 %v203_v11, %s258_s9 }
  0x16   :  { %80 = vrot.lane.b32.xlu1 %v206_v14, %s261_s16  ;;  %s270_s16 = smov 22  }
  0x18   :  { %74 = vrot.lane.b32.xlu0 %v205_v13, %s260_s15 }
  0x1a   :  { %92 = vrot.lane.b32.xlu1 %v208_v16, %s263_s22  ;;  %s272_s22 = smov 16  }
  0x1c   :  { %86 = vrot.lane.b32.xlu0 %v207_v15, %s262_s21 }
  0x1e   :  { %104 = vrot.lane.b32.xlu1 %v210_v18, %s265_s28  ;;  %s274_s28 = smov 10  }
  0x20   :  { %98 = vrot.lane.b32.xlu0 %v209_v17, %s264_s27 }
  0x22   :  { %117 = vrot.lane.b32.xlu1 %v212_v20, %s267_s5 }
  0x24   :  { %110 = vrot.lane.b32.xlu0 %v211_v19, %s266_s4 }
  0x26   :  { %130 = vrot.lane.b32.xlu1 %v214_v22, %s269_s11 }
  0x28   :  { %123 = vrot.lane.b32.xlu0 %v213_v21, %s268_s10 }
  0x2a   :  { %143 = vrot.lane.b32.xlu1 %v216_v24, %s271_s17 }
  0x2c   :  { %136 = vrot.lane.b32.xlu0 %v215_v23, %s270_s16 }
  0x2e   :  { %156 = vrot.lane.b32.xlu1 %v218_v26, %s273_s23 }
  0x30   :  { %149 = vrot.lane.b32.xlu0 %v217_v25, %s272_s22 }
  0x32   :  { %169 = vrot.lane.b32.xlu1 %v220_v28, %s275_s29 }
  0x34   :  { %162 = vrot.lane.b32.xlu0 %v219_v27, %s274_s28 }
  0x38   :  { %175 = vrot.lane.b32.xlu0 %v221_v29, %s276_s0 }
  0x74   :  { %v27_v31 = vpop.permute.xlu1 %26  }
  0x76   :  { %v12_v30 = vpop.permute.xlu0 %11  }
  0x77   :  { %15 = vst.msk [vmem:[#allocation0 + $0x8] sm:$0x1] %vm13_vm2, %v12_v30   ;;  %vm106_vm2 = vcmask 343328  }
  0x78   :  { %17 = vst.msk [vmem:[#allocation0] sm:$0x1] %vm16_vm3, %v12_v30   ;;  %v33_v33 = vpop.permute.xlu1 %32   ;;  %vm112_vm3 = vcmask 326928  }
  0x7a   :  { %v21_v32 = vpop.permute.xlu0 %20  }
  0x7b   :  { %23 = vst.msk [vmem:[#allocation0] sm:$0x1] %vm22_vm4, %v21_v32   ;;  %vm119_vm4 = vcmask 294128  }
  0x7c   :  { %29 = vst.msk [vmem:[#allocation0] sm:$0x1] %vm28_vm5, %v27_v31   ;;  %v45_v35 = vpop.permute.xlu1 %44   ;;  %vm125_vm5 = vcmask 277728  }
  0x7d   :  { %35 = vst.msk [vmem:[#allocation0] sm:$0x1] %vm34_vm6, %v33_v33   ;;  %vm132_vm6 = vcmask 244928  }
  0x7e   :  { %v39_v34 = vpop.permute.xlu0 %38  }
  0x7f   :  { %41 = vst.msk [vmem:[#allocation0] sm:$0x1] %vm40_vm7, %v39_v34   ;;  %vm138_vm7 = vcmask 228528  }
  0x80   :  { %47 = vst.msk [vmem:[#allocation0] sm:$0x1] %vm46_vm8, %v45_v35   ;;  %v57_v37 = vpop.permute.xlu1 %56   ;;  %vm145_vm8 = vcmask 195728  }
  0x82   :  { %v51_v36 = vpop.permute.xlu0 %50  }
  0x83   :  { %53 = vst.msk [vmem:[#allocation0] sm:$0x1] %vm52_vm9, %v51_v36   ;;  %vm151_vm9 = vcmask 179328  }
  0x84   :  { %59 = vst.msk [vmem:[#allocation0] sm:$0x1] %vm58_vm10, %v57_v37   ;;  %v69_v39 = vpop.permute.xlu1 %68   ;;  %vm158_vm10 = vcmask 146528  }
  0x86   :  { %v63_v38 = vpop.permute.xlu0 %62  }
  0x87   :  { %65 = vst.msk [vmem:[#allocation0] sm:$0x1] %vm64_vm11, %v63_v38   ;;  %vm164_vm11 = vcmask 130128  }
  0x88   :  { %71 = vst.msk [vmem:[#allocation0] sm:$0x1] %vm70_vm12, %v69_v39   ;;  %v81_v41 = vpop.permute.xlu1 %80   ;;  %vm171_vm12 = vcmask 97328  }
  0x8a   :  { %v75_v40 = vpop.permute.xlu0 %74  }
  0x8b   :  { %77 = vst.msk [vmem:[#allocation0] sm:$0x1] %vm76_vm13, %v75_v40   ;;  %vm177_vm13 = vcmask 80928  }
  0x8c   :  { %83 = vst.msk [vmem:[#allocation0] sm:$0x1] %vm82_vm14, %v81_v41   ;;  %v93_v43 = vpop.permute.xlu1 %92  }
  0x8e   :  { %v87_v42 = vpop.permute.xlu0 %86  }
  0x8f   :  { %89 = vst.msk [vmem:[#allocation0] sm:$0x1] %vm88_vm15, %v87_v42  }
  0x90   :  { %95 = vst.msk [vmem:[#allocation0] sm:$0x1] %vm94_vm0, %v93_v43   ;;  %v105_v45 = vpop.permute.xlu1 %104  }
  0x92   :  { %v99_v44 = vpop.permute.xlu0 %98  }
  0x93   :  { %101 = vst.msk [vmem:[#allocation0] sm:$0x1] %vm100_vm1, %v99_v44  }
  0x94   :  { %107 = vst.msk [vmem:[#allocation0] sm:$0x1] %vm106_vm2, %v105_v45   ;;  %v118_v47 = vpop.permute.xlu1 %117  }
  0x95   :  { %120 = vst.msk [vmem:[#allocation0] sm:$0x1] %vm119_vm4, %v118_v47  }
  0x96   :  { %v111_v46 = vpop.permute.xlu0 %110  }
  0x97   :  { %114 = vst.msk [vmem:[#allocation0 + $0x8] sm:$0x1] %vm112_vm3, %v111_v46  }
  0x98   :  { %v131_v49 = vpop.permute.xlu1 %130  }
  0x99   :  { %133 = vst.msk [vmem:[#allocation0] sm:$0x1] %vm132_vm6, %v131_v49  }
  0x9a   :  { %v124_v48 = vpop.permute.xlu0 %123  }
  0x9b   :  { %127 = vst.msk [vmem:[#allocation0 + $0x8] sm:$0x1] %vm125_vm5, %v124_v48  }
  0x9c   :  { %v144_v51 = vpop.permute.xlu1 %143  }
  0x9d   :  { %146 = vst.msk [vmem:[#allocation0] sm:$0x1] %vm145_vm8, %v144_v51  }
  0x9e   :  { %v137_v50 = vpop.permute.xlu0 %136  }
  0x9f   :  { %140 = vst.msk [vmem:[#allocation0 + $0x8] sm:$0x1] %vm138_vm7, %v137_v50  }
  0xa0   :  { %v157_v53 = vpop.permute.xlu1 %156  }
  0xa1   :  { %159 = vst.msk [vmem:[#allocation0] sm:$0x1] %vm158_vm10, %v157_v53  }
  0xa2   :  { %v150_v52 = vpop.permute.xlu0 %149  }
  0xa3   :  { %153 = vst.msk [vmem:[#allocation0 + $0x8] sm:$0x1] %vm151_vm9, %v150_v52  }
  0xa4   :  { %v170_v55 = vpop.permute.xlu1 %169  }
  0xa5   :  { %172 = vst.msk [vmem:[#allocation0] sm:$0x1] %vm171_vm12, %v170_v55  }
  0xa6   :  { %v163_v54 = vpop.permute.xlu0 %162  }
  0xa7   :  { %166 = vst.msk [vmem:[#allocation0 + $0x8] sm:$0x1] %vm164_vm11, %v163_v54  }
  0xaa   :  { %v176_v56 = vpop.permute.xlu0 %175  }
  0xab   :  { %179 = vst.msk [vmem:[#allocation0 + $0x8] sm:$0x1] %vm177_vm13, %v176_v56  }
  0xac   :  { %v184_v57 = vld [vmem:[#allocation0] sm:$0x1] }
  0xad   :  { %187 = vst [vmem:[%s381_s1] sm:$0x1] %v184_v57 }
  0xb2   :  { %v189_v58 = vld [vmem:[#allocation0 + $0x8] sm:$0x1] }
  0xb3   :  { %222 = vst [vmem:[%s381_s1 + $0x1] sm:$0x1] %v189_v58 }

// kernel: tile.18
= control target key start
LH: loop header
LB: loop body
LE: loop exit
PB: predicated region body
PF: predicated region fallthrough
CT: control target
= control target key end

     0   :  { %s28_s0 = inlined_call_operand.vmem [shape: f32[16], index: 0, kind: input, shape index: {}]   ;;  %s29_s1 = inlined_call_operand.vmem [shape: f32[10,16], index: 1, kind: output, shape index: {}]  }
   0x1   :  { %v4_v0 = vld [vmem:[%s28_s0] ss:$0 sm:$0xff] }
   0x2   :  { %5 = vst [vmem:[%s29_s1] sm:$0xff] %v4_v0  ;;  %8 = vst [vmem:[%s29_s1 + $0x8] sm:$0xff] %v4_v0 }

// kernel: tile.19
= control target key start
LH: loop header
LB: loop body
LE: loop exit
PB: predicated region body
PF: predicated region fallthrough
CT: control target
= control target key end

     0   :  { %s78_s10 = smov 112   ;;  %s79_s11 = smov 80   ;;  %vm4_vm0 = vcmask 130048   ;;  %vm10_vm1 = vcmask 1048448   ;;  %vm16_vm2 = vcmask 917248   ;;  %vm22_vm3 = vcmask 786048   ;;  %s125_s0 = inlined_call_operand.vmem [shape: f32[10,16], index: 0, kind: input, shape index: {}]   ;;  %s126_s1 = inlined_call_operand.vmem [shape: f32[1,160], index: 1, kind: output, shape index: {}]  }
   0x1   :  { %v63_v0 = vld [vmem:[%s125_s0 + $0x7] sm:$0x1]   ;;  %v65_v1 = vld [vmem:[%s125_s0 + $0x5] sm:$0x1]   ;;  %v64_v2 = vld [vmem:[%s125_s0 + $0x6] sm:$0x1]  }
   0x2   :  { %8 = vrot.lane.b32.xlu0 %v63_v0, %s78_s10  ;;  %20 = vrot.lane.b32.xlu1 %v65_v1, %s79_s11  ;;  %v66_v3 = vld [vmem:[%s125_s0 + $0x4] sm:$0x1]   ;;  %s2_s16 = smov 3  ;;  %s80_s17 = smov 96   ;;  %v67_v5 = vld [vmem:[%s125_s0 + $0x3] sm:$0x1]  }
   0x3   :  { %s81_s18 = smov 64   ;;  %v3_v4 = vld [vmem:[%s125_s0] ss:$8 sm:%s2_s16]   ;;  %v68_v6 = vld [vmem:[%s125_s0 + $0x2] sm:$0x1]   ;;  %s43_s25 = smov 3 }
   0x4   :  { %5 = vst.msk [vmem:[#allocation0] ss:$8 sm:$0x3] %vm4_vm0, %v3_v4   ;;  %s82_s26 = smov 48   ;;  %s83_s27 = smov 32   ;;  %vm28_vm4 = vcmask 654848  }
   0x5   :  { %v69_v7 = vld [vmem:[%s125_s0 + $0x1] ss:$8 sm:%s43_s25]   ;;  %s84_s0 = smov 16   ;;  %vm34_vm5 = vcmask 523648   ;;  %vm40_vm6 = vcmask 392448   ;;  %vm47_vm7 = vcmask 261248  }
   0x6   :  { %14 = vrot.lane.b32.xlu0 %v64_v2, %s80_s17  ;;  %26 = vrot.lane.b32.xlu1 %v66_v3, %s81_s18 }
   0xa   :  { %32 = vrot.lane.b32.xlu0 %v67_v5, %s82_s26  ;;  %38 = vrot.lane.b32.xlu1 %v68_v6, %s83_s27 }
   0xe   :  { %45 = vrot.lane.b32.xlu0 %v69_v7, %s84_s0 }
  0x74   :  { %v9_v8 = vpop.permute.xlu0 %8   ;;  %v21_v9 = vpop.permute.xlu1 %20  }
  0x75   :  { %11 = vst.msk [vmem:[#allocation0] sm:$0x1] %vm10_vm1, %v9_v8  }
  0x78   :  { %v15_v10 = vpop.permute.xlu0 %14   ;;  %v27_v11 = vpop.permute.xlu1 %26  }
  0x79   :  { %17 = vst.msk [vmem:[#allocation0] sm:$0x1] %vm16_vm2, %v15_v10  }
  0x7a   :  { %23 = vst.msk [vmem:[#allocation0] sm:$0x1] %vm22_vm3, %v21_v9  }
  0x7b   :  { %29 = vst.msk [vmem:[#allocation0] sm:$0x1] %vm28_vm4, %v27_v11  }
  0x7c   :  { %v33_v12 = vpop.permute.xlu0 %32   ;;  %v39_v13 = vpop.permute.xlu1 %38  }
  0x7d   :  { %35 = vst.msk [vmem:[#allocation0] sm:$0x1] %vm34_vm5, %v33_v12  }
  0x7e   :  { %41 = vst.msk [vmem:[#allocation0] sm:$0x1] %vm40_vm6, %v39_v13  }
  0x80   :  { %v46_v14 = vpop.permute.xlu0 %45  }
  0x81   :  { %48 = vst.msk [vmem:[#allocation0] ss:$8 sm:$0x3] %vm47_vm7, %v46_v14  }
  0x88   :  { %v53_v15 = vld [vmem:[#allocation0] sm:$0x1]  ;;  %v58_v16 = vld [vmem:[#allocation0 + $0x8] sm:$0x1] }
  0x89   :  { %56 = vst [vmem:[%s126_s1] sm:$0x1] %v53_v15  ;;  %70 = vst [vmem:[%s126_s1 + $0x1] sm:$0x1] %v58_v16 }

// kernel: mad_forward.3
= control target key start
LH: loop header
LB: loop body
LE: loop exit
PB: predicated region body
PF: predicated region fallthrough
CT: control target
= control target key end

     0   :  { %vm42_vm0 = vcmask 1041408   ;;  %vm35_vm1 = vcmask 80896   ;;  %vm129_vm2 = vcmask 97280   ;;  %vm163_vm3 = vcmask 1043456   ;;  %s558_s0 = inlined_call_operand.vmem [shape: f32[2,12], index: 0, kind: input, shape index: {}]   ;;  %s559_s1 = inlined_call_operand.vmem [shape: f32[16,12], index: 1, kind: input, shape index: {}]   ;;  %s560_s2 = inlined_call_operand.vmem [shape: f32[2,12,10], index: 2, kind: input, shape index: {}]   ;;  %s561_s3 = inlined_call_operand.vmem [shape: f32[16,10], index: 3, kind: input, shape index: {}]   ;;  %s562_s4 = inlined_call_operand.vmem [shape: f32[10,10], index: 4, kind: input, shape index: {}]   ;;  %s563_s5 = inlined_call_operand.vmem [shape: f32[1,10], index: 5, kind: input, shape index: {}]   ;;  %s564_s6 = inlined_call_operand.hbm [shape: f32[2,10], index: 6, kind: output, shape index: {}]  }
   0x1   :  { %v392_v0 = vld [vmem:[%s558_s0] ss:$0 sm:$0xff]  ;;  %v395_v2 = vld [vmem:[%s558_s0 + $0x1] ss:$0 sm:$0xff]  ;;  %v247_v4 = vld [vmem:[%s559_s1 + $0x8] sm:$0xff]  ;;  %v468_v13 = vmov 0.0  }
   0x2   :  { %v122_v1 = vld [vmem:[%s559_s1] sm:$0xff]  ;;  %v27_v5 = vld [vmem:[%s562_s4 + $0x8] sm:$0x3]  ;;  %v252_v7 = vsub.f32 %v395_v2, %v247_v4  ;;  %417 = vmatprep.subr.mxu1 %v468_v13 }
   0x3   :  { %v127_v3 = vsub.f32 %v392_v0, %v122_v1  ;;  %v26_v6 = vld [vmem:[%s562_s4] sm:$0xff]  ;;  %410 = vmatprep.subr.msk.mxu0 %vm42_vm0, %v27_v5  ;;  %v159_v9 = vld [vmem:[%s560_s2 + $0x8] sm:$0xf] }
   0x4   :  { %v24_v8 = vld [vmem:[%s561_s3] sm:$0xff]  ;;  %411 = vmatpush3.msk.msra.mxu0 %vm42_vm0, %v27_v5  ;;  %v25_v11 = vld [vmem:[%s561_s3 + $0x8] sm:$0xff]  ;;  %v253_v12 = vmul.f32 %v252_v7, %v252_v7 }
   0x5   :  { %v128_v10 = vmul.f32 %v127_v3, %v127_v3  ;;  %414 = vmatprep.mubr.msk.f32.mxu0 %vm35_vm1, %v24_v8  ;;  %412 = vmatprep.subr.mxu0 %v26_v6 }
   0x6   :  { %11 = vsyncpa [#allocation3], 0  ;;  %413 = vmatpush3.msra.mxu0 %v26_v6  ;;  %418 = vmatpush3.msk.msra.mxu1 %vm163_vm3, %v159_v9  ;;  %v158_v15 = vld [vmem:[%s560_s2] sm:$0xff]  ;;  %v397_v16 = vld [vmem:[%s560_s2 + $0x18] sm:$0xf]  ;;  %v254_v17 = vsel %vm129_vm2, %v253_v12, 0.0 }
   0x7   :  { %v130_v14 = vsel %vm129_vm2, %v128_v10, 0.0  ;;  %415 = vmatmul.mubr.msk.f32.vlgmr.msra.gmra.mxu0 %vm35_vm1, %v25_v11  ;;  %419 = vmatprep.subr.mxu1 %v468_v13  ;;  %vm469_vm4 = vmmov 0   ;;  %v396_v18 = vld [vmem:[%s560_s2 + $0x10] sm:$0xff]  ;;  %v388_v5 = vld [vmem:[%s563_s5] ss:$0 sm:$0xff]  ;;  %s470_s5 = smov [#allocation2]  }
   0x8   :  { %131 = vadd.xlane.f32.xlu0 %v130_v14  ;;  %424 = vmatprep.subr.mxu0 %v468_v13  ;;  %s380_s18 = sshll.u32 %s470_s5, 4  ;;  %vm370_vm9 = vcmask 1040384   ;;  %vm372_vm10 = vcmask 74752   ;;  %s381_s18 = int_to_ptr.vmem [resolvable:$true] %s380_s18 }
   0x9   :  { %420 = vmatpush3.msra.mxu1 %v158_v15  ;;  %421 = vmatprep.mubr.msk.f32.mxu1 %vm469_vm4, %v468_v13  ;;  %s446_s19 = scalar_lea.vmem %s381_s18, 32  ;;  %p451_p1 = scmp.lt.s32.totalorder %s381_s18, %s381_s18 }
   0xa   :  { %425 = vmatpush3.msk.msra.mxu0 %vm163_vm3, %v397_v16  ;;  %422 = vmatmul.mubr.msk.f32.vlgmr.msra.gmra.mxu1 %vm129_vm2, %v127_v3  ;;  %p447_p0 = scmp.ne.s32.totalorder %s381_s18, %s446_s19  ;;  %p452_p2 = scmp.lt.s32.totalorder %s446_s19, %s446_s19 }
   0xb   :  { %426 = vmatprep.subr.mxu0 %v468_v13  ;;  %428 = vmatprep.mubr.msk.f32.mxu0 %vm469_vm4, %v468_v13 }
   0xc   :  { %255 = vadd.xlane.f32.xlu0 %v254_v17  ;;  %427 = vmatpush3.msra.mxu0 %v396_v18  ;;  %p453_p3 = por %p452_p2, %p451_p1 }
   0xd   :  { %429 = vmatmul.mubr.msk.f32.vlgmr.msra.gmra.mxu0 %vm129_vm2, %v252_v7 }
   0xe   :  { %p454_p4 = pnand %p453_p3, %p447_p0 }
  0x91   :  { %v132_v19 = vpop.xlane.xlu0 %131 }
  0x92   :  { %434 = vrsqrt.f32 %v132_v19  ;;  %vm135_vm5 = vcmp.eq.f32.partialorder %v132_v19, inf  ;;  %v138_v23 = vand.u32 2147483648, %v132_v19  ;;  %vm137_vm6 = vcmp.eq.f32.partialorder %v132_v19, 0.0 }
  0x95   :  { %v256_v20 = vpop.xlane.xlu0 %255 }
  0x96   :  { %436 = vrsqrt.f32 %v256_v20  ;;  %vm259_vm7 = vcmp.eq.f32.partialorder %v256_v20, inf  ;;  %v262_v29 = vand.u32 2147483648, %v256_v20  ;;  %vm261_vm8 = vcmp.eq.f32.partialorder %v256_v20, 0.0 }
  0x9f   :  { %v435_v21 = vpop.eup %434 }
  0xa0   :  { %v134_v22 = vmul.f32 %v435_v21, %v132_v19 }
  0xa2   :  { %v136_v24 = vsel %vm135_vm5, %v132_v19, %v134_v22 }
  0xa3   :  { %v437_v25 = vpop.eup %436  ;;  %v139_v26 = vsel %vm137_vm6, %v138_v23, %v136_v24 }
  0xa4   :  { %v140_v27 = vsub.f32 0.0, %v139_v26  ;;  %v258_v28 = vmul.f32 %v437_v25, %v256_v20 }
  0xa6   :  { %v141_v30 = vrot.slane %v140_v27, 4  ;;  %v260_v31 = vsel %vm259_vm7, %v256_v20, %v258_v28 }
  0xa7   :  { %v263_v32 = vsel %vm261_vm8, %v262_v29, %v260_v31 }
  0xa8   :  { %v142_v33 = vmax.f32 %v140_v27, %v141_v30  ;;  %v264_v34 = vsub.f32 0.0, %v263_v32 }
  0xaa   :  { %v143_v35 = vrot.slane %v142_v33, 2  ;;  %v265_v36 = vrot.slane %v264_v34, 4 }
  0xac   :  { %v144_v37 = vmax.f32 %v142_v33, %v143_v35  ;;  %v266_v38 = vmax.f32 %v264_v34, %v265_v36 }
  0xae   :  { %v145_v39 = vrot.slane %v144_v37, 1  ;;  %v267_v40 = vrot.slane %v266_v38, 2 }
  0xb0   :  { %v146_v41 = vmax.f32 %v144_v37, %v145_v39  ;;  %v268_v42 = vmax.f32 %v266_v38, %v267_v40 }
  0xb2   :  { %v147_v43 = vsub.f32 %v140_v27, %v146_v41  ;;  %v269_v44 = vrot.slane %v268_v42, 1 }
  0xb4   :  { %v148_v45 = vmul.f32 1.442695, %v147_v43  ;;  %v270_v46 = vmax.f32 %v268_v42, %v269_v44 }
  0xb6   :  { %438 = vpow2.f32 %v148_v45  ;;  %v271_v47 = vsub.f32 %v264_v34, %v270_v46 }
  0xb8   :  { %v272_v48 = vmul.f32 1.442695, %v271_v47 }
  0xba   :  { %440 = vpow2.f32 %v272_v48 }
  0xc3   :  { %v439_v49 = vpop.eup %438 }
  0xc4   :  { %v150_v50 = vrot.slane %v439_v49, 4 }
  0xc6   :  { %v151_v51 = vadd.f32 %v439_v49, %v150_v50 }
  0xc7   :  { %v441_v52 = vpop.eup %440  ;;  %v416_v53 = vpop.f32.mrf.mxu0 }
  0xc8   :  { %v152_v54 = vrot.slane %v151_v51, 2  ;;  %v274_v55 = vrot.slane %v441_v52, 4  ;;  %v118_v9 = vadd.f32 %v416_v53, %v388_v5 }
  0xc9   :  { %v112_v59 = vpop.f32.mrf.mxu0 }
  0xca   :  { %v153_v56 = vadd.f32 %v152_v54, %v151_v51  ;;  %v275_v57 = vadd.f32 %v441_v52, %v274_v55  ;;  %v233_v58 = vpop.f32.mrf.mxu1  ;;  %v113_v6 = vadd.f32 %v388_v5, %v112_v59 }
  0xcc   :  { %v154_v60 = vrot.slane %v153_v56, 1  ;;  %v276_v61 = vrot.slane %v275_v57, 2  ;;  %v423_v62 = vpop.f32.mrf.mxu1  ;;  %v237_v7 = vadd.f32 %v233_v58, %v113_v6 }
  0xcd   :  { %v357_v1 = vpop.f32.mrf.mxu0 }
  0xce   :  { %v155_v63 = vadd.f32 %v154_v60, %v153_v56  ;;  %v277_v0 = vadd.f32 %v276_v61, %v275_v57  ;;  %v361_v15 = vadd.f32 %v357_v1, %v118_v9 }
  0xcf   :  { %v430_v3 = vpop.f32.mrf.mxu0 }
  0xd0   :  { %442 = vrcp.f32 %v155_v63  ;;  %v278_v2 = vrot.slane %v277_v0, 1 }
  0xd2   :  { %v279_v4 = vadd.f32 %v278_v2, %v277_v0 }
  0xd4   :  { %444 = vrcp.f32 %v279_v4 }
  0xdd   :  { %v443_v8 = vpop.eup %442 }
  0xde   :  { %v157_v10 = vmul.f32 %v443_v8, %v439_v49 }
  0xe0   :  { %v238_v11 = vmul.f32 %v237_v7, %v157_v10 }
  0xe1   :  { %v445_v12 = vpop.eup %444 }
  0xe2   :  { %v239_v13 = vsel %vm35_vm1, %v238_v11, 0.0  ;;  %v281_v14 = vmul.f32 %v445_v12, %v441_v52 }
  0xe3   :  { %v240_v16 = vrot.slane %v239_v13, 4 }
  0xe4   :  { %v362_v17 = vmul.f32 %v361_v15, %v281_v14 }
  0xe5   :  { %v241_v18 = vadd.f32 %v240_v16, %v239_v13 }
  0xe6   :  { %v363_v19 = vsel %vm35_vm1, %v362_v17, 0.0 }
  0xe7   :  { %v242_v20 = vrot.slane %v241_v18, 2  ;;  %v364_v21 = vrot.slane %v363_v19, 4 }
  0xe9   :  { %v243_v22 = vadd.f32 %v242_v20, %v241_v18  ;;  %v365_v23 = vadd.f32 %v364_v21, %v363_v19 }
  0xeb   :  { %v366_v24 = vrot.slane %v365_v23, 2  ;;  %v244_v26 = vrot.slane %v243_v22, 1 }
  0xed   :  { %v367_v25 = vadd.f32 %v366_v24, %v365_v23  ;;  %v245_v28 = vadd.f32 %v244_v26, %v243_v22 }
  0xef   :  { %v368_v27 = vrot.slane %v367_v25, 1 }
  0xf1   :  { %v369_v29 = vadd.f32 %v368_v27, %v367_v25 }
  0xf3   :  { %v371_v30 = vsel %vm370_vm9, %v245_v28, %v369_v29 }
  0xf4   :  { %373 = vst.msk [vmem:[#allocation2] sm:$0x3] %vm372_vm10, %v371_v30 }
  0xf5   :  { %457 = shalt.err (!%p454_p4)
}
  0xf6   :  { %383 = dma.vmem_to_hbm [thread:$0]  %s381_s18, 32, %s564_s6, [#allocation3]  }
  0xf7   :  { %466 = dma.done.wait [#allocation3], 32  }
  0xf8   :  { %467 = vsyncadd [#allocation3], 4294967264 }
  0xf9   :  { %387 = vsyncpa [#allocation3], 1 }

// kernel: mad_forward.2
= control target key start
LH: loop header
LB: loop body
LE: loop exit
PB: predicated region body
PF: predicated region fallthrough
CT: control target
= control target key end

     0   :  { %s5045_s30 = smov 0   ;;  %s6965_s0 = inlined_call_operand.vmem [shape: bf16[768,96], index: 0, kind: input, shape index: {}]   ;;  %s6966_s1 = inlined_call_operand.vmem [shape: bf16[480,168], index: 1, kind: input, shape index: {}]   ;;  %s6967_s2 = inlined_call_operand.vmem [shape: f32[1,168], index: 2, kind: input, shape index: {}]   ;;  %s6968_s3 = inlined_call_operand.vmem [shape: bf16[112,251], index: 3, kind: input, shape index: {}]   ;;  %s6969_s4 = inlined_call_operand.vmem [shape: bf16[420,160], index: 4, kind: input, shape index: {}]   ;;  %s6970_s5 = inlined_call_operand.vmem [shape: f32[1,160], index: 5, kind: input, shape index: {}]   ;;  %s6971_s6 = inlined_call_operand.vmem [shape: bf16[40,107], index: 6, kind: input, shape index: {}]   ;;  %s6972_s7 = inlined_call_operand.vmem [shape: bf16[400,256], index: 7, kind: input, shape index: {}]   ;;  %s6973_s8 = inlined_call_operand.vmem [shape: f32[1,256], index: 8, kind: input, shape index: {}]   ;;  %s6974_s9 = inlined_call_operand.vmem [shape: f32[3,8,256], index: 9, kind: output, shape index: {}]  }
   0x1 LB: > { %s5051_s10 = sadd.s32 4294967295, %s4980_s30   ;;  %p4096_p0 = scmp.ge.s32.totalorder %s4980_s30, 1  ;;  %s4980_s30 = sphi %s5045_s30, %s19_s30  }
   0x2   : > { %p288_p1 = scmp.lt.s32.totalorder %s4980_s30, 4 }
   0x4   : > { %p289_p2 = pnand %p4096_p0, %p288_p1 }
   0x6   : > { %292 = sbr.rel (%p289_p2) target bundleno = 1912 (0x778), region = 56 }
   0xb   : > { %s4097_s11 = sshll.u32 %s5051_s10, 5  ;;  %v4690_v0 = vld [vmem:[%s6966_s1 + $0x74] ss:$8 sps:$4 sm:$0xff]   ;;  %v4692_v1 = vld [vmem:[%s6966_s1 + $0x70] ss:$8 sps:$4 sm:$0xff]   ;;  %vm608_vm2 = vcmask 1046528  }
   0xc   : > { %p325_p3 = scmp.lt.s32.totalorder %s4097_s11, 95  ;;  %v4693_v2 = vld [vmem:[%s6966_s1 + $0x64] ss:$8 sps:$4 sm:$0xff]   ;;  %1367 = vmatprep.subr.bf16.mxu0 %v4690_v0  ;;  %v4696_v3 = vld [vmem:[%s6966_s1 + $0x174] ss:$8 sps:$4 sm:$0xff]   ;;  %s4982_s13 = smov 96  }
   0xd   : > { %1368 = vmatpush1.bf16.msra.mxu0 %v4692_v1  ;;  %v4695_v4 = vld [vmem:[%s6966_s1 + $0x60] ss:$8 sps:$4 sm:$0xff]   ;;  %v4701_v5 = vld [vmem:[%s6966_s1 + $0x170] ss:$8 sps:$4 sm:$0xff]   ;;  %vm448_vm0 = vsmask.f32 7424  ;;  %1560 = vmatprep.subr.bf16.mxu1 %v4696_v3 }
   0xe   : > { %s7081_s11 = smov (!%p325_p3, %s4097_s11), 95  ;;  %1369 = vmatprep.subr.bf16.mxu0 %v4693_v2  ;;  %v4699_v6 = vld [vmem:[%s6966_s1 + $0x54] ss:$8 sps:$4 sm:$0xff]   ;;  %1561 = vmatpush1.bf16.msra.mxu1 %v4701_v5  ;;  %v4702_v7 = vld [vmem:[%s6966_s1 + $0x50] ss:$8 sps:$4 sm:$0xff]   ;;  %s4983_s14 = smov 32  }
   0xf   : > { %s4098_s20 = sshll.u32 %s7081_s11, 2  ;;  %vm672_vm1 = vsmask.f32 6400  ;;  %s4984_s15 = smov 64   ;;  %v4703_v45 = vld [vmem:[%s6966_s1 + $0x164] ss:$8 sps:$4 sm:$0xff]  }
  0x10   : > { %s5077_s27 = scalar_lea.vmem %s6965_s0, %s4098_s20  ;;  %v4705_v46 = vld [vmem:[%s6966_s1 + $0x44] ss:$8 sps:$4 sm:$0xff]   ;;  %v4707_v50 = vld [vmem:[%s6966_s1 + $0x160] ss:$8 sps:$4 sm:$0xff]   ;;  %1562 = vmatprep.subr.bf16.mxu1 %v4703_v45  ;;  %v4709_v55 = vld [vmem:[%s6966_s1 + $0x154] ss:$8 sps:$4 sm:$0xff]  }
  0x11   : > { %v5086_v8 = vld [vmem:[%s5077_s27] sm:$0xff]   ;;  %v5089_v9 = vld [vmem:[%s5077_s27 + $0x8] sm:$0xff]   ;;  %v5092_v10 = vld [vmem:[%s5077_s27 + $0x10] sm:$0xff]   ;;  %1370 = vmatpush1.bf16.msra.mxu0 %v4695_v4  ;;  %vm800_vm3 = vcmask 785408   ;;  %vm768_vm4 = vcmask 1045504   ;;  %vm849_vm5 = vcmask 523264  }
  0x12   : > { %v450_v11 = vshrl.u32 %v5086_v8, 16  ;;  %v452_v12 = vshll.u32 %v5086_v8, 16  ;;  %v457_v13 = vshll.u32 %v5089_v9, 16  ;;  %v461_v14 = vshrl.u32 %v5089_v9, 16  ;;  %1371 = vmatprep.subr.bf16.mxu0 %v4699_v6  ;;  %v5102_v25 = vld [vmem:[%s5077_s27 + $0x18] sm:$0xff]   ;;  %v5114_v39 = vld [vmem:[%s5077_s27 + $0x20] sm:$0xff]   ;;  %1563 = vmatpush1.bf16.msra.mxu1 %v4707_v50 }
  0x13   : > { %v609_v15 = vrot.slane %v5086_v8, 1  ;;  %v610_v16 = vrot.slane %v5089_v9, 1  ;;  %v465_v17 = vshll.u32 %v5092_v10, 16  ;;  %v469_v30 = vshrl.u32 %v5092_v10, 16  ;;  %v4708_v51 = vld [vmem:[%s6966_s1 + $0x40] ss:$8 sps:$4 sm:$0xff]   ;;  %1564 = vmatprep.subr.bf16.mxu1 %v4709_v55 }
  0x14   : > { %v454_v18 = vrot.slane %v452_v12, 1  ;;  %v459_v19 = vrot.slane %v457_v13, 1  ;;  %v673_v20 = vrot.slane %v450_v11, 1  ;;  %v674_v21 = vrot.slane %v452_v12, 2  ;;  %v5140_v56 = vld [vmem:[%s5077_s27 + $0x28] sm:$0xff]   ;;  %v5158_v3 = vld [vmem:[%s5077_s27 + $0x30] sm:$0xff]  }
  0x15   : > { %v676_v22 = vrot.slane %v461_v14, 1  ;;  %v677_v23 = vrot.slane %v457_v13, 2  ;;  %v467_v24 = vrot.slane %v465_v17, 1  ;;  %1372 = vmatpush1.bf16.msra.mxu0 %v4702_v7  ;;  %v681_v31 = vrot.slane %v465_v17, 2  ;;  %v4712_v60 = vld [vmem:[%s6966_s1 + $0x34] ss:$8 sps:$4 sm:$0xff]  }
  0x16   : > { %v455_v26 = vor.u32 %v454_v18, %v450_v11  ;;  %v675_v27 = vor.u32 %v674_v21, %v673_v20  ;;  %v463_v29 = vor.u32 %v461_v14, %v459_v19  ;;  %v680_v34 = vrot.slane %v469_v30, 1  ;;  %1373 = vmatprep.subr.bf16.mxu0 %v4705_v46  ;;  %v4714_v61 = vld [vmem:[%s6966_s1 + $0x150] ss:$8 sps:$4 sm:$0xff]   ;;  %v4716_v4 = vld [vmem:[%s6966_s1 + $0x144] ss:$8 sps:$4 sm:$0xff]   ;;  %s4985_s12 = smov 44  }
  0x17   : > { %v678_v28 = vor.u32 %v677_v23, %v676_v22  ;;  %v473_v35 = vshll.u32 %v5102_v25, 16  ;;  %v477_v36 = vshrl.u32 %v5102_v25, 16  ;;  %v611_v37 = vsel %vm608_vm2, %v609_v15, %v610_v16  ;;  %v4715_v2 = vld [vmem:[%s6966_s1 + $0x30] ss:$8 sps:$4 sm:$0xff]   ;;  %1565 = vmatpush1.bf16.msra.mxu1 %v4714_v61  ;;  %v4718_v6 = vld [vmem:[%s6966_s1 + $0x24] ss:$8 sps:$4 sm:$0xff]  }
  0x18   : > { %v460_v32 = vsel %vm448_vm0, %v455_v26, %v459_v19  ;;  %v612_v38 = vrot.slane %v5092_v10, 1  ;;  %v468_v40 = vsel %vm448_vm0, %v463_v29, %v467_v24  ;;  %v682_v41 = vor.u32 %v681_v31, %v680_v34  ;;  %v4720_v7 = vld [vmem:[%s6966_s1 + $0x140] ss:$8 sps:$4 sm:$0xff]   ;;  %1566 = vmatprep.subr.bf16.mxu1 %v4716_v4  ;;  %v5183_v17 = vld [vmem:[%s5077_s27 + $0x38] sm:$0xff]   ;;  %v4731_v31 = vld [vmem:[%s6966_s1 + $0x4] ss:$8 sps:$4 sm:$0xff]  }
  0x19   : > { %576 = vrot.lane.b32.xlu0 %v460_v32, %s4982_s13  ;;  %v679_v33 = vsel %vm672_vm1, %v675_v27, %v678_v28  ;;  %v614_v42 = vrot.slane %v5102_v25, 1  ;;  %v475_v43 = vrot.slane %v473_v35, 1  ;;  %v684_v44 = vrot.slane %v477_v36, 1  ;;  %1374 = vmatpush1.bf16.msra.mxu0 %v4708_v51  ;;  %v4721_v13 = vld [vmem:[%s6966_s1 + $0x20] ss:$8 sps:$4 sm:$0xff]   ;;  %s4989_s16 = smov 80  }
  0x1a   : > { %736 = vrot.lane.b32.xlu1 %v679_v33, %s4983_s14  ;;  %v613_v47 = vsel %vm608_vm2, %v610_v16, %v612_v38  ;;  %v471_v48 = vor.u32 %v469_v30, %v467_v24  ;;  %v685_v49 = vrot.slane %v473_v35, 2  ;;  %v683_v52 = vsel %vm672_vm1, %v678_v28, %v682_v41  ;;  %1375 = vmatprep.subr.bf16.mxu0 %v4712_v60  ;;  %v4722_v16 = vld [vmem:[%s6966_s1 + $0x134] ss:$8 sps:$4 sm:$0xff]   ;;  %v4727_v26 = vld [vmem:[%s6966_s1 + $0x130] ss:$8 sps:$4 sm:$0xff]   ;;  %s4990_s17 = smov 124  }
  0x1b   : > { %v481_v53 = vshll.u32 %v5114_v39, 16  ;;  %v485_v54 = vshrl.u32 %v5114_v39, 16  ;;  %v615_v58 = vsel %vm608_vm2, %v612_v38, %v614_v42  ;;  %v479_v62 = vor.u32 %v477_v36, %v475_v43  ;;  %1567 = vmatpush1.bf16.msra.mxu1 %v4720_v7  ;;  %v4725_v20 = vld [vmem:[%s6966_s1 + $0x14] ss:$8 sps:$4 sm:$0xff]   ;;  %v4728_v27 = vld [vmem:[%s6966_s1 + $0x10] ss:$8 sps:$4 sm:$0xff]  }
  0x1c   : > { %v476_v57 = vsel %vm448_vm0, %v471_v48, %v475_v43  ;;  %v686_v59 = vor.u32 %v685_v49, %v684_v44  ;;  %v489_v5 = vshll.u32 %v5140_v56, 16  ;;  %v616_v11 = vrot.slane %v5114_v39, 1  ;;  %1568 = vmatprep.subr.bf16.mxu1 %v4722_v16  ;;  %v4729_v30 = vld [vmem:[%s6966_s1 + $0x124] ss:$8 sps:$4 sm:$0xff]   ;;  %v4733_v32 = vld [vmem:[%s6966_s1 + $0x120] ss:$8 sps:$4 sm:$0xff]  }
  0x1d   : > { %640 = vrot.lane.b32.xlu0 %v611_v37, %s4984_s15  ;;  %v483_v63 = vrot.slane %v481_v53, 1  ;;  %v688_v0 = vrot.slane %v485_v54, 1  ;;  %v689_v1 = vrot.slane %v481_v53, 2  ;;  %1376 = vmatpush1.bf16.msra.mxu0 %v4715_v2  ;;  %v493_v12 = vshrl.u32 %v5140_v56, 16  ;;  %v4734_v37 = vld [vmem:[%s6966_s1] ss:$8 sps:$4 sm:$0xff]  }
  0x1e   : > { %578 = vrot.lane.b32.xlu1 %v468_v40, %s4982_s13  ;;  %v687_v10 = vsel %vm672_vm1, %v682_v41, %v686_v59  ;;  %1377 = vmatprep.subr.bf16.mxu0 %v4718_v6  ;;  %v491_v18 = vrot.slane %v489_v5, 1  ;;  %v693_v19 = vrot.slane %v489_v5, 2  ;;  %v617_v21 = vsel %vm608_vm2, %v614_v42, %v616_v11  ;;  %v4735_v42 = vld [vmem:[%s6966_s1 + $0x114] ss:$8 sps:$4 sm:$0xff]   ;;  %v5226_v44 = vld [vmem:[%s5077_s27 + $0x40] sm:$0xff]   ;;  %v5272_v6 = vld [vmem:[%s5077_s27 + $0x48] sm:$0xff]  }
  0x1f   : > { %v484_v14 = vsel %vm448_vm0, %v479_v62, %v483_v63  ;;  %v690_v15 = vor.u32 %v689_v1, %v688_v0  ;;  %v487_v22 = vor.u32 %v485_v54, %v483_v63  ;;  %v692_v23 = vrot.slane %v493_v12, 1  ;;  %1569 = vmatpush1.bf16.msra.mxu1 %v4727_v26  ;;  %v4738_v45 = vld [vmem:[%s6966_s1 + $0xf4] ss:$8 sps:$4 sm:$0xff]   ;;  %v4740_v46 = vld [vmem:[%s6966_s1 + $0x110] ss:$8 sps:$4 sm:$0xff]   ;;  %s4991_s20 = smov 48  }
  0x20   : > { %v497_v24 = vshll.u32 %v5158_v3, 16  ;;  %v618_v29 = vrot.slane %v5140_v56, 1  ;;  %v501_v25 = vshrl.u32 %v5158_v3, 16  ;;  %v505_v36 = vshll.u32 %v5183_v17, 16  ;;  %1570 = vmatprep.subr.bf16.mxu1 %v4729_v30  ;;  %v4741_v49 = vld [vmem:[%s6966_s1 + $0xf0] ss:$8 sps:$4 sm:$0xff]  }
  0x21   : > { %642 = vrot.lane.b32.xlu0 %v613_v47, %s4984_s15  ;;  %1378 = vmatpush1.bf16.msra.mxu0 %v4721_v13  ;;  %v691_v28 = vsel %vm672_vm1, %v686_v59, %v690_v15  ;;  %v492_v33 = vsel %vm448_vm0, %v487_v22, %v491_v18  ;;  %v694_v34 = vor.u32 %v693_v19, %v692_v23  ;;  %v509_v43 = vshrl.u32 %v5183_v17, 16  ;;  %v4742_v53 = vld [vmem:[%s6966_s1 + $0x104] ss:$8 sps:$4 sm:$0xff]   ;;  %v4748_v63 = vld [vmem:[%s6966_s1 + $0x1d4] ss:$8 sps:$4 sm:$0xff]   ;;  %p330_p4 = scmp.lt.s32.totalorder %s5051_s10, 2 }
  0x22   : > { %738 = vrot.lane.b32.xlu1 %v683_v52, %s4983_s14  ;;  %1379 = vmatprep.subr.bf16.mxu0 %v4725_v20  ;;  %v499_v35 = vrot.slane %v497_v24, 1  ;;  %v619_v38 = vsel %vm608_vm2, %v616_v11, %v618_v29  ;;  %v495_v39 = vor.u32 %v493_v12, %v491_v18  ;;  %v696_v40 = vrot.slane %v501_v25, 1  ;;  %v4744_v56 = vld [vmem:[%s6966_s1 + $0xe4] ss:$8 sps:$4 sm:$0xff]   ;;  %v4751_v4 = vld [vmem:[%s6966_s1 + $0xd4] ss:$8 sps:$4 sm:$0xff]  }
  0x23   : > { %v697_v41 = vrot.slane %v497_v24, 2  ;;  %1571 = vmatpush1.bf16.msra.mxu1 %v4733_v32  ;;  %v695_v47 = vsel %vm672_vm1, %v690_v15, %v694_v34  ;;  %v620_v48 = vrot.slane %v5158_v3, 1  ;;  %v507_v52 = vrot.slane %v505_v36, 1  ;;  %v4753_v7 = vld [vmem:[%s6966_s1 + $0x1d0] ss:$8 sps:$4 sm:$0xff]   ;;  %s7083_s10 = smov (!%p330_p4, %s5051_s10), 2 }
  0x24   : > { %1572 = vmatprep.subr.bf16.mxu1 %v4735_v42  ;;  %v500_v50 = vsel %vm448_vm0, %v495_v39, %v499_v35  ;;  %v769_v54 = vrot.slane %v5086_v8, 2  ;;  %v622_v55 = vrot.slane %v5183_v17, 1  ;;  %v701_v59 = vrot.slane %v505_v36, 2  ;;  %v4747_v8 = vld [vmem:[%s6966_s1 + $0xe0] ss:$8 sps:$4 sm:$0xff]  }
  0x25   : > { %580 = vrot.lane.b32.xlu0 %v476_v57, %s4982_s13  ;;  %1380 = vmatpush1.bf16.msra.mxu0 %v4728_v27  ;;  %v698_v51 = vor.u32 %v697_v41, %v696_v40  ;;  %v4746_v57 = vld [vmem:[%s6966_s1 + $0x100] ss:$8 sps:$4 sm:$0xff]   ;;  %v770_v60 = vrot.slane %v5089_v9, 2  ;;  %v621_v61 = vsel %vm608_vm2, %v618_v29, %v620_v48  ;;  %v503_v62 = vor.u32 %v501_v25, %v499_v35  ;;  %v4757_v20 = vld [vmem:[%s6966_s1 + $0xc4] ss:$8 sps:$4 sm:$0xff]  }
  0x26   : > { %644 = vrot.lane.b32.xlu1 %v615_v58, %s4984_s15  ;;  %1381 = vmatprep.subr.bf16.mxu0 %v4731_v31  ;;  %v700_v58 = vrot.slane %v509_v43, 1  ;;  %v513_v1 = vshll.u32 %v5226_v44, 16  ;;  %v517_v2 = vshrl.u32 %v5226_v44, 16  ;;  %v623_v12 = vsel %vm608_vm2, %v620_v48, %v622_v55  ;;  %v4759_v22 = vld [vmem:[%s6966_s1 + $0x1c0] ss:$8 sps:$4 sm:$0xff]  }
  0x27   : > { %1573 = vmatpush1.bf16.msra.mxu1 %v4740_v46  ;;  %v699_v0 = vsel %vm672_vm1, %v694_v34, %v698_v51  ;;  %v771_v5 = vsel %vm768_vm4, %v769_v54, %v770_v60  ;;  %v508_v11 = vsel %vm448_vm0, %v503_v62, %v507_v52  ;;  %v511_v15 = vor.u32 %v509_v43, %v507_v52  ;;  %v4760_v24 = vld [vmem:[%s6966_s1 + $0xc0] ss:$8 sps:$4 sm:$0xff]   ;;  %v4761_v29 = vld [vmem:[%s6966_s1 + $0x1b4] ss:$8 sps:$4 sm:$0xff]   ;;  %v4766_v32 = vld [vmem:[%s6966_s1 + $0x1b0] ss:$8 sps:$4 sm:$0xff]  }
  0x28   : > { %1574 = vmatprep.subr.bf16.mxu1 %v4742_v53  ;;  %4177 = vmatprep.mubr.msk.bf16.mxu1 %vm800_vm3, %v771_v5  ;;  %v702_v13 = vor.u32 %v701_v59, %v700_v58  ;;  %v515_v16 = vrot.slane %v513_v1, 1  ;;  %v704_v18 = vrot.slane %v517_v2, 1  ;;  %v705_v19 = vrot.slane %v513_v1, 2  ;;  %v4764_v31 = vld [vmem:[%s6966_s1 + $0xb4] ss:$8 sps:$4 sm:$0xff]  }
  0x29   : > { %740 = vrot.lane.b32.xlu0 %v687_v10, %s4983_s14  ;;  %1382 = vmatpush1.bf16.msra.mxu0 %v4734_v37  ;;  %v4754_v10 = vld [vmem:[%s6966_s1 + $0xd0] ss:$8 sps:$4 sm:$0xff]   ;;  %v525_v23 = vshrl.u32 %v5272_v6, 16  ;;  %v624_v27 = vrot.slane %v5226_v44, 1  ;;  %v626_v34 = vrot.slane %v5272_v6, 1  ;;  %vm898_vm6 = vcmask 261120  }
  0x2a   : > { %582 = vrot.lane.b32.xlu1 %v484_v14, %s4982_s13  ;;  %1383 = vmatprep.subr.bf16.mxu0 %v4738_v45  ;;  %v4755_v14 = vld [vmem:[%s6966_s1 + $0x1c4] ss:$8 sps:$4 sm:$0xff]   ;;  %v703_v26 = vsel %vm672_vm1, %v698_v51, %v702_v13  ;;  %v516_v25 = vsel %vm448_vm0, %v511_v15, %v515_v16  ;;  %v706_v30 = vor.u32 %v705_v19, %v704_v18  ;;  %v4767_v37 = vld [vmem:[%s6966_s1 + $0xb0] ss:$8 sps:$4 sm:$0xff]   ;;  %v4772_v46 = vld [vmem:[%s6966_s1 + $0x1a0] ss:$8 sps:$4 sm:$0xff]  }
  0x2b   : > { %1575 = vmatpush1.bf16.msra.mxu1 %v4746_v57  ;;  %v708_v35 = vrot.slane %v525_v23, 1  ;;  %v519_v39 = vor.u32 %v517_v2, %v515_v16  ;;  %v4768_v42 = vld [vmem:[%s6966_s1 + $0x1a4] ss:$8 sps:$4 sm:$0xff]   ;;  %v4773_v48 = vld [vmem:[%s6966_s1 + $0xa0] ss:$8 sps:$4 sm:$0xff]   ;;  %v627_v53 = vsel %vm608_vm2, %v624_v27, %v626_v34  ;;  %vm2359_vm7 = vcmask 1006592  }
  0x2c   : > { %1580 = vmatprep.subr.bf16.mxu1 %v4748_v63  ;;  %v707_v43 = vsel %vm672_vm1, %v702_v13, %v706_v30  ;;  %v4770_v45 = vld [vmem:[%s6966_s1 + $0xa4] ss:$8 sps:$4 sm:$0xff]   ;;  %v4774_v52 = vld [vmem:[%s6966_s1 + $0x194] ss:$8 sps:$4 sm:$0xff]   ;;  %v4779_v58 = vld [vmem:[%s6966_s1 + $0x190] ss:$8 sps:$4 sm:$0xff]  }
  0x2d   : > { %646 = vrot.lane.b32.xlu0 %v617_v21, %s4984_s15  ;;  %1384 = vmatpush2.bf16.msra.mxu0 %v4741_v49  ;;  %v521_v21 = vshll.u32 %v5272_v6, 16  ;;  %v4777_v57 = vld [vmem:[%s6966_s1 + $0x94] ss:$8 sps:$4 sm:$0xff]   ;;  %v4780_v59 = vld [vmem:[%s6966_s1 + $0x90] ss:$8 sps:$4 sm:$0xff]   ;;  %v5368_v63 = vld [vmem:[%s5077_s27 + $0x60] sm:$0xff]  }
  0x2e   : > { %742 = vrot.lane.b32.xlu1 %v691_v28, %s4983_s14  ;;  %1385 = vmatprep.subr.bf16.mxu0 %v4744_v56  ;;  %v5306_v28 = vld [vmem:[%s5077_s27 + $0x50] sm:$0xff]   ;;  %v545_v19 = vshll.u32 %v5368_v63, 16  ;;  %vm2009_vm8 = vcmask 359424   ;;  %vm2381_vm9 = vcmask 1044480   ;;  %vm3081_vm10 = vcmask 1041408  }
  0x2f   : > { %1581 = vmatpush2.bf16.msra.mxu1 %v4753_v7  ;;  %v709_v36 = vrot.slane %v521_v21, 2  ;;  %v529_v40 = vshll.u32 %v5306_v28, 16  ;;  %v533_v41 = vshrl.u32 %v5306_v28, 16  ;;  %vm3066_vm11 = vcmask 293888  }
  0x30   : > { %1582 = vmatprep.subr.bf16.mxu1 %v4755_v14  ;;  %vm2677_vm12 = vcmask 326656   ;;  %vm2692_vm13 = vcmask 1014784   ;;  %vm2714_vm14 = vcmask 654336   ;;  %vm2655_vm15 = vcmask 687104  }
  0x31   : > { %584 = vrot.lane.b32.xlu0 %v492_v33, %s4982_s13  ;;  %1386 = vmatpush2.bf16.msra.mxu0 %v4747_v8  ;;  %v523_v33 = vrot.slane %v521_v21, 1  ;;  %v531_v51 = vrot.slane %v529_v40, 1  ;;  %v713_v56 = vrot.slane %v529_v40, 2  ;;  %v4781_v8 = vld [vmem:[%s6966_s1 + $0x184] ss:$8 sps:$4 sm:$0xff]  }
  0x32   : > { %648 = vrot.lane.b32.xlu1 %v619_v38, %s4984_s15  ;;  %1387 = vmatprep.subr.bf16.mxu0 %v4751_v4  ;;  %v625_v38 = vsel %vm608_vm2, %v622_v55, %v624_v27  ;;  %v712_v55 = vrot.slane %v533_v41, 1  ;;  %v4785_v4 = vld [vmem:[%s6966_s1 + $0x180] ss:$8 sps:$4 sm:$0xff]   ;;  %v547_v27 = vrot.slane %v545_v19, 1 }
  0x33   : > { %1583 = vmatpush2.bf16.msra.mxu1 %v4759_v22  ;;  %v524_v49 = vsel %vm448_vm0, %v519_v39, %v523_v33  ;;  %v527_v54 = vor.u32 %v525_v23, %v523_v33  ;;  %v535_v13 = vor.u32 %v533_v41, %v531_v51  ;;  %v5391_v21 = vld [vmem:[%s5077_s27 + $0x68] sm:$0xff]   ;;  %v632_v33 = vrot.slane %v5368_v63, 1 }
  0x34   : > { %1584 = vmatprep.subr.bf16.mxu1 %v4761_v29  ;;  %v714_v7 = vor.u32 %v713_v56, %v712_v55 }
  0x35   : > { %744 = vrot.lane.b32.xlu0 %v695_v47, %s4983_s14  ;;  %1388 = vmatpush2.bf16.msra.mxu0 %v4754_v10  ;;  %v5341_v47 = vld [vmem:[%s5077_s27 + $0x58] sm:$0xff]   ;;  %v532_v5 = vsel %vm448_vm0, %v527_v54, %v531_v51  ;;  %v4786_v10 = vld [vmem:[%s6966_s1 + $0x80] ss:$8 sps:$4 sm:$0xff]  }
  0x36   : > { %586 = vrot.lane.b32.xlu1 %v500_v50, %s4982_s13  ;;  %1389 = vmatprep.subr.bf16.mxu0 %v4757_v20  ;;  %v710_v50 = vor.u32 %v709_v36, %v708_v35  ;;  %v537_v62 = vshll.u32 %v5341_v47, 16  ;;  %v541_v2 = vshrl.u32 %v5341_v47, 16  ;;  %v630_v14 = vrot.slane %v5341_v47, 1 }
  0x37   : > { %1585 = vmatpush2.bf16.msra.mxu1 %v4766_v32  ;;  %v549_v20 = vshrl.u32 %v5368_v63, 16 }
  0x38   : > { %1586 = vmatprep.subr.bf16.mxu1 %v4768_v42  ;;  %v711_v1 = vsel %vm672_vm1, %v706_v30, %v710_v50  ;;  %v716_v15 = vrot.slane %v541_v2, 1  ;;  %v717_v16 = vrot.slane %v537_v62, 2  ;;  %v715_v18 = vsel %vm672_vm1, %v710_v50, %v714_v7  ;;  %v5398_v30 = vld [vmem:[%s5077_s27 + $0x70] sm:$0xff]  }
  0x39   : > { %650 = vrot.lane.b32.xlu0 %v621_v61, %s4984_s15  ;;  %1390 = vmatpush2.bf16.msra.mxu0 %v4760_v24  ;;  %v628_v61 = vrot.slane %v5306_v28, 1  ;;  %v720_v29 = vrot.slane %v549_v20, 1  ;;  %v633_v40 = vsel %vm608_vm2, %v630_v14, %v632_v33  ;;  %v561_v42 = vshll.u32 %v5398_v30, 16 }
  0x3a   : > { %746 = vrot.lane.b32.xlu1 %v699_v0, %s4983_s14  ;;  %1391 = vmatprep.subr.bf16.mxu0 %v4764_v31  ;;  %v4783_v0 = vld [vmem:[%s6966_s1 + $0x84] ss:$8 sps:$4 sm:$0xff]   ;;  %v718_v24 = vor.u32 %v717_v16, %v716_v15  ;;  %v553_v31 = vshll.u32 %v5391_v21, 16  ;;  %v636_v56 = vrot.slane %v5398_v30, 1  ;;  %v4966_v16 = vld [vmem:[%s5077_s27 + $0x10] sm:$0xff]  }
  0x3b   : > { %1587 = vmatpush2.bf16.msra.mxu1 %v4772_v46  ;;  %v631_v23 = vsel %vm608_vm2, %v628_v61, %v630_v14  ;;  %v634_v46 = vrot.slane %v5391_v21, 1  ;;  %v563_v51 = vrot.slane %v561_v42, 1 }
  0x3c   : > { %1588 = vmatprep.subr.bf16.mxu1 %v4774_v52  ;;  %v719_v32 = vsel %vm672_vm1, %v714_v7, %v718_v24  ;;  %v725_v39 = vrot.slane %v553_v31, 2 }
  0x3d   : > { %588 = vrot.lane.b32.xlu0 %v508_v11, %s4982_s13  ;;  %1392 = vmatpush2.bf16.msra.mxu0 %v4767_v37  ;;  %v629_v11 = vsel %vm608_vm2, %v626_v34, %v628_v61  ;;  %v557_v34 = vshrl.u32 %v5391_v21, 16  ;;  %v551_v37 = vor.u32 %v549_v20, %v547_v27  ;;  %v635_v54 = vsel %vm608_vm2, %v632_v33, %v634_v46 }
  0x3e   : > { %652 = vrot.lane.b32.xlu1 %v623_v12, %s4984_s15  ;;  %1393 = vmatprep.subr.bf16.mxu0 %v4770_v45  ;;  %v539_v12 = vrot.slane %v537_v62, 1  ;;  %v637_v62 = vsel %vm608_vm2, %v634_v46, %v636_v56 }
  0x3f   : > { %1589 = vmatpush2.bf16.msra.mxu1 %v4779_v58  ;;  %v724_v41 = vrot.slane %v557_v34, 1 }
  0x40   : > { %1590 = vmatprep.subr.bf16.mxu1 %v4781_v8  ;;  %v540_v22 = vsel %vm448_vm0, %v535_v13, %v539_v12 }
  0x41   : > { %748 = vrot.lane.b32.xlu0 %v703_v26, %s4983_s14  ;;  %1394 = vmatpush2.bf16.msra.mxu0 %v4773_v48  ;;  %v543_v26 = vor.u32 %v541_v2, %v539_v12  ;;  %v5415_v48 = vld [vmem:[%s5077_s27 + $0x78] sm:$0xff]   ;;  %v726_v50 = vor.u32 %v725_v39, %v724_v41  ;;  %v4970_v41 = vld [vmem:[%s5077_s27 + $0x20] sm:$0xff]  }
  0x42   : > { %590 = vrot.lane.b32.xlu1 %v516_v25, %s4982_s13  ;;  %1395 = vmatprep.subr.bf16.mxu0 %v4777_v57  ;;  %v721_v25 = vrot.slane %v545_v19, 2  ;;  %v569_v58 = vshll.u32 %v5415_v48, 16  ;;  %v638_v7 = vrot.slane %v5415_v48, 1 }
  0x43   : > { %1591 = vmatpush2.bf16.msra.mxu1 %v4785_v4  ;;  %v548_v35 = vsel %vm448_vm0, %v543_v26, %v547_v27  ;;  %v4967_v27 = vld [vmem:[%s5077_s27] sm:$0xff]  }
  0x44   : > { %v722_v36 = vor.u32 %v721_v25, %v720_v29  ;;  %v733_v4 = vrot.slane %v569_v58, 2  ;;  %v639_v12 = vsel %vm608_vm2, %v636_v56, %v638_v7 }
  0x45   : > { %654 = vrot.lane.b32.xlu0 %v625_v38, %s4984_s15  ;;  %1396 = vmatpush2.bf16.msra.mxu0 %v4780_v59  ;;  %v555_v38 = vrot.slane %v553_v31, 1  ;;  %v573_v59 = vshrl.u32 %v5415_v48, 16  ;;  %v4968_v31 = vld [vmem:[%s5077_s27 + $0x18] sm:$0xff]  }
  0x46   : > { %750 = vrot.lane.b32.xlu1 %v707_v43, %s4983_s14  ;;  %1397 = vmatprep.subr.bf16.mxu0 %v4783_v0  ;;  %v565_v43 = vshrl.u32 %v5398_v30, 16  ;;  %v723_v45 = vsel %vm672_vm1, %v718_v24, %v722_v36  ;;  %v727_v57 = vsel %vm672_vm1, %v722_v36, %v726_v50 }
  0x47   : > { %v559_v55 = vor.u32 %v557_v34, %v555_v38  ;;  %v732_v2 = vrot.slane %v573_v59, 1 }
  0x48   : > { %v728_v52 = vrot.slane %v565_v43, 1  ;;  %v567_v0 = vor.u32 %v565_v43, %v563_v51 }
  0x49   : > { %592 = vrot.lane.b32.xlu0 %v524_v49, %s4982_s13  ;;  %1398 = vmatpush2.bf16.msra.mxu0 %v4786_v10  ;;  %v556_v49 = vsel %vm448_vm0, %v551_v37, %v555_v38  ;;  %v564_v8 = vsel %vm448_vm0, %v559_v55, %v563_v51  ;;  %v4969_v37 = vld [vmem:[%s5077_s27 + $0x8] sm:$0xff]  }
  0x4a   : > { %656 = vrot.lane.b32.xlu1 %v627_v53, %s4984_s15  ;;  %v729_v53 = vrot.slane %v561_v42, 2  ;;  %v776_v42 = vrot.slane %v4970_v41, 2 }
  0x4c   : > { %v730_v61 = vor.u32 %v729_v53, %v728_v52 }
  0x4d   : > { %752 = vrot.lane.b32.xlu0 %v711_v1, %s4983_s14  ;;  %v571_v1 = vrot.slane %v569_v58, 1 }
  0x4e   : > { %594 = vrot.lane.b32.xlu1 %v532_v5, %s4982_s13  ;;  %v731_v5 = vsel %vm672_vm1, %v726_v50, %v730_v61 }
  0x4f   : > { %v572_v10 = vsel %vm448_vm0, %v567_v0, %v571_v1  ;;  %v575_v14 = vor.u32 %v573_v59, %v571_v1  ;;  %v780_v0 = vrot.slane %v5158_v3, 2 }
  0x51   : > { %658 = vrot.lane.b32.xlu0 %v629_v11, %s4984_s15  ;;  %v734_v11 = vor.u32 %v733_v4, %v732_v2 }
  0x52   : > { %754 = vrot.lane.b32.xlu1 %v715_v18, %s4983_s14  ;;  %v772_v18 = vrot.slane %v4966_v16, 2 }
  0x53   : > { %v735_v13 = vsel %vm672_vm1, %v730_v61, %v734_v11 }
  0x55   : > { %596 = vrot.lane.b32.xlu0 %v540_v22, %s4982_s13  ;;  %v773_v22 = vsel %vm768_vm4, %v770_v60, %v772_v18 }
  0x56   : > { %660 = vrot.lane.b32.xlu1 %v631_v23, %s4984_s15 }
  0x59   : > { %756 = vrot.lane.b32.xlu0 %v719_v32, %s4983_s14  ;;  %v774_v32 = vrot.slane %v4968_v31, 2 }
  0x5a   : > { %598 = vrot.lane.b32.xlu1 %v548_v35, %s4982_s13 }
  0x5b   : > { %v775_v35 = vsel %vm768_vm4, %v772_v18, %v774_v32 }
  0x5d   : > { %662 = vrot.lane.b32.xlu0 %v633_v40, %s4984_s15 }
  0x5e   : > { %758 = vrot.lane.b32.xlu1 %v723_v45, %s4983_s14 }
  0x61   : > { %600 = vrot.lane.b32.xlu0 %v556_v49, %s4982_s13  ;;  %v777_v49 = vsel %vm768_vm4, %v774_v32, %v776_v42 }
  0x62   : > { %664 = vrot.lane.b32.xlu1 %v635_v54, %s4984_s15  ;;  %v4971_v54 = vld [vmem:[%s5077_s27 + $0x28] sm:$0xff]  }
  0x63   : > { %v778_v55 = vrot.slane %v4971_v54, 2 }
  0x65   : > { %760 = vrot.lane.b32.xlu0 %v727_v57, %s4983_s14  ;;  %v779_v58 = vsel %vm768_vm4, %v776_v42, %v778_v55  ;;  %v781_v4 = vsel %vm768_vm4, %v778_v55, %v780_v0 }
  0x66   : > { %602 = vrot.lane.b32.xlu1 %v564_v8, %s4982_s13 }
  0x69   : > { %666 = vrot.lane.b32.xlu0 %v637_v62, %s4984_s15 }
  0x6a   : > { %762 = vrot.lane.b32.xlu1 %v731_v5, %s4983_s14 }
  0x6d   : > { %604 = vrot.lane.b32.xlu0 %v572_v10, %s4982_s13 }
  0x6e   : > { %668 = vrot.lane.b32.xlu1 %v639_v12, %s4984_s15  ;;  %v782_v12 = vrot.slane %v5183_v17, 2 }
  0x71   : > { %764 = vrot.lane.b32.xlu0 %v735_v13, %s4983_s14 }
  0x72   : > { %606 = vrot.lane.b32.xlu1 %v575_v14, %s4982_s13  ;;  %v783_v14 = vsel %vm768_vm4, %v780_v0, %v782_v12  ;;  %v794_v0 = vrot.slane %v5391_v21, 2  ;;  %s4987_s13 = smov 40  }
  0x75   : > { %670 = vrot.lane.b32.xlu0 %v638_v7, %s4984_s15 }
  0x76   : > { %766 = vrot.lane.b32.xlu1 %v734_v11, %s4983_s14 }
  0x8b   : > { %v577_v15 = vpop.permute.xlu0 %576 }
  0x8c   : > { %v737_v19 = vpop.permute.xlu1 %736  ;;  %v802_v29 = vsel %vm800_vm3, %v4967_v27, %v577_v15 }
  0x8f   : > { %v641_v20 = vpop.permute.xlu0 %640 }
  0x90   : > { %v851_v23 = vsel %vm849_vm5, %v577_v15, %v641_v20  ;;  %v900_v24 = vsel %vm898_vm6, %v641_v20, %v737_v19  ;;  %v579_v26 = vpop.permute.xlu1 %578  ;;  %v784_v20 = vrot.slane %v5226_v44, 2 }
  0x91   : > { %1399 = vmatprep.mubr.bf16.mxu0 %v851_v23  ;;  %1593 = vmatmul.mubr.bf16.vlgmr.msra.gmra.mxu1 %v900_v24  ;;  %v805_v38 = vsel %vm800_vm3, %v4969_v37, %v579_v26 }
  0x92   : > { %1400 = vmatmul.mubr.bf16.vlgmr.msra.gmra.mxu0 %v802_v29  ;;  %4178 = vmatprep.mubr.msk.bf16.mxu1 %vm800_vm3, %v773_v22  ;;  %v785_v23 = vsel %vm768_vm4, %v782_v12, %v784_v20 }
  0x93   : > { %v643_v25 = vpop.permute.xlu0 %642 }
  0x94   : > { %v739_v9 = vpop.permute.xlu1 %738  ;;  %v854_v60 = vsel %vm849_vm5, %v579_v26, %v643_v25  ;;  %v4972_v26 = vld [vmem:[%s5077_s27 + $0x30] sm:$0xff]  }
  0x95   : > { %1409 = vmatprep.mubr.bf16.mxu0 %v854_v60  ;;  %v903_v33 = vsel %vm898_vm6, %v643_v25, %v739_v9 }
  0x97   : > { %v581_v34 = vpop.permute.xlu0 %580 }
  0x98   : > { %v645_v36 = vpop.permute.xlu1 %644  ;;  %v808_v51 = vsel %vm800_vm3, %v4966_v16, %v581_v34 }
  0x99   : > { %1603 = vmatmul.mubr.bf16.gmra.mxu1 %v903_v33  ;;  %v857_v39 = vsel %vm849_vm5, %v581_v34, %v645_v36  ;;  %v4973_v34 = vld [vmem:[%s5077_s27 + $0x38] sm:$0xff]  }
  0x9a   : > { %1410 = vmatmul.mubr.bf16.gmra.mxu0 %v805_v38  ;;  %4179 = vmatprep.mubr.msk.bf16.mxu1 %vm800_vm3, %v775_v35  ;;  %v788_v38 = vrot.slane %v5306_v28, 2 }
  0x9b   : > { %v741_v40 = vpop.permute.xlu0 %740  ;;  %1419 = vmatprep.mubr.bf16.mxu0 %v857_v39 }
  0x9c   : > { %v583_v43 = vpop.permute.xlu1 %582  ;;  %v906_v45 = vsel %vm898_vm6, %v645_v36, %v741_v40 }
  0x9d   : > { %v811_v8 = vsel %vm800_vm3, %v4968_v31, %v583_v43  ;;  %v786_v31 = vrot.slane %v5272_v6, 2 }
  0x9f   : > { %v647_v46 = vpop.permute.xlu0 %646  ;;  %v787_v60 = vsel %vm768_vm4, %v784_v20, %v786_v31 }
  0xa0   : > { %v860_v50 = vsel %vm849_vm5, %v583_v43, %v647_v46  ;;  %v743_v52 = vpop.permute.xlu1 %742 }
  0xa1   : > { %1613 = vmatmul.mubr.bf16.gmra.mxu1 %v906_v45  ;;  %v909_v57 = vsel %vm898_vm6, %v647_v46, %v743_v52 }
  0xa2   : > { %1420 = vmatmul.mubr.bf16.gmra.mxu0 %v808_v51  ;;  %4180 = vmatprep.mubr.msk.bf16.mxu1 %vm800_vm3, %v777_v49  ;;  %v790_v49 = vrot.slane %v5341_v47, 2 }
  0xa3   : > { %1429 = vmatprep.mubr.bf16.mxu0 %v860_v50  ;;  %v585_v53 = vpop.permute.xlu0 %584 }
  0xa4   : > { %v649_v56 = vpop.permute.xlu1 %648  ;;  %v814_v7 = vsel %vm800_vm3, %v4970_v41, %v585_v53  ;;  %v789_v41 = vsel %vm768_vm4, %v786_v31, %v788_v38  ;;  %v791_v52 = vsel %vm768_vm4, %v788_v38, %v790_v49 }
  0xa5   : > { %v863_v59 = vsel %vm849_vm5, %v585_v53, %v649_v56 }
  0xa7   : > { %v745_v61 = vpop.permute.xlu0 %744 }
  0xa8   : > { %v587_v62 = vpop.permute.xlu1 %586  ;;  %v912_v2 = vsel %vm898_vm6, %v649_v56, %v745_v61  ;;  %v792_v56 = vrot.slane %v5368_v63, 2 }
  0xa9   : > { %1623 = vmatmul.mubr.bf16.gmra.mxu1 %v909_v57  ;;  %v817_v16 = vsel %vm800_vm3, %v4971_v54, %v587_v62 }
  0xaa   : > { %1430 = vmatmul.mubr.bf16.gmra.mxu0 %v811_v8  ;;  %4181 = vmatprep.mubr.msk.bf16.mxu1 %vm800_vm3, %v779_v58 }
  0xab   : > { %1439 = vmatprep.mubr.bf16.mxu0 %v863_v59  ;;  %v651_v1 = vpop.permute.xlu0 %650  ;;  %v793_v59 = vsel %vm768_vm4, %v790_v49, %v792_v56 }
  0xac   : > { %v866_v5 = vsel %vm849_vm5, %v587_v62, %v651_v1  ;;  %v747_v10 = vpop.permute.xlu1 %746 }
  0xad   : > { %v915_v3 = vsel %vm898_vm6, %v651_v1, %v747_v10 }
  0xaf   : > { %v589_v11 = vpop.permute.xlu0 %588 }
  0xb0   : > { %v653_v13 = vpop.permute.xlu1 %652  ;;  %v820_v27 = vsel %vm800_vm3, %v4972_v26, %v589_v11 }
  0xb1   : > { %1633 = vmatmul.mubr.bf16.gmra.mxu1 %v912_v2  ;;  %v869_v15 = vsel %vm849_vm5, %v589_v11, %v653_v13  ;;  %v796_v11 = vrot.slane %v5398_v30, 2 }
  0xb2   : > { %1440 = vmatmul.mubr.bf16.gmra.mxu0 %v814_v7  ;;  %4182 = vmatprep.mubr.msk.bf16.mxu1 %vm800_vm3, %v781_v4  ;;  %v795_v4 = vsel %vm768_vm4, %v792_v56, %v794_v0 }
  0xb3   : > { %1449 = vmatprep.mubr.bf16.mxu0 %v866_v5  ;;  %v749_v18 = vpop.permute.xlu0 %748 }
  0xb4   : > { %v591_v19 = vpop.permute.xlu1 %590  ;;  %v918_v22 = vsel %vm898_vm6, %v653_v13, %v749_v18  ;;  %v798_v18 = vrot.slane %v5415_v48, 2 }
  0xb5   : > { %v823_v35 = vsel %vm800_vm3, %v4973_v34, %v591_v19 }
  0xb7   : > { %v655_v17 = vpop.permute.xlu0 %654 }
  0xb8   : > { %v872_v24 = vsel %vm849_vm5, %v591_v19, %v655_v17  ;;  %v751_v29 = vpop.permute.xlu1 %750 }
  0xb9   : > { %1643 = vmatmul.mubr.bf16.gmra.mxu1 %v915_v3  ;;  %v921_v9 = vsel %vm898_vm6, %v655_v17, %v751_v29  ;;  %v797_v3 = vsel %vm768_vm4, %v794_v0, %v796_v11  ;;  %v799_v17 = vsel %vm768_vm4, %v796_v11, %v798_v18 }
  0xba   : > { %1450 = vmatmul.mubr.bf16.gmra.mxu0 %v817_v16  ;;  %4183 = vmatprep.mubr.msk.bf16.mxu1 %vm800_vm3, %v783_v14 }
  0xbb   : > { %1459 = vmatprep.mubr.bf16.mxu0 %v869_v15  ;;  %v593_v25 = vpop.permute.xlu0 %592 }
  0xbc   : > { %v657_v32 = vpop.permute.xlu1 %656  ;;  %v826_v43 = vsel %vm800_vm3, %v5226_v44, %v593_v25 }
  0xbd   : > { %v875_v33 = vsel %vm849_vm5, %v593_v25, %v657_v32 }
  0xbf   : > { %v753_v36 = vpop.permute.xlu0 %752 }
  0xc0   : > { %v595_v37 = vpop.permute.xlu1 %594  ;;  %v924_v40 = vsel %vm898_vm6, %v657_v32, %v753_v36 }
  0xc1   : > { %1653 = vmatmul.mubr.bf16.gmra.mxu1 %v918_v22  ;;  %v829_v54 = vsel %vm800_vm3, %v5272_v6, %v595_v37 }
  0xc2   : > { %1460 = vmatmul.mubr.bf16.gmra.mxu0 %v820_v27  ;;  %4184 = vmatprep.mubr.msk.bf16.mxu1 %vm800_vm3, %v785_v23 }
  0xc3   : > { %1469 = vmatprep.mubr.bf16.mxu0 %v872_v24  ;;  %v659_v39 = vpop.permute.xlu0 %658 }
  0xc4   : > { %v878_v42 = vsel %vm849_vm5, %v595_v37, %v659_v39  ;;  %v755_v45 = vpop.permute.xlu1 %754 }
  0xc5   : > { %v927_v51 = vsel %vm898_vm6, %v659_v39, %v755_v45 }
  0xc7   : > { %v597_v46 = vpop.permute.xlu0 %596 }
  0xc8   : > { %v661_v50 = vpop.permute.xlu1 %660  ;;  %v832_v61 = vsel %vm800_vm3, %v5306_v28, %v597_v46 }
  0xc9   : > { %1663 = vmatmul.mubr.bf16.gmra.mxu1 %v921_v9  ;;  %v881_v53 = vsel %vm849_vm5, %v597_v46, %v661_v50  ;;  %v1009_v9 = vlaneseq }
  0xca   : > { %1470 = vmatmul.mubr.bf16.gmra.mxu0 %v823_v35  ;;  %4185 = vmatprep.mubr.msk.bf16.mxu1 %vm800_vm3, %v787_v60 }
  0xcb   : > { %1479 = vmatprep.mubr.bf16.mxu0 %v875_v33  ;;  %v757_v44 = vpop.permute.xlu0 %756  ;;  %v1010_v60 = vshrl.u32 %v1009_v9, 7 }
  0xcc   : > { %v599_v55 = vpop.permute.xlu1 %598  ;;  %v930_v58 = vsel %vm898_vm6, %v661_v50, %v757_v44 }
  0xcd   : > { %v835_v7 = vsel %vm800_vm3, %v5341_v47, %v599_v55  ;;  %v5549_v33 = vsub.s32 0, %v1010_v60  ;;  %v5554_v34 = vsub.s32 1, %v1010_v60 }
  0xcf   : > { %v663_v57 = vpop.permute.xlu0 %662  ;;  %7020 = vst [vmem:[#allocation2_spill] sm:$0xff] %v5549_v33  ;;  %7021 = vst [vmem:[#allocation3_spill] sm:$0xff] %v5554_v34 }
  0xd0   : > { %v884_v8 = vsel %vm849_vm5, %v599_v55, %v663_v57  ;;  %v759_v6 = vpop.permute.xlu1 %758 }
  0xd1   : > { %1673 = vmatmul.mubr.bf16.gmra.mxu1 %v924_v40  ;;  %v933_v2 = vsel %vm898_vm6, %v663_v57, %v759_v6 }
  0xd2   : > { %1480 = vmatmul.mubr.bf16.gmra.mxu0 %v826_v43  ;;  %4186 = vmatprep.mubr.msk.bf16.mxu1 %vm800_vm3, %v789_v41 }
  0xd3   : > { %1489 = vmatprep.mubr.bf16.mxu0 %v878_v42  ;;  %v601_v62 = vpop.permute.xlu0 %600 }
  0xd4   : > { %v665_v1 = vpop.permute.xlu1 %664  ;;  %v838_v15 = vsel %vm800_vm3, %v5368_v63, %v601_v62 }
  0xd5   : > { %v887_v5 = vsel %vm849_vm5, %v601_v62, %v665_v1 }
  0xd7   : > { %v761_v28 = vpop.permute.xlu0 %760 }
  0xd8   : > { %v603_v10 = vpop.permute.xlu1 %602  ;;  %v936_v13 = vsel %vm898_vm6, %v665_v1, %v761_v28 }
  0xd9   : > { %1683 = vmatmul.mubr.bf16.gmra.mxu1 %v927_v51  ;;  %v841_v23 = vsel %vm800_vm3, %v5391_v21, %v603_v10 }
  0xda   : > { %1490 = vmatmul.mubr.bf16.gmra.mxu0 %v829_v54  ;;  %4187 = vmatprep.mubr.msk.bf16.mxu1 %vm800_vm3, %v791_v52 }
  0xdb   : > { %1499 = vmatprep.mubr.bf16.mxu0 %v881_v53  ;;  %v667_v12 = vpop.permute.xlu0 %666 }
  0xdc   : > { %v890_v14 = vsel %vm849_vm5, %v603_v10, %v667_v12  ;;  %v763_v47 = vpop.permute.xlu1 %762 }
  0xdd   : > { %v939_v20 = vsel %vm898_vm6, %v667_v12, %v763_v47 }
  0xdf   : > { %v605_v16 = vpop.permute.xlu0 %604 }
  0xe0   : > { %v669_v19 = vpop.permute.xlu1 %668  ;;  %v844_v25 = vsel %vm800_vm3, %v5398_v30, %v605_v16  ;;  %v1007_v30 = vld [vmem:[%s6967_s2] sm:$0x3] }
  0xe1   : > { %1693 = vmatmul.mubr.bf16.gmra.mxu1 %v930_v58  ;;  %v893_v22 = vsel %vm849_vm5, %v605_v16, %v669_v19  ;;  %v5557_v35 = vrot.slane %v1007_v30, %v5549_v33  ;;  %v5560_v37 = vrot.slane %v1007_v30, %v5554_v34 }
  0xe2   : > { %1500 = vmatmul.mubr.bf16.gmra.mxu0 %v832_v61  ;;  %4188 = vmatprep.mubr.msk.bf16.mxu1 %vm800_vm3, %v793_v59 }
  0xe3   : > { %1509 = vmatprep.mubr.bf16.mxu0 %v884_v8  ;;  %v765_v63 = vpop.permute.xlu0 %764 }
  0xe4   : > { %v607_v24 = vpop.permute.xlu1 %606  ;;  %v942_v27 = vsel %vm898_vm6, %v669_v19, %v765_v63 }
  0xe5   : > { %v847_v32 = vsel %vm800_vm3, %v5415_v48, %v607_v24 }
  0xe7   : > { %v671_v26 = vpop.permute.xlu0 %670 }
  0xe8   : > { %v896_v29 = vsel %vm849_vm5, %v607_v24, %v671_v26  ;;  %v767_v31 = vpop.permute.xlu1 %766 }
  0xe9   : > { %1703 = vmatmul.mubr.bf16.gmra.mxu1 %v933_v2  ;;  %v945_v21 = vsel %vm898_vm6, %v671_v26, %v767_v31 }
  0xea   : > { %1510 = vmatmul.mubr.bf16.gmra.mxu0 %v835_v7  ;;  %4189 = vmatprep.mubr.msk.bf16.mxu1 %vm800_vm3, %v795_v4 }
  0xeb   : > { %1519 = vmatprep.mubr.bf16.mxu0 %v887_v5 }
  0xf1   : > { %1713 = vmatmul.mubr.bf16.gmra.mxu1 %v936_v13 }
  0xf2   : > { %1520 = vmatmul.mubr.bf16.gmra.mxu0 %v838_v15  ;;  %4190 = vmatprep.mubr.msk.bf16.mxu1 %vm800_vm3, %v797_v3 }
  0xf3   : > { %1529 = vmatprep.mubr.bf16.mxu0 %v890_v14 }
  0xf9   : > { %1723 = vmatmul.mubr.bf16.gmra.mxu1 %v939_v20 }
  0xfa   : > { %1530 = vmatmul.mubr.bf16.gmra.mxu0 %v841_v23  ;;  %4191 = vmatprep.mubr.msk.bf16.mxu1 %vm800_vm3, %v799_v17 }
  0xfb   : > { %1539 = vmatprep.mubr.bf16.mxu0 %v893_v22 }
 0x101   : > { %1733 = vmatmul.mubr.bf16.gmra.mxu1 %v942_v27 }
 0x102   : > { %1540 = vmatmul.mubr.bf16.gmra.mxu0 %v844_v25  ;;  %4192 = vmatprep.mubr.msk.bf16.mxu1 %vm800_vm3, %v798_v18  ;;  %vm3543_vm3 = vcmask 875520  }
 0x103   : > { %1549 = vmatprep.mubr.bf16.mxu0 %v896_v29 }
 0x109   : > { %1743 = vmatmul.mubr.bf16.gmra.mxu1 %v945_v21 }
 0x10a   : > { %1550 = vmatmul.mubr.bf16.gmra.mxu0 %v847_v32 }
 0x151   : > { %v1594_v36 = vpop.f32.mrf.mxu1 }
 0x152   : > { %v1401_v38 = vpop.f32.mrf.mxu0 }
 0x153   : > { %v1402_v48 = vadd.f32 %v1401_v38, %v5557_v35  ;;  %v1596_v39 = vpop.f32.mrf.mxu1 }
 0x154   : > { %v1403_v40 = vpop.f32.mrf.mxu0 }
 0x155   : > { %v5563_v41 = vadd.f32 %v1594_v36, %v1402_v48  ;;  %v1404_v42 = vadd.f32 %v1403_v40, %v5560_v37  ;;  %v1598_v43 = vpop.f32.mrf.mxu1 }
 0x156   : > { %v1405_v45 = vpop.f32.mrf.mxu0 }
 0x157   : > { %v5566_v46 = vadd.f32 %v1596_v39, %v1404_v42  ;;  %v1406_v49 = vadd.f32 %v1405_v45, %v5557_v35  ;;  %v5569_v50 = vpop.f32.mrf.mxu1 }
 0x158   : > { %v5571_v51 = vpop.f32.mrf.mxu0 }
 0x159   : > { %v5573_v52 = vadd.f32 %v1598_v43, %v1406_v49  ;;  %v1604_v53 = vpop.f32.mrf.mxu1 }
 0x15a   : > { %v1411_v54 = vpop.f32.mrf.mxu0 }
 0x15b   : > { %7022 = vst [vmem:[#allocation4_spill] sm:$0xff] %v5573_v52  ;;  %v1412_v44 = vadd.f32 %v1411_v54, %v5557_v35  ;;  %v1606_v55 = vpop.f32.mrf.mxu1 }
 0x15c   : > { %v1413_v56 = vpop.f32.mrf.mxu0 }
 0x15d   : > { %v5576_v57 = vadd.f32 %v1604_v53, %v1412_v44  ;;  %v1414_v58 = vadd.f32 %v1413_v56, %v5560_v37  ;;  %v1608_v59 = vpop.f32.mrf.mxu1 }
 0x15e   : > { %v1415_v8 = vpop.f32.mrf.mxu0 }
 0x15f   : > { %v5579_v61 = vadd.f32 %v1606_v55, %v1414_v58  ;;  %v1416_v6 = vadd.f32 %v1415_v8, %v5557_v35  ;;  %v5582_v62 = vpop.f32.mrf.mxu1 }
 0x160   : > { %v5584_v0 = vpop.f32.mrf.mxu0 }
 0x161   : > { %v5586_v1 = vadd.f32 %v1608_v59, %v1416_v6  ;;  %v1614_v2 = vpop.f32.mrf.mxu1 }
 0x162   : > { %v1421_v4 = vpop.f32.mrf.mxu0 }
 0x163   : > { %v1422_v5 = vadd.f32 %v1421_v4, %v5557_v35  ;;  %v1616_v7 = vpop.f32.mrf.mxu1 }
 0x164   : > { %v1423_v28 = vpop.f32.mrf.mxu0 }
 0x165   : > { %v5589_v10 = vadd.f32 %v1614_v2, %v1422_v5  ;;  %v1424_v11 = vadd.f32 %v1423_v28, %v5560_v37  ;;  %v1618_v12 = vpop.f32.mrf.mxu1 }
 0x166   : > { %v1425_v13 = vpop.f32.mrf.mxu0 }
 0x167   : > { %v5592_v3 = vadd.f32 %v1616_v7, %v1424_v11  ;;  %v1426_v14 = vadd.f32 %v1425_v13, %v5557_v35  ;;  %v5595_v15 = vpop.f32.mrf.mxu1 }
 0x168   : > { %v5597_v47 = vpop.f32.mrf.mxu0 }
 0x169   : > { %v5599_v16 = vadd.f32 %v1618_v12, %v1426_v14  ;;  %v1624_v18 = vpop.f32.mrf.mxu1 }
 0x16a   : > { %v1431_v19 = vpop.f32.mrf.mxu0 }
 0x16b   : > { %v1432_v20 = vadd.f32 %v1431_v19, %v5557_v35  ;;  %v1626_v17 = vpop.f32.mrf.mxu1 }
 0x16c   : > { %v1433_v22 = vpop.f32.mrf.mxu0 }
 0x16d   : > { %v5602_v23 = vadd.f32 %v1624_v18, %v1432_v20  ;;  %v1434_v63 = vadd.f32 %v1433_v22, %v5560_v37  ;;  %v1628_v24 = vpop.f32.mrf.mxu1 }
 0x16e   : > { %v1435_v26 = vpop.f32.mrf.mxu0 }
 0x16f   : > { %v5605_v27 = vadd.f32 %v1626_v17, %v1434_v63  ;;  %v1436_v29 = vadd.f32 %v1435_v26, %v5557_v35  ;;  %v1630_v25 = vpop.f32.mrf.mxu1 }
 0x170   : > { %v1437_v31 = vpop.f32.mrf.mxu0 }
 0x171   : > { %v5608_v21 = vadd.f32 %v1628_v24, %v1436_v29  ;;  %v1438_v32 = vadd.f32 %v1437_v31, %v5560_v37  ;;  %v1634_v9 = vpop.f32.mrf.mxu1 }
 0x172   : > { %v1441_v60 = vpop.f32.mrf.mxu0 }
 0x173   : > { %v5611_v30 = vadd.f32 %v1630_v25, %v1438_v32  ;;  %v1442_v36 = vadd.f32 %v1441_v60, %v5557_v35  ;;  %v1636_v38 = vpop.f32.mrf.mxu1 }
 0x174   : > { %v1443_v48 = vpop.f32.mrf.mxu0 }
 0x175   : > { %v5614_v39 = vadd.f32 %v1634_v9, %v1442_v36  ;;  %v1444_v40 = vadd.f32 %v1443_v48, %v5560_v37  ;;  %v1638_v42 = vpop.f32.mrf.mxu1 }
 0x176   : > { %v1445_v43 = vpop.f32.mrf.mxu0 }
 0x177   : > { %7023 = vst [vmem:[#allocation5_spill] sm:$0xff] %v5614_v39  ;;  %v1637_v45 = vadd.f32 %v1636_v38, %v1444_v40  ;;  %v1446_v49 = vadd.f32 %v1445_v43, %v5557_v35  ;;  %v1640_v53 = vpop.f32.mrf.mxu1  ;;  %v6975_v44 = vmax.f32 %v5614_v39, 0.0 }
 0x178   : > { %v1447_v54 = vpop.f32.mrf.mxu0 }
 0x179   : > { %v1770_v55 = vmax.f32 %v1637_v45, 0.0  ;;  %v5619_v56 = vadd.f32 %v1638_v42, %v1446_v49  ;;  %v1448_v58 = vadd.f32 %v1447_v54, %v5560_v37  ;;  %v1644_v59 = vpop.f32.mrf.mxu1 }
 0x17a   : > { %v1451_v8 = vpop.f32.mrf.mxu0 }
 0x17b   : > { %v5622_v6 = vadd.f32 %v1640_v53, %v1448_v58  ;;  %v1452_v2 = vadd.f32 %v1451_v8, %v5557_v35  ;;  %v1646_v4 = vpop.f32.mrf.mxu1  ;;  %v4451_v5 = vpack.i.bf16 %v1770_v55, %v6975_v44 }
 0x17c   : > { %v1453_v7 = vpop.f32.mrf.mxu0 }
 0x17d   : > { %v5627_v28 = vadd.f32 %v1644_v59, %v1452_v2  ;;  %v1454_v11 = vadd.f32 %v1453_v7, %v5560_v37  ;;  %4452 = vrot.lane.b32.xlu1 %v4451_v5, %s4985_s12  ;;  %v1648_v12 = vpop.f32.mrf.mxu1 }
 0x17e   : > { %v1455_v13 = vpop.f32.mrf.mxu0 }
 0x17f   : > { %7024 = vst [vmem:[#allocation6_spill] sm:$0xff] %v5627_v28  ;;  %v1647_v14 = vadd.f32 %v1646_v4, %v1454_v11  ;;  %v1456_v18 = vadd.f32 %v1455_v13, %v5557_v35  ;;  %v1650_v19 = vpop.f32.mrf.mxu1  ;;  %v6981_v17 = vmax.f32 %v5627_v28, 0.0 }
 0x180   : > { %v1457_v20 = vpop.f32.mrf.mxu0 }
 0x181   : > { %v1774_v22 = vmax.f32 %v1647_v14, 0.0  ;;  %v5633_v63 = vadd.f32 %v1648_v12, %v1456_v18  ;;  %v1458_v24 = vadd.f32 %v1457_v20, %v5560_v37  ;;  %v1654_v26 = vpop.f32.mrf.mxu1 }
 0x182   : > { %v1461_v29 = vpop.f32.mrf.mxu0 }
 0x183   : > { %7025 = vst [vmem:[#allocation7_spill] sm:$0xff] %v5633_v63  ;;  %v1651_v25 = vadd.f32 %v1650_v19, %v1458_v24  ;;  %v1462_v31 = vadd.f32 %v1461_v29, %v5557_v35  ;;  %v1656_v32 = vpop.f32.mrf.mxu1  ;;  %v4456_v9 = vpack.i.bf16 %v1774_v22, %v6981_v17  ;;  %v6982_v36 = vmax.f32 %v5633_v63, 0.0 }
 0x184   : > { %v1463_v60 = vpop.f32.mrf.mxu0 }
 0x185   : > { %v1776_v38 = vmax.f32 %v1651_v25, 0.0  ;;  %v5640_v48 = vadd.f32 %v1654_v26, %v1462_v31  ;;  %v1464_v40 = vadd.f32 %v1463_v60, %v5560_v37  ;;  %4457 = vrot.lane.b32.xlu1 %v4456_v9, %s4985_s12  ;;  %v1658_v42 = vpop.f32.mrf.mxu1 }
 0x186   : > { %v1465_v43 = vpop.f32.mrf.mxu0 }
 0x187   : > { %7026 = vst [vmem:[#allocation8_spill] sm:$0xff] %v5640_v48  ;;  %v1657_v45 = vadd.f32 %v1656_v32, %v1464_v40  ;;  %v1466_v49 = vadd.f32 %v1465_v43, %v5557_v35  ;;  %v1660_v53 = vpop.f32.mrf.mxu1  ;;  %v4461_v54 = vpack.i.bf16 %v1776_v38, %v6982_v36  ;;  %v6980_v58 = vmax.f32 %v5640_v48, 0.0 }
 0x188   : > { %v1467_v55 = vpop.f32.mrf.mxu0 }
 0x189   : > { %v1778_v59 = vmax.f32 %v1657_v45, 0.0  ;;  %v5648_v8 = vadd.f32 %v1658_v42, %v1466_v49  ;;  %v1468_v2 = vadd.f32 %v1467_v55, %v5560_v37  ;;  %4462 = vrot.lane.b32.xlu0 %v4461_v54, %s4985_s12  ;;  %v1664_v4 = vpop.f32.mrf.mxu1 }
 0x18a   : > { %v1471_v5 = vpop.f32.mrf.mxu0 }
 0x18b   : > { %7027 = vst [vmem:[#allocation9_spill] sm:$0xff] %v5648_v8  ;;  %v1661_v7 = vadd.f32 %v1660_v53, %v1468_v2  ;;  %v1472_v11 = vadd.f32 %v1471_v5, %v5557_v35  ;;  %v1666_v12 = vpop.f32.mrf.mxu1  ;;  %v4466_v13 = vpack.i.bf16 %v1778_v59, %v6980_v58  ;;  %v6978_v18 = vmax.f32 %v5648_v8, 0.0 }
 0x18c   : > { %v1473_v14 = vpop.f32.mrf.mxu0 }
 0x18d   : > { %v1780_v19 = vmax.f32 %v1661_v7, 0.0  ;;  %v5656_v20 = vadd.f32 %v1664_v4, %v1472_v11  ;;  %v1474_v22 = vadd.f32 %v1473_v14, %v5560_v37  ;;  %4467 = vrot.lane.b32.xlu1 %v4466_v13, %s4985_s12  ;;  %v1668_v24 = vpop.f32.mrf.mxu1 }
 0x18e   : > { %v1475_v26 = vpop.f32.mrf.mxu0 }
 0x18f   : > { %7028 = vst [vmem:[#allocation10_spill] sm:$0xff] %v5656_v20  ;;  %v1667_v29 = vadd.f32 %v1666_v12, %v1474_v22  ;;  %v1476_v25 = vadd.f32 %v1475_v26, %v5557_v35  ;;  %v1670_v31 = vpop.f32.mrf.mxu1  ;;  %v4471_v32 = vpack.i.bf16 %v1780_v19, %v6978_v18  ;;  %v6979_v60 = vmax.f32 %v5656_v20, 0.0 }
 0x190   : > { %v1477_v9 = vpop.f32.mrf.mxu0 }
 0x191   : > { %v1782_v38 = vmax.f32 %v1667_v29, 0.0  ;;  %v5664_v40 = vadd.f32 %v1668_v24, %v1476_v25  ;;  %v1478_v42 = vadd.f32 %v1477_v9, %v5560_v37  ;;  %4472 = vrot.lane.b32.xlu0 %v4471_v32, %s4985_s12  ;;  %v1674_v43 = vpop.f32.mrf.mxu1 }
 0x192   : > { %v1481_v45 = vpop.f32.mrf.mxu0 }
 0x193   : > { %7029 = vst [vmem:[#allocation11_spill] sm:$0xff] %v5664_v40  ;;  %v1671_v49 = vadd.f32 %v1670_v31, %v1478_v42  ;;  %v1482_v53 = vadd.f32 %v1481_v45, %v5557_v35  ;;  %v1676_v54 = vpop.f32.mrf.mxu1  ;;  %v4476_v55 = vpack.i.bf16 %v1782_v38, %v6979_v60  ;;  %v6977_v2 = vmax.f32 %v5664_v40, 0.0 }
 0x194   : > { %v1483_v59 = vpop.f32.mrf.mxu0 }
 0x195   : > { %v1784_v4 = vmax.f32 %v1671_v49, 0.0  ;;  %v5672_v5 = vadd.f32 %v1674_v43, %v1482_v53  ;;  %v1484_v7 = vadd.f32 %v1483_v59, %v5560_v37  ;;  %4477 = vrot.lane.b32.xlu0 %v4476_v55, %s4985_s12  ;;  %v1678_v11 = vpop.f32.mrf.mxu1 }
 0x196   : > { %v1485_v12 = vpop.f32.mrf.mxu0 }
 0x197   : > { %7030 = vst [vmem:[#allocation12_spill] sm:$0xff] %v5672_v5  ;;  %v1677_v13 = vadd.f32 %v1676_v54, %v1484_v7  ;;  %v1486_v14 = vadd.f32 %v1485_v12, %v5557_v35  ;;  %v1680_v19 = vpop.f32.mrf.mxu1  ;;  %v4481_v22 = vpack.i.bf16 %v1784_v4, %v6977_v2  ;;  %v6976_v26 = vmax.f32 %v5672_v5, 0.0 }
 0x198   : > { %v1487_v24 = vpop.f32.mrf.mxu0 }
 0x199   : > { %v1786_v29 = vmax.f32 %v1677_v13, 0.0  ;;  %v5680_v25 = vadd.f32 %v1678_v11, %v1486_v14  ;;  %v1488_v31 = vadd.f32 %v1487_v24, %v5560_v37  ;;  %4482 = vrot.lane.b32.xlu1 %v4481_v22, %s4985_s12  ;;  %v1684_v32 = vpop.f32.mrf.mxu1 }
 0x19a   : > { %v1491_v9 = vpop.f32.mrf.mxu0 }
 0x19b   : > { %v5684_v38 = vadd.f32 %v1680_v19, %v1488_v31  ;;  %v1492_v42 = vadd.f32 %v1491_v9, %v5557_v35  ;;  %v1686_v43 = vpop.f32.mrf.mxu1  ;;  %v4486_v45 = vpack.i.bf16 %v1786_v29, %v6976_v26 }
 0x19c   : > { %v1493_v49 = vpop.f32.mrf.mxu0 }
 0x19d   : > { %v5689_v53 = vadd.f32 %v1684_v32, %v1492_v42  ;;  %v1494_v54 = vadd.f32 %v1493_v49, %v5560_v37  ;;  %4487 = vrot.lane.b32.xlu0 %v4486_v45, %s4985_s12  ;;  %v1688_v55 = vpop.f32.mrf.mxu1 }
 0x19e   : > { %v1495_v59 = vpop.f32.mrf.mxu0 }
 0x19f   : > { %v5693_v4 = vadd.f32 %v1686_v43, %v1494_v54  ;;  %v1496_v7 = vadd.f32 %v1495_v59, %v5557_v35  ;;  %v1690_v11 = vpop.f32.mrf.mxu1 }
 0x1a0   : > { %v1497_v12 = vpop.f32.mrf.mxu0 }
 0x1a1   : > { %v5696_v13 = vadd.f32 %v1688_v55, %v1496_v7  ;;  %v1498_v14 = vadd.f32 %v1497_v12, %v5560_v37  ;;  %v5699_v19 = vpop.f32.mrf.mxu1 }
 0x1a2   : > { %v5701_v22 = vpop.f32.mrf.mxu0 }
 0x1a3   : > { %v5703_v24 = vadd.f32 %v1690_v11, %v1498_v14  ;;  %v5705_v29 = vpop.f32.mrf.mxu1 }
 0x1a4   : > { %v5707_v31 = vpop.f32.mrf.mxu0 }
 0x1a5   : > { %v5709_v32 = vpop.f32.mrf.mxu1 }
 0x1a6   : > { %v5711_v9 = vpop.f32.mrf.mxu0 }
 0x1a7   : > { %v5713_v42 = vpop.f32.mrf.mxu1 }
 0x1a8   : > { %v5715_v43 = vpop.f32.mrf.mxu0 }
 0x1a9   : > { %v5717_v45 = vpop.f32.mrf.mxu1 }
 0x1aa   : > { %v5719_v49 = vpop.f32.mrf.mxu0 }
 0x1ab   : > { %v5721_v54 = vpop.f32.mrf.mxu1 }
 0x1ac   : > { %v5723_v55 = vpop.f32.mrf.mxu0 }
 0x1ad   : > { %v5725_v59 = vpop.f32.mrf.mxu1 }
 0x1ae   : > { %v5727_v7 = vpop.f32.mrf.mxu0 }
 0x1af   : > { %v5729_v11 = vpop.f32.mrf.mxu1 }
 0x1b0   : > { %v5731_v12 = vpop.f32.mrf.mxu0 }
 0x1b1   : > { %v1714_v14 = vpop.f32.mrf.mxu1 }
 0x1b2   : > { %v1521_v44 = vpop.f32.mrf.mxu0 }
 0x1b3   : > { %v1522_v26 = vadd.f32 %v1521_v44, %v5557_v35  ;;  %v1716_v2 = vpop.f32.mrf.mxu1 }
 0x1b4   : > { %v1523_v18 = vpop.f32.mrf.mxu0 }
 0x1b5   : > { %v5734_v60 = vadd.f32 %v1714_v14, %v1522_v26  ;;  %v1524_v58 = vadd.f32 %v1523_v18, %v5560_v37  ;;  %v1718_v17 = vpop.f32.mrf.mxu1 }
 0x1b6   : > { %v1525_v36 = vpop.f32.mrf.mxu0 }
 0x1b7   : > { %7031 = vst [vmem:[#allocation13_spill] sm:$0xff] %v5734_v60  ;;  %v1717_v34 = vadd.f32 %v1716_v2, %v1524_v58  ;;  %v1526_v33 = vadd.f32 %v1525_v36, %v5557_v35  ;;  %v1720_v39 = vpop.f32.mrf.mxu1  ;;  %v6996_v40 = vmax.f32 %v5734_v60, 0.0 }
 0x1b8   : > { %v1527_v5 = vpop.f32.mrf.mxu0 }
 0x1b9   : > { %v1802_v8 = vmax.f32 %v1717_v34, 0.0  ;;  %v5739_v20 = vadd.f32 %v1718_v17, %v1526_v33  ;;  %v1528_v44 = vadd.f32 %v1527_v5, %v5560_v37  ;;  %v1724_v48 = vpop.f32.mrf.mxu1 }
 0x1ba   : > { %v1531_v28 = vpop.f32.mrf.mxu0 }
 0x1bb   : > { %7032 = vst [vmem:[#allocation14_spill] sm:$0xff] %v5739_v20  ;;  %v1721_v26 = vadd.f32 %v1720_v39, %v1528_v44  ;;  %v1532_v14 = vadd.f32 %v1531_v28, %v5557_v35  ;;  %v1726_v18 = vpop.f32.mrf.mxu1  ;;  %v4491_v58 = vpack.i.bf16 %v1802_v8, %v6996_v40  ;;  %v6998_v36 = vmax.f32 %v5739_v20, 0.0 }
 0x1bc   : > { %v1533_v2 = vpop.f32.mrf.mxu0 }
 0x1bd   : > { %v1804_v63 = vmax.f32 %v1721_v26, 0.0  ;;  %v5746_v52 = vadd.f32 %v1724_v48, %v1532_v14  ;;  %v1534_v33 = vadd.f32 %v1533_v2, %v5560_v37  ;;  %4492 = vrot.lane.b32.xlu1 %v4491_v58, %s4985_s12  ;;  %v1728_v34 = vpop.f32.mrf.mxu1 }
 0x1be   : > { %v1535_v17 = vpop.f32.mrf.mxu0 }
 0x1bf   : > { %7033 = vst [vmem:[#allocation15_spill] sm:$0xff] %v5746_v52  ;;  %v1727_v5 = vadd.f32 %v1726_v18, %v1534_v33  ;;  %v1536_v39 = vadd.f32 %v1535_v17, %v5557_v35  ;;  %v1730_v28 = vpop.f32.mrf.mxu1  ;;  %v4496_v44 = vpack.i.bf16 %v1804_v63, %v6998_v36  ;;  %v7000_v40 = vmax.f32 %v5746_v52, 0.0 }
 0x1c0   : > { %v1537_v8 = vpop.f32.mrf.mxu0 }
 0x1c1   : > { %v1806_v60 = vmax.f32 %v1727_v5, 0.0  ;;  %v5754_v26 = vadd.f32 %v1728_v34, %v1536_v39  ;;  %v1538_v48 = vadd.f32 %v1537_v8, %v5560_v37  ;;  %4497 = vrot.lane.b32.xlu0 %v4496_v44, %s4985_s12  ;;  %v1734_v14 = vpop.f32.mrf.mxu1 }
 0x1c2   : > { %v1541_v58 = vpop.f32.mrf.mxu0 }
 0x1c3   : > { %7034 = vst [vmem:[#allocation16_spill] sm:$0xff] %v5754_v26  ;;  %v1731_v2 = vadd.f32 %v1730_v28, %v1538_v48  ;;  %v1542_v18 = vadd.f32 %v1541_v58, %v5557_v35  ;;  %v1736_v33 = vpop.f32.mrf.mxu1  ;;  %v4501_v17 = vpack.i.bf16 %v1806_v60, %v7000_v40  ;;  %v7002_v36 = vmax.f32 %v5754_v26, 0.0 }
 0x1c4   : > { %v1543_v63 = vpop.f32.mrf.mxu0 }
 0x1c5   : > { %v1808_v20 = vmax.f32 %v1731_v2, 0.0  ;;  %v5762_v5 = vadd.f32 %v1734_v14, %v1542_v18  ;;  %v1544_v34 = vadd.f32 %v1543_v63, %v5560_v37  ;;  %4502 = vrot.lane.b32.xlu1 %v4501_v17, %s4985_s12  ;;  %v1738_v39 = vpop.f32.mrf.mxu1 }
 0x1c6   : > { %v1545_v44 = vpop.f32.mrf.mxu0 }
 0x1c7   : > { %v1737_v8 = vadd.f32 %v1736_v33, %v1544_v34  ;;  %v1546_v28 = vadd.f32 %v1545_v44, %v5557_v35  ;;  %v1740_v48 = vpop.f32.mrf.mxu1  ;;  %v4506_v58 = vpack.i.bf16 %v1808_v20, %v7002_v36  ;;  %v1809_v40 = vmax.f32 %v5762_v5, 0.0 }
 0x1c8   : > { %v1547_v60 = vpop.f32.mrf.mxu0 }
 0x1c9   : > { %v1810_v52 = vmax.f32 %v1737_v8, 0.0  ;;  %v5770_v2 = vadd.f32 %v1738_v39, %v1546_v28  ;;  %v1548_v14 = vadd.f32 %v1547_v60, %v5560_v37  ;;  %4507 = vrot.lane.b32.xlu0 %v4506_v58, %s4985_s12  ;;  %v1744_v18 = vpop.f32.mrf.mxu1  ;;  %v1514_v28 = vadd.f32 %v5723_v55, %v5560_v37 }
 0x1ca   : > { %v1551_v17 = vpop.f32.mrf.mxu0  ;;  %v1518_v60 = vadd.f32 %v5731_v12, %v5560_v37 }
 0x1cb   : > { %v1741_v63 = vadd.f32 %v1740_v48, %v1548_v14  ;;  %v1552_v33 = vadd.f32 %v1551_v17, %v5557_v35  ;;  %v1746_v34 = vpop.f32.mrf.mxu1  ;;  %v4511_v44 = vpack.i.bf16 %v1810_v52, %v1809_v40  ;;  %v7004_v36 = vmax.f32 %v5770_v2, 0.0 }
 0x1cc   : > { %v1553_v20 = vpop.f32.mrf.mxu0 }
 0x1cd   : > { %v1812_v26 = vmax.f32 %v1741_v63, 0.0  ;;  %v5778_v8 = vadd.f32 %v1744_v18, %v1552_v33  ;;  %v1554_v39 = vadd.f32 %v1553_v20, %v5560_v37  ;;  %4512 = vrot.lane.b32.xlu1 %v4511_v44, %s4985_s12  ;;  %v1748_v48 = vpop.f32.mrf.mxu1  ;;  %v1512_v18 = vadd.f32 %v5719_v49, %v5557_v35 }
 0x1ce   : > { %v1555_v58 = vpop.f32.mrf.mxu0  ;;  %v1516_v63 = vadd.f32 %v5727_v7, %v5557_v35  ;;  %v1711_v49 = vadd.f32 %v5729_v11, %v1518_v60 }
 0x1cf   : > { %v1747_v14 = vadd.f32 %v1746_v34, %v1554_v39  ;;  %v1556_v52 = vadd.f32 %v1555_v58, %v5557_v35  ;;  %v4516_v17 = vpack.i.bf16 %v1812_v26, %v7004_v36  ;;  %v1813_v55 = vmax.f32 %v5778_v8, 0.0  ;;  %v1750_v39 = vpop.f32.mrf.mxu1 }
 0x1d0   : > { %v1557_v33 = vpop.f32.mrf.mxu0  ;;  %v1772_v34 = vmax.f32 %v5622_v6, 0.0  ;;  %v1707_v26 = vadd.f32 %v5721_v54, %v1514_v28  ;;  %v1771_v36 = vmax.f32 %v5619_v56, 0.0  ;;  %v1504_v54 = vadd.f32 %v5707_v31, %v5560_v37 }
 0x1d1   : > { %v1814_v44 = vmax.f32 %v1747_v14, 0.0  ;;  %v5794_v20 = vadd.f32 %v1748_v48, %v1556_v52  ;;  %v1558_v12 = vadd.f32 %v1557_v33, %v5560_v37  ;;  %4517 = vrot.lane.b32.xlu0 %v4516_v17, %s4985_s12  ;;  %v5805_v48 = vadd.f32 %v5717_v45, %v1512_v18 }
 0x1d2   : > { %v5808_v14 = vadd.f32 %v5725_v59, %v1516_v63  ;;  %v4526_v11 = vpack.i.bf16 %v1772_v34, %v1771_v36  ;;  %v1508_v28 = vadd.f32 %v5715_v43, %v5560_v37  ;;  %v1798_v60 = vmax.f32 %v1707_v26, 0.0 }
 0x1d3   : > { %v1751_v58 = vadd.f32 %v1750_v39, %v1558_v12  ;;  %v4521_v7 = vpack.i.bf16 %v1814_v44, %v1813_v55  ;;  %v1815_v52 = vmax.f32 %v5794_v20, 0.0  ;;  %v1800_v45 = vmax.f32 %v1711_v49, 0.0 }
 0x1d4   : > { %v1502_v17 = vadd.f32 %v5701_v22, %v5557_v35  ;;  %v1506_v18 = vadd.f32 %v5711_v9, %v5557_v35  ;;  %v1797_v63 = vmax.f32 %v5805_v48, 0.0  ;;  %v7019_v31 = vmax.f32 %v5808_v14, 0.0 }
 0x1d5   : > { %v1816_v6 = vmax.f32 %v1751_v58, 0.0  ;;  %4522 = vrot.lane.b32.xlu0 %v4521_v7, %s4985_s12  ;;  %v1428_v43 = vadd.f32 %v5597_v47, %v5560_v37  ;;  %v1766_v33 = vmax.f32 %v5605_v27, 0.0  ;;  %v1768_v44 = vmax.f32 %v5611_v30, 0.0 }
 0x1d6   : > { %v1697_v22 = vadd.f32 %v5705_v29, %v1504_v54  ;;  %v1701_v12 = vadd.f32 %v5713_v42, %v1508_v28  ;;  %v4536_v35 = vpack.i.bf16 %v1798_v60, %v1797_v63  ;;  %v4541_v9 = vpack.i.bf16 %v1800_v45, %v7019_v31  ;;  %v7058_v31 = vld [vmem:[#allocation16_spill] sm:$0xff] }
 0x1d7   : > { %v4531_v59 = vpack.i.bf16 %v1816_v6, %v1815_v52  ;;  %v7016_v34 = vmax.f32 %v5602_v23, 0.0  ;;  %v7017_v39 = vmax.f32 %v5608_v21, 0.0  ;;  %v5841_v47 = vadd.f32 %v5699_v19, %v1502_v17 }
 0x1d8   : > { %v5844_v27 = vadd.f32 %v5709_v32, %v1506_v18  ;;  %v1621_v30 = vadd.f32 %v5595_v15, %v1428_v43  ;;  %v1794_v29 = vmax.f32 %v1697_v22, 0.0  ;;  %v1796_v42 = vmax.f32 %v1701_v12, 0.0 }
 0x1d9   : > { %4532 = vrot.lane.b32.xlu1 %v4531_v59, %s4985_s12  ;;  %4527 = vrot.lane.b32.xlu0 %v4526_v11, %s4985_s12  ;;  %v4546_v26 = vpack.i.bf16 %v1766_v33, %v7016_v34  ;;  %v4551_v49 = vpack.i.bf16 %v1768_v44, %v7017_v39  ;;  %v7015_v19 = vmax.f32 %v5841_v47, 0.0  ;;  %v1418_v32 = vadd.f32 %v5584_v0, %v5560_v37 }
 0x1da   : > { %v7014_v58 = vmax.f32 %v5844_v27, 0.0  ;;  %v1762_v15 = vmax.f32 %v5592_v3, 0.0  ;;  %v1764_v7 = vmax.f32 %v1621_v30, 0.0  ;;  %v7013_v11 = vmax.f32 %v5589_v10, 0.0 }
 0x1db   : > { %v4556_v6 = vpack.i.bf16 %v1794_v29, %v7015_v19  ;;  %v7012_v28 = vmax.f32 %v5599_v16, 0.0  ;;  %v1611_v60 = vadd.f32 %v5582_v62, %v1418_v32  ;;  %v1790_v0 = vmax.f32 %v5693_v4, 0.0 }
 0x1dc   : > { %v4561_v54 = vpack.i.bf16 %v1796_v42, %v7014_v58  ;;  %v1792_v3 = vmax.f32 %v5703_v24, 0.0  ;;  %v4566_v45 = vpack.i.bf16 %v1762_v15, %v7013_v11  ;;  %v7011_v17 = vmax.f32 %v5689_v53, 0.0  ;;  %v7052_v58 = vld [vmem:[#allocation5_spill] sm:$0xff] }
 0x1dd   : > { %4537 = vrot.lane.b32.xlu1 %v4536_v35, %s4985_s12  ;;  %4542 = vrot.lane.b32.xlu0 %v4541_v9, %s4985_s12  ;;  %v4571_v59 = vpack.i.bf16 %v1764_v7, %v7012_v28  ;;  %v7010_v18 = vmax.f32 %v5696_v13, 0.0  ;;  %v1408_v62 = vadd.f32 %v5571_v51, %v5560_v37  ;;  %v1758_v4 = vmax.f32 %v5579_v61, 0.0 }
 0x1de   : > { %v1760_v24 = vmax.f32 %v1611_v60, 0.0  ;;  %v4576_v43 = vpack.i.bf16 %v1790_v0, %v7011_v17  ;;  %v7009_v44 = vmax.f32 %v5576_v57, 0.0  ;;  %v7008_v22 = vmax.f32 %v5586_v1, 0.0 }
 0x1df   : > { %v4581_v33 = vpack.i.bf16 %v1792_v3, %v7010_v18  ;;  %v1754_v12 = vmax.f32 %v5566_v46, 0.0  ;;  %v1601_v37 = vadd.f32 %v5569_v50, %v1408_v62  ;;  %v1788_v51 = vmax.f32 %v5684_v38, 0.0  ;;  %v7035_v38 = vld [vmem:[#allocation4_spill] sm:$0xff] }
 0x1e0   : > { %v4586_v61 = vpack.i.bf16 %v1758_v4, %v7009_v44  ;;  %v4591_v35 = vpack.i.bf16 %v1760_v24, %v7008_v22  ;;  %v7006_v9 = vmax.f32 %v5563_v41, 0.0  ;;  %v7007_v30 = vmax.f32 %v5680_v25, 0.0 }
 0x1e1   : > { %4547 = vrot.lane.b32.xlu1 %v4546_v26, %s4985_s12  ;;  %4552 = vrot.lane.b32.xlu0 %v4551_v49, %s4985_s12  ;;  %v1756_v29 = vmax.f32 %v1601_v37, 0.0  ;;  %v7005_v42 = vmax.f32 %v7035_v38, 0.0  ;;  %v4789_v49 = vld [vmem:[%s6968_s3 + $0x4] ss:$8 sps:$4 sm:$0xff]   ;;  %v7053_v19 = vmax.f32 %v7052_v58, 0.0 }
 0x1e2   : > { %v4596_v46 = vpack.i.bf16 %v1788_v51, %v7007_v30  ;;  %v4601_v50 = vpack.i.bf16 %v1754_v12, %v7006_v9  ;;  %4207 = vmatprep.mubr.msk.bf16.mxu1 %vm2359_vm7, %v4789_v49 }
 0x1e3   : > { %v4606_v26 = vpack.i.bf16 %v1756_v29, %v7005_v42 }
 0x1e5   : > { %4557 = vrot.lane.b32.xlu1 %v4556_v6, %s4985_s12  ;;  %4562 = vrot.lane.b32.xlu0 %v4561_v54, %s4985_s12 }
 0x1e9   : > { %4567 = vrot.lane.b32.xlu1 %v4566_v45, %s4985_s12  ;;  %4572 = vrot.lane.b32.xlu0 %v4571_v59, %s4985_s12 }
 0x1ed   : > { %4577 = vrot.lane.b32.xlu1 %v4576_v43, %s4985_s12  ;;  %4582 = vrot.lane.b32.xlu0 %v4581_v33, %s4985_s12 }
 0x1ef   : > { %v4453_v32 = vpop.permute.xlu1 %4452 }
 0x1f0   : > { %v4454_v9 = vunpack.i.l.bf16 %v4453_v32 }
 0x1f1   : > { %4587 = vrot.lane.b32.xlu1 %v4586_v61, %s4985_s12  ;;  %4592 = vrot.lane.b32.xlu0 %v4591_v35, %s4985_s12 }
 0x1f5   : > { %4597 = vrot.lane.b32.xlu1 %v4596_v46, %s4985_s12  ;;  %4602 = vrot.lane.b32.xlu0 %v4601_v50, %s4985_s12  ;;  %v7036_v50 = vld [vmem:[#allocation7_spill] sm:$0xff] }
 0x1f7   : > { %v4458_v7 = vpop.permute.xlu1 %4457 }
 0x1f8   : > { %v4460_v59 = vunpack.i.h.bf16 %v4458_v7  ;;  %v4459_v62 = vunpack.i.l.bf16 %v4458_v7  ;;  %v7038_v7 = vld [vmem:[#allocation6_spill] sm:$0xff] }
 0x1f9   : > { %4607 = vrot.lane.b32.xlu1 %v4606_v26, %s4985_s12  ;;  %v7037_v26 = vmax.f32 %v7036_v50, 0.0  ;;  %s4988_s12 = smov 84  }
 0x1fa   : > { %v2020_v29 = vsel %vm2009_vm8, %v4459_v62, %v4460_v59 }
 0x1fb   : > { %v4463_v15 = vpop.permute.xlu0 %4462 }
 0x1fc   : > { %v4465_v60 = vunpack.i.h.bf16 %v4463_v15  ;;  %v4464_v0 = vunpack.i.l.bf16 %v4463_v15 }
 0x1fe   : > { %v2021_v43 = vsel %vm2009_vm8, %v4464_v0, %v4465_v60  ;;  %v7040_v60 = vld [vmem:[#allocation8_spill] sm:$0xff] }
 0x1ff   : > { %v4468_v54 = vpop.permute.xlu1 %4467  ;;  %v5920_v49 = vmax.f32 %v7037_v26, %v2021_v43  ;;  %v7041_v0 = vmax.f32 %v7040_v60, 0.0  ;;  %v4455_v26 = vunpack.i.h.bf16 %v4453_v32 }
 0x200   : > { %v4470_v4 = vunpack.i.h.bf16 %v4468_v54  ;;  %v4469_v24 = vunpack.i.l.bf16 %v4468_v54  ;;  %v7039_v54 = vmax.f32 %v7038_v7, 0.0  ;;  %v7042_v7 = vld [vmem:[#allocation10_spill] sm:$0xff] }
 0x202   : > { %v2022_v46 = vsel %vm2009_vm8, %v4469_v24, %v4470_v4  ;;  %v5924_v42 = vmax.f32 %v7039_v54, %v2020_v29  ;;  %v2160_v29 = vrot.slane %v5920_v49, 1  ;;  %v7043_v54 = vmax.f32 %v7042_v7, 0.0 }
 0x203   : > { %v4473_v6 = vpop.permute.xlu0 %4472 }
 0x204   : > { %v4475_v12 = vunpack.i.h.bf16 %v4473_v6  ;;  %v4474_v37 = vunpack.i.l.bf16 %v4473_v6  ;;  %v5928_v6 = vmax.f32 %v7041_v0, %v2022_v46 }
 0x207   : > { %v4478_v45 = vpop.permute.xlu0 %4477 }
 0x208   : > { %v4480_v51 = vunpack.i.h.bf16 %v4478_v45  ;;  %v4479_v61 = vunpack.i.l.bf16 %v4478_v45  ;;  %v2023_v45 = vsel %vm2009_vm8, %v4474_v37, %v4475_v12  ;;  %v7018_v12 = vrot.slane %v5924_v42, 1 }
 0x209   : > { %v2162_v37 = vrot.slane %v5928_v6, 1 }
 0x20a   : > { %v2024_v59 = vsel %vm2009_vm8, %v4479_v61, %v4480_v51  ;;  %v7044_v51 = vld [vmem:[#allocation9_spill] sm:$0xff] }
 0x20b   : > { %v4483_v3 = vpop.permute.xlu1 %4482  ;;  %v5935_v60 = vmax.f32 %v7043_v54, %v2024_v59  ;;  %v4986_v59 = vmov 65535  }
 0x20c   : > { %v4485_v4 = vunpack.i.h.bf16 %v4483_v3  ;;  %v4484_v24 = vunpack.i.l.bf16 %v4483_v3  ;;  %v7045_v3 = vmax.f32 %v7044_v51, 0.0  ;;  %v2383_v54 = vsel %vm2381_vm9, 4294967295, %v4986_v59 }
 0x20d   : > { %v2166_v17 = vrot.slane %v5935_v60, 1 }
 0x20e   : > { %v2087_v61 = vmax.f32 %v7045_v3, %v2023_v45  ;;  %v2161_v45 = vsel %vm608_vm2, %v7018_v12, %v2160_v29  ;;  %v7050_v3 = vld [vmem:[#allocation15_spill] sm:$0xff] }
 0x20f   : > { %v4488_v35 = vpop.permute.xlu0 %4487 }
 0x210   : > { %v4490_v50 = vunpack.i.h.bf16 %v4488_v35  ;;  %v4489_v43 = vunpack.i.l.bf16 %v4488_v35  ;;  %v2025_v35 = vsel %vm2009_vm8, %v4484_v24, %v4485_v4  ;;  %v2164_v4 = vrot.slane %v2087_v61, 1  ;;  %v7046_v24 = vld [vmem:[#allocation11_spill] sm:$0xff] }
 0x212   : > { %v2026_v32 = vsel %vm2009_vm8, %v4489_v43, %v4490_v50 }
 0x22f   : > { %v4493_v33 = vpop.permute.xlu1 %4492 }
 0x230   : > { %v4494_v44 = vunpack.i.l.bf16 %v4493_v33 }
 0x233   : > { %v4498_v62 = vpop.permute.xlu0 %4497 }
 0x234   : > { %v4500_v46 = vunpack.i.h.bf16 %v4498_v62  ;;  %v4499_v0 = vunpack.i.l.bf16 %v4498_v62  ;;  %v2018_v62 = vsel %vm2009_vm8, %v4454_v9, %v4455_v26  ;;  %v2163_v9 = vsel %vm608_vm2, %v2160_v29, %v2162_v37 }
 0x235   : > { %v5967_v34 = vmax.f32 %v7053_v19, %v2018_v62  ;;  %v5981_v19 = vsel %vm768_vm4, %v2383_v54, 0 }
 0x236   : > { %v2035_v28 = vsel %vm2009_vm8, %v4499_v0, %v4500_v46  ;;  %v7051_v46 = vmax.f32 %v7050_v3, 0.0 }
 0x237   : > { %v4503_v15 = vpop.permute.xlu1 %4502 }
 0x238   : > { %v4505_v30 = vunpack.i.h.bf16 %v4503_v15  ;;  %v4504_v22 = vunpack.i.l.bf16 %v4503_v15  ;;  %v4495_v15 = vunpack.i.h.bf16 %v4493_v33  ;;  %v7047_v33 = vmax.f32 %v7046_v24, 0.0 }
 0x23a   : > { %v2036_v18 = vsel %vm2009_vm8, %v4504_v22, %v4505_v30  ;;  %v5953_v50 = vmax.f32 %v7047_v33, %v2025_v35  ;;  %v7048_v22 = vld [vmem:[#allocation12_spill] sm:$0xff]  ;;  %v2034_v26 = vsel %vm2009_vm8, %v4494_v44, %v4495_v15  ;;  %v7054_v35 = vld [vmem:[#allocation14_spill] sm:$0xff]  ;;  %v2167_v44 = vsel %vm608_vm2, %v2164_v4, %v2166_v17 }
 0x23b   : > { %v4508_v7 = vpop.permute.xlu0 %4507  ;;  %v7049_v30 = vmax.f32 %v7048_v22, 0.0  ;;  %v5963_v0 = vmax.f32 %v7051_v46, %v2036_v18  ;;  %v7055_v24 = vmax.f32 %v7054_v35, 0.0  ;;  %v2245_v18 = vmax.f32 %v5920_v49, %v2163_v9 }
 0x23c   : > { %v4510_v59 = vunpack.i.h.bf16 %v4508_v7  ;;  %v4509_v11 = vunpack.i.l.bf16 %v4508_v7  ;;  %v2168_v15 = vrot.slane %v5953_v50, 1  ;;  %v7056_v7 = vld [vmem:[#allocation13_spill] sm:$0xff]  ;;  %v2165_v35 = vsel %vm608_vm2, %v2162_v37, %v2164_v4 }
 0x23d   : > { %v5957_v43 = vmax.f32 %v7049_v30, %v2026_v32  ;;  %v5971_v33 = vmax.f32 %v7055_v24, %v2035_v28  ;;  %v7057_v3 = vmax.f32 %v7056_v7, 0.0  ;;  %v2244_v28 = vmax.f32 %v5924_v42, %v2161_v45 }
 0x23e   : > { %v2037_v46 = vsel %vm2009_vm8, %v4509_v11, %v4510_v59  ;;  %v2154_v49 = vrot.slane %v5967_v34, 1  ;;  %v7059_v11 = vmax.f32 %v7058_v31, 0.0  ;;  %v2169_v37 = vsel %vm608_vm2, %v2166_v17, %v2168_v15 }
 0x23f   : > { %v4513_v51 = vpop.permute.xlu1 %4512  ;;  %v5978_v58 = vmax.f32 %v7057_v3, %v2034_v26  ;;  %v2170_v62 = vrot.slane %v5957_v43, 1  ;;  %v2188_v9 = vrot.slane %v5971_v33, 1  ;;  %v5992_v3 = vpack.c.bf16 %v2245_v18, %v2244_v28 }
 0x240   : > { %v4515_v32 = vunpack.i.h.bf16 %v4513_v51  ;;  %v4514_v22 = vunpack.i.l.bf16 %v4513_v51  ;;  %v2190_v51 = vrot.slane %v5963_v0, 1  ;;  %v5997_v59 = vmax.f32 %v7059_v11, %v2037_v46 }
 0x241   : > { %v2186_v12 = vrot.slane %v5978_v58, 1  ;;  %v2246_v4 = vmax.f32 %v5928_v6, %v2165_v35  ;;  %v7060_v31 = vmax.f32 %v5770_v2, 0.0  ;;  %v2248_v35 = vmax.f32 %v5935_v60, %v2169_v37 }
 0x242   : > { %v2038_v26 = vsel %vm2009_vm8, %v4514_v22, %v4515_v32  ;;  %v2191_v22 = vsel %vm608_vm2, %v2188_v9, %v2190_v51  ;;  %v2192_v2 = vrot.slane %v5997_v59, 1 }
 0x243   : > { %v4518_v30 = vpop.permute.xlu0 %4517  ;;  %v6003_v32 = vmax.f32 %v1809_v40, %v2038_v26 }
 0x244   : > { %v4520_v29 = vunpack.i.h.bf16 %v4518_v30  ;;  %v4519_v39 = vunpack.i.l.bf16 %v4518_v30  ;;  %v2247_v30 = vmax.f32 %v2087_v61, %v2167_v44  ;;  %v2171_v61 = vsel %vm608_vm2, %v2168_v15, %v2170_v62 }
 0x245   : > { %v2189_v44 = vsel %vm608_vm2, %v2186_v12, %v2188_v9  ;;  %v2249_v8 = vmax.f32 %v5953_v50, %v2171_v61  ;;  %v2194_v26 = vrot.slane %v6003_v32, 1 }
 0x246   : > { %v2039_v54 = vsel %vm2009_vm8, %v4519_v39, %v4520_v29  ;;  %v6018_v40 = vpack.c.bf16 %v2247_v30, %v2246_v4  ;;  %v2258_v9 = vmax.f32 %v5978_v58, %v2189_v44  ;;  %v7061_v44 = vmax.f32 %v5808_v14, 0.0 }
 0x247   : > { %v4523_v24 = vpop.permute.xlu0 %4522  ;;  %v6012_v29 = vmax.f32 %v7060_v31, %v2039_v54  ;;  %v6042_v31 = vsel %vm608_vm2, %v2190_v51, %v2192_v2 }
 0x248   : > { %v4525_v7 = vunpack.i.h.bf16 %v4523_v24  ;;  %v4524_v45 = vunpack.i.l.bf16 %v4523_v24 }
 0x249   : > { %v2196_v54 = vrot.slane %v6012_v29, 1 }
 0x24a   : > { %v2040_v39 = vsel %vm2009_vm8, %v4524_v45, %v4525_v7 }
 0x24b   : > { %v6016_v17 = vmax.f32 %v1813_v55, %v2040_v39  ;;  %v4533_v6 = vpop.permute.xlu1 %4532  ;;  %v4528_v5 = vpop.permute.xlu0 %4527  ;;  %v2259_v55 = vmax.f32 %v5971_v33, %v2191_v22  ;;  %v6039_v22 = vpack.c.bf16 %v2249_v8, %v2248_v35 }
 0x24c   : > { %v4535_v18 = vunpack.i.h.bf16 %v4533_v6  ;;  %v4534_v15 = vunpack.i.l.bf16 %v4533_v6  ;;  %v4530_v28 = vunpack.i.h.bf16 %v4528_v5  ;;  %v4529_v46 = vunpack.i.l.bf16 %v4528_v5 }
 0x24d   : > { %v2198_v7 = vrot.slane %v6016_v17, 1  ;;  %v6044_v6 = vpack.c.bf16 %v2259_v55, %v2258_v9 }
 0x24e   : > { %v2041_v24 = vsel %vm2009_vm8, %v4534_v15, %v4535_v18  ;;  %v2019_v30 = vsel %vm2009_vm8, %v4529_v46, %v4530_v28 }
 0x24f   : > { %v2105_v45 = vmax.f32 %v1815_v52, %v2041_v24  ;;  %v6037_v60 = vmax.f32 %v1771_v36, %v2019_v30  ;;  %v4538_v50 = vpop.permute.xlu1 %4537  ;;  %v4543_v33 = vpop.permute.xlu0 %4542  ;;  %v6050_v52 = vsel %vm608_vm2, %v2192_v2, %v2194_v26  ;;  %v2199_v46 = vsel %vm608_vm2, %v2196_v54, %v2198_v7 }
 0x250   : > { %v4540_v11 = vunpack.i.h.bf16 %v4538_v50  ;;  %v4539_v37 = vunpack.i.l.bf16 %v4538_v50  ;;  %v4545_v4 = vunpack.i.h.bf16 %v4543_v33  ;;  %v4544_v39 = vunpack.i.l.bf16 %v4543_v33 }
 0x251   : > { %v2200_v61 = vrot.slane %v2105_v45, 1  ;;  %v2156_v20 = vrot.slane %v6037_v60, 1  ;;  %v2197_v2 = vsel %vm608_vm2, %v2194_v26, %v2196_v54  ;;  %v2261_v14 = vmax.f32 %v5997_v59, %v6050_v52 }
 0x252   : > { %v2032_v56 = vsel %vm2009_vm8, %v4539_v37, %v4540_v11  ;;  %v2033_v36 = vsel %vm2009_vm8, %v4544_v39, %v4545_v4  ;;  %v7062_v30 = vrot.slane %v5924_v42, 1  ;;  %v2263_v33 = vmax.f32 %v6012_v29, %v2199_v46 }
 0x253   : > { %v6054_v5 = vmax.f32 %v1797_v63, %v2032_v56  ;;  %v6058_v18 = vmax.f32 %v7061_v44, %v2033_v36  ;;  %v4548_v51 = vpop.permute.xlu1 %4547  ;;  %v4553_v15 = vpop.permute.xlu0 %4552  ;;  %v2201_v28 = vsel %vm608_vm2, %v2198_v7, %v2200_v61  ;;  %v2260_v63 = vmax.f32 %v5963_v0, %v6042_v31 }
 0x254   : > { %v4550_v35 = vunpack.i.h.bf16 %v4548_v51  ;;  %v4549_v8 = vunpack.i.l.bf16 %v4548_v51  ;;  %v4555_v55 = vunpack.i.h.bf16 %v4553_v15  ;;  %v4554_v24 = vunpack.i.l.bf16 %v4553_v15 }
 0x255   : > { %v2264_v48 = vmax.f32 %v6016_v17, %v2201_v28  ;;  %v2159_v9 = vsel %vm608_vm2, %v2156_v20, %v7062_v30  ;;  %v2265_v50 = vmax.f32 %v2105_v45, %v2200_v61  ;;  %v2182_v26 = vrot.slane %v6054_v5, 1 }
 0x256   : > { %v2016_v7 = vsel %vm2009_vm8, %v4549_v8, %v4550_v35  ;;  %v2184_v54 = vrot.slane %v6058_v18, 1  ;;  %v2017_v17 = vsel %vm2009_vm8, %v4554_v24, %v4555_v55  ;;  %v2262_v37 = vmax.f32 %v6003_v32, %v2197_v2 }
 0x257   : > { %v4558_v11 = vpop.permute.xlu1 %4557  ;;  %v4563_v0 = vpop.permute.xlu0 %4562  ;;  %v7063_v59 = vmax.f32 %v5608_v21, 0.0  ;;  %v2243_v45 = vmax.f32 %v6037_v60, %v2159_v9  ;;  %v7064_v29 = vmax.f32 %v5602_v23, 0.0  ;;  %v2295_v36 = vpack.c.bf16 %v2265_v50, %v2264_v48 }
 0x258   : > { %v4560_v4 = vunpack.i.h.bf16 %v4558_v11  ;;  %v4559_v39 = vunpack.i.l.bf16 %v4558_v11  ;;  %v4565_v31 = vunpack.i.h.bf16 %v4563_v0  ;;  %v4564_v56 = vunpack.i.l.bf16 %v4563_v0 }
 0x259   : > { %v6079_v42 = vmax.f32 %v7063_v59, %v2017_v17  ;;  %v6084_v61 = vmax.f32 %v7064_v29, %v2016_v7  ;;  %v2294_v32 = vpack.c.bf16 %v2263_v33, %v2262_v37  ;;  %v2157_v21 = vsel %vm608_vm2, %v2154_v49, %v2156_v20 }
 0x25a   : > { %v2030_v44 = vsel %vm2009_vm8, %v4559_v39, %v4560_v4  ;;  %v7065_v51 = vmax.f32 %v5841_v47, 0.0  ;;  %v2031_v60 = vsel %vm2009_vm8, %v4564_v56, %v4565_v31  ;;  %v2386_v23 = vand.u32 %v5981_v19, %v2295_v36 }
 0x25b   : > { %v2152_v52 = vrot.slane %v6079_v42, 1  ;;  %v4568_v28 = vpop.permute.xlu1 %4567  ;;  %v4573_v46 = vpop.permute.xlu0 %4572  ;;  %v2185_v35 = vsel %vm608_vm2, %v2182_v26, %v2184_v54  ;;  %v7066_v8 = vmax.f32 %v5844_v27, 0.0  ;;  %v2187_v47 = vsel %vm608_vm2, %v2184_v54, %v2186_v12 }
 0x25c   : > { %v6093_v15 = vmax.f32 %v7065_v51, %v2030_v44  ;;  %v4570_v2 = vunpack.i.h.bf16 %v4568_v28  ;;  %v4569_v20 = vunpack.i.l.bf16 %v4568_v28  ;;  %v2150_v24 = vrot.slane %v6084_v61, 1  ;;  %4336 = vmatprep.subr.bf16.mxu1 %v2386_v23 }
 0x25d   : > { %v6102_v55 = vmax.f32 %v7066_v8, %v2031_v60  ;;  %v4575_v48 = vunpack.i.h.bf16 %v4573_v46  ;;  %v4574_v30 = vunpack.i.l.bf16 %v4573_v46  ;;  %v2242_v9 = vmax.f32 %v5967_v34, %v2157_v21  ;;  %4337 = vmatpush3.bf16.msra.mxu1 %v6039_v22 }
 0x25e   : > { %v2155_v7 = vsel %vm608_vm2, %v2152_v52, %v2154_v49  ;;  %v2178_v27 = vrot.slane %v6093_v15, 1  ;;  %v2014_v33 = vsel %vm2009_vm8, %v4569_v20, %v4570_v2  ;;  %v7067_v12 = vmax.f32 %v5589_v10, 0.0  ;;  %4338 = vmatprep.subr.bf16.mxu1 %v2294_v32 }
 0x25f   : > { %v2180_v50 = vrot.slane %v6102_v55, 1  ;;  %v2015_v54 = vsel %vm2009_vm8, %v4574_v30, %v4575_v48  ;;  %v4578_v17 = vpop.permute.xlu1 %4577  ;;  %v4583_v11 = vpop.permute.xlu0 %4582  ;;  %v2256_v34 = vmax.f32 %v6054_v5, %v2185_v35  ;;  %v2257_v49 = vmax.f32 %v6058_v18, %v2187_v47 }
 0x260   : > { %v6118_v58 = vmax.f32 %v7067_v12, %v2014_v33  ;;  %v7068_v0 = vmax.f32 %v5599_v16, 0.0  ;;  %v4580_v59 = vunpack.i.h.bf16 %v4578_v17  ;;  %v4579_v4 = vunpack.i.l.bf16 %v4578_v17 }
 0x261   : > { %v4585_v22 = vunpack.i.h.bf16 %v4583_v11  ;;  %v2241_v10 = vmax.f32 %v6079_v42, %v2155_v7  ;;  %v4584_v39 = vunpack.i.l.bf16 %v4583_v11  ;;  %v2293_v31 = vpack.c.bf16 %v2261_v14, %v2260_v63  ;;  %4339 = vmatpush3.bf16.msra.mxu1 %v6018_v40 }
 0x262   : > { %v6125_v37 = vmax.f32 %v7068_v0, %v2015_v54  ;;  %v2284_v29 = vpack.c.bf16 %v2243_v45, %v2242_v9  ;;  %v2146_v56 = vrot.slane %v6118_v58, 1  ;;  %v2028_v36 = vsel %vm2009_vm8, %v4579_v4, %v4580_v59 }
 0x263   : > { %v2153_v18 = vsel %vm608_vm2, %v2150_v24, %v2152_v52  ;;  %v2181_v16 = vsel %vm608_vm2, %v2178_v27, %v2180_v50  ;;  %v7069_v32 = vmax.f32 %v5689_v53, 0.0  ;;  %v2029_v63 = vsel %vm2009_vm8, %v4584_v39, %v4585_v22  ;;  %4340 = vmatprep.subr.bf16.mxu1 %v2293_v31  ;;  %v4588_v14 = vpop.permute.xlu1 %4587  ;;  %v4593_v45 = vpop.permute.xlu0 %4592 }
 0x264   : > { %v2148_v44 = vrot.slane %v6125_v37, 1  ;;  %v2183_v40 = vsel %vm608_vm2, %v2180_v50, %v2182_v26  ;;  %v7070_v52 = vmax.f32 %v5696_v13, 0.0  ;;  %v4590_v51 = vunpack.i.h.bf16 %v4588_v14 }
 0x265   : > { %v6138_v42 = vmax.f32 %v7069_v32, %v2028_v36  ;;  %v4589_v60 = vunpack.i.l.bf16 %v4588_v14  ;;  %v2291_v23 = vpack.c.bf16 %v2257_v49, %v2256_v34  ;;  %v4595_v53 = vunpack.i.h.bf16 %v4593_v45  ;;  %4341 = vmatpush3.bf16.msra.mxu1 %v5992_v3 }
 0x266   : > { %v2093_v21 = vmax.f32 %v7070_v52, %v2029_v63  ;;  %v4594_v46 = vunpack.i.l.bf16 %v4593_v45  ;;  %v2240_v35 = vmax.f32 %v6084_v61, %v2153_v18  ;;  %v2254_v5 = vmax.f32 %v6093_v15, %v2181_v16  ;;  %4342 = vmatprep.subr.bf16.mxu1 %v6044_v6 }
 0x267   : > { %v2174_v28 = vrot.slane %v6138_v42, 1  ;;  %v2012_v2 = vsel %vm2009_vm8, %v4589_v60, %v4590_v51  ;;  %v2255_v26 = vmax.f32 %v6102_v55, %v2183_v40  ;;  %v2151_v13 = vsel %vm608_vm2, %v2148_v44, %v2150_v24  ;;  %v4598_v30 = vpop.permute.xlu1 %4597  ;;  %v4603_v61 = vpop.permute.xlu0 %4602 }
 0x268   : > { %v2176_v8 = vrot.slane %v2093_v21, 1  ;;  %v7071_v20 = vmax.f32 %v5576_v57, 0.0  ;;  %v2013_v48 = vsel %vm2009_vm8, %v4594_v46, %v4595_v53  ;;  %v2149_v9 = vsel %vm608_vm2, %v2146_v56, %v2148_v44  ;;  %v4790_v53 = vld [vmem:[%s6968_s3 + $0x14] ss:$8 sps:$4 sm:$0xff]   ;;  %v4792_v46 = vld [vmem:[%s6968_s3 + $0x10] ss:$8 sps:$4 sm:$0xff]  }
 0x269   : > { %v7072_v7 = vmax.f32 %v5586_v1, 0.0  ;;  %v4600_v50 = vunpack.i.h.bf16 %v4598_v30  ;;  %v4599_v33 = vunpack.i.l.bf16 %v4598_v30  ;;  %v4605_v12 = vunpack.i.h.bf16 %v4603_v61  ;;  %4343 = vmatpush3.bf16.msra.mxu1 %v2284_v29  ;;  %v4807_v30 = vld [vmem:[%s6968_s3 + $0x60] ss:$8 sps:$4 sm:$0xff]  }
 0x26a   : > { %v2076_v47 = vmax.f32 %v7071_v20, %v2012_v2  ;;  %v4604_v54 = vunpack.i.l.bf16 %v4603_v61  ;;  %v2283_v24 = vpack.c.bf16 %v2241_v10, %v2240_v35  ;;  %v2177_v57 = vsel %vm608_vm2, %v2174_v28, %v2176_v8  ;;  %4344 = vmatprep.subr.bf16.mxu1 %v2291_v23  ;;  %v4793_v35 = vld [vmem:[%s6968_s3 + $0x24] ss:$8 sps:$4 sm:$0xff]   ;;  %v4796_v2 = vld [vmem:[%s6968_s3 + $0x34] ss:$8 sps:$4 sm:$0xff]   ;;  %v4808_v61 = vld [vmem:[%s6969_s4 + $0x70] ss:$8 sps:$4 sm:$0xff]  }
 0x26b   : > { %v2077_v3 = vmax.f32 %v7072_v7, %v2013_v48  ;;  %v2239_v17 = vmax.f32 %v6125_v37, %v2151_v13  ;;  %v2027_v6 = vsel %vm2009_vm8, %v4599_v33, %v4600_v50  ;;  %v2179_v34 = vsel %vm608_vm2, %v2176_v8, %v2178_v27  ;;  %v4608_v59 = vpop.permute.xlu1 %4607  ;;  %v4795_v8 = vld [vmem:[%s6968_s3 + $0x20] ss:$8 sps:$4 sm:$0xff]   ;;  %v4802_v20 = vld [vmem:[%s6968_s3 + $0x54] ss:$8 sps:$4 sm:$0xff]   ;;  %v4805_v48 = vld [vmem:[%s6968_s3 + $0x64] ss:$8 sps:$4 sm:$0xff]  }
 0x26c   : > { %v2142_v55 = vrot.slane %v2076_v47, 1  ;;  %v7073_v1 = vmax.f32 %v5680_v25, 0.0  ;;  %v2010_v0 = vsel %vm2009_vm8, %v4604_v54, %v4605_v12  ;;  %v2290_v4 = vpack.c.bf16 %v2255_v26, %v2254_v5  ;;  %v4798_v5 = vld [vmem:[%s6968_s3 + $0x30] ss:$8 sps:$4 sm:$0xff]   ;;  %v4799_v26 = vld [vmem:[%s6968_s3 + $0x44] ss:$8 sps:$4 sm:$0xff]  }
 0x26d   : > { %v2144_v11 = vrot.slane %v2077_v3, 1  ;;  %v2238_v22 = vmax.f32 %v6118_v58, %v2149_v9  ;;  %v4610_v10 = vunpack.i.h.bf16 %v4608_v59  ;;  %v4609_v37 = vunpack.i.l.bf16 %v4608_v59  ;;  %4345 = vmatpush3.bf16.msra.mxu1 %v2283_v24  ;;  %v4801_v13 = vld [vmem:[%s6968_s3 + $0x40] ss:$8 sps:$4 sm:$0xff]   ;;  %v4810_v9 = vld [vmem:[%s6969_s4 + $0x74] ss:$8 sps:$4 sm:$0xff]  }
 0x26e   : > { %v2091_v49 = vmax.f32 %v7073_v1, %v2027_v6  ;;  %v2252_v39 = vmax.f32 %v6138_v42, %v2177_v57  ;;  %v2253_v31 = vmax.f32 %v2093_v21, %v2179_v34  ;;  %v7074_v27 = vmax.f32 %v5563_v41, 0.0  ;;  %4346 = vmatprep.subr.bf16.mxu1 %v2290_v4  ;;  %v4813_v7 = vld [vmem:[%s6969_s4 + $0x64] ss:$8 sps:$4 sm:$0xff]   ;;  %3088 = vmatprep.subr.bf16.mxu0 %v4810_v9  ;;  %v4816_v50 = vld [vmem:[%s6969_s4 + $0x54] ss:$8 sps:$4 sm:$0xff]  }
 0x26f   : > { %v2147_v29 = vsel %vm608_vm2, %v2144_v11, %v2146_v56  ;;  %v2145_v25 = vsel %vm608_vm2, %v2142_v55, %v2144_v11  ;;  %v2011_v18 = vsel %vm2009_vm8, %v4609_v37, %v4610_v10  ;;  %v7075_v16 = vmax.f32 %v7035_v38, 0.0  ;;  %3089 = vmatpush1.bf16.msra.mxu0 %v4808_v61  ;;  %v4826_v33 = vld [vmem:[%s6969_s4 + $0x170] ss:$8 sps:$4 sm:$0xff]   ;;  %v4828_v12 = vld [vmem:[%s6969_s4 + $0x174] ss:$8 sps:$4 sm:$0xff]  }
 0x270   : > { %v2172_v15 = vrot.slane %v2091_v49, 1  ;;  %v2074_v36 = vmax.f32 %v7074_v27, %v2010_v0  ;;  %v2282_v58 = vpack.c.bf16 %v2239_v17, %v2238_v22  ;;  %v2237_v42 = vmax.f32 %v2077_v3, %v2147_v29  ;;  %v4811_v3 = vld [vmem:[%s6969_s4 + $0x60] ss:$8 sps:$4 sm:$0xff]   ;;  %3090 = vmatprep.subr.bf16.mxu0 %v4813_v7  ;;  %v4814_v54 = vld [vmem:[%s6969_s4 + $0x50] ss:$8 sps:$4 sm:$0xff]  }
 0x271   : > { %v2075_v44 = vmax.f32 %v7075_v16, %v2011_v18  ;;  %v2236_v63 = vmax.f32 %v2076_v47, %v2145_v25  ;;  %v2289_v52 = vpack.c.bf16 %v2253_v31, %v2252_v39  ;;  %v4804_v47 = vld [vmem:[%s6968_s3 + $0x50] ss:$8 sps:$4 sm:$0xff]   ;;  %v4832_v24 = vld [vmem:[%s6969_s4 + $0x160] ss:$8 sps:$4 sm:$0xff]   ;;  %v4819_v57 = vld [vmem:[%s6969_s4 + $0x44] ss:$8 sps:$4 sm:$0xff]  }
 0x272   : > { %v2173_v32 = vsel %vm608_vm2, %v2170_v62, %v2172_v15  ;;  %v2175_v56 = vsel %vm608_vm2, %v2172_v15, %v2174_v28  ;;  %v2139_v45 = vrot.slane %v2074_v36, 1  ;;  %4347 = vmatpush3.bf16.msra.mxu1 %v2282_v58  ;;  %v4840_v17 = vld [vmem:[%s6969_s4 + $0x154] ss:$8 sps:$4 sm:$0xff]   ;;  %v4817_v11 = vld [vmem:[%s6969_s4 + $0x40] ss:$8 sps:$4 sm:$0xff]  }
 0x273   : > { %v2250_v41 = vmax.f32 %v5957_v43, %v2173_v32  ;;  %v2251_v14 = vmax.f32 %v2091_v49, %v2175_v56  ;;  %v2140_v40 = vrot.slane %v2075_v44, 1  ;;  %4348 = vmatprep.subr.bf16.mxu1 %v2289_v52  ;;  %v2281_v23 = vpack.c.bf16 %v2237_v42, %v2236_v63  ;;  %v4787_v43 = vld [vmem:[%s6968_s3] ss:$8 sps:$4 sm:$0xff]   ;;  %3091 = vmatpush1.bf16.msra.mxu0 %v4811_v3  ;;  %v4838_v6 = vld [vmem:[%s6969_s4 + $0x150] ss:$8 sps:$4 sm:$0xff]  }
 0x274   : > { %3092 = vmatprep.subr.bf16.mxu0 %v4816_v50  ;;  %v4822_v34 = vld [vmem:[%s6969_s4 + $0x34] ss:$8 sps:$4 sm:$0xff]   ;;  %v4846_v1 = vld [vmem:[%s6969_s4 + $0x144] ss:$8 sps:$4 sm:$0xff]   ;;  %v4820_v49 = vld [vmem:[%s6969_s4 + $0x30] ss:$8 sps:$4 sm:$0xff]  }
 0x275   : > { %v2143_v38 = vsel %vm608_vm2, %v2140_v40, %v2142_v55  ;;  %v2288_v21 = vpack.c.bf16 %v2251_v14, %v2250_v41  ;;  %v2141_v51 = vsel %vm608_vm2, %v2139_v45, %v2140_v40  ;;  %v4834_v55 = vld [vmem:[%s6969_s4 + $0x164] ss:$8 sps:$4 sm:$0xff]   ;;  %v4844_v0 = vld [vmem:[%s6969_s4 + $0x140] ss:$8 sps:$4 sm:$0xff]   ;;  %v4852_v4 = vld [vmem:[%s6969_s4 + $0x134] ss:$8 sps:$4 sm:$0xff]  }
 0x276   : > { %v2235_v60 = vmax.f32 %v2075_v44, %v2143_v38  ;;  %v2234_v62 = vmax.f32 %v2074_v36, %v2141_v51  ;;  %4349 = vmatpush3.bf16.msra.mxu1 %v2281_v23  ;;  %v4825_v59 = vld [vmem:[%s6969_s4 + $0x24] ss:$8 sps:$4 sm:$0xff]   ;;  %v4823_v22 = vld [vmem:[%s6969_s4 + $0x20] ss:$8 sps:$4 sm:$0xff]   ;;  %v4850_v10 = vld [vmem:[%s6969_s4 + $0x130] ss:$8 sps:$4 sm:$0xff]  }
 0x277   : > { %4350 = vmatprep.subr.bf16.mxu1 %v2288_v21  ;;  %3093 = vmatpush1.bf16.msra.mxu0 %v4814_v54  ;;  %v4831_v37 = vld [vmem:[%s6969_s4 + $0x14] ss:$8 sps:$4 sm:$0xff]   ;;  %v4858_v39 = vld [vmem:[%s6969_s4 + $0x124] ss:$8 sps:$4 sm:$0xff]   ;;  %v4829_v31 = vld [vmem:[%s6969_s4 + $0x10] ss:$8 sps:$4 sm:$0xff]  }
 0x278   : > { %v2280_v28 = vpack.c.bf16 %v2235_v60, %v2234_v62  ;;  %3094 = vmatprep.subr.bf16.mxu0 %v4819_v57  ;;  %v4856_v29 = vld [vmem:[%s6969_s4 + $0x120] ss:$8 sps:$4 sm:$0xff]   ;;  %v4837_v15 = vld [vmem:[%s6969_s4 + $0x4] ss:$8 sps:$4 sm:$0xff]   ;;  %v4864_v27 = vld [vmem:[%s6969_s4 + $0x114] ss:$8 sps:$4 sm:$0xff]  }
 0x279   : > { %v4835_v36 = vld [vmem:[%s6969_s4] ss:$8 sps:$4 sm:$0xff]   ;;  %v4862_v25 = vld [vmem:[%s6969_s4 + $0x110] ss:$8 sps:$4 sm:$0xff]   ;;  %v4843_v18 = vld [vmem:[%s6969_s4 + $0xf4] ss:$8 sps:$4 sm:$0xff]  }
 0x27a   : > { %4351 = vmatpush3.bf16.msra.mxu1 %v2280_v28  ;;  %v4870_v16 = vld [vmem:[%s6969_s4 + $0x104] ss:$8 sps:$4 sm:$0xff]   ;;  %v4841_v58 = vld [vmem:[%s6969_s4 + $0xf0] ss:$8 sps:$4 sm:$0xff]   ;;  %v4868_v32 = vld [vmem:[%s6969_s4 + $0x100] ss:$8 sps:$4 sm:$0xff]  }
 0x27b   : > { %3191 = vmatprep.subr.bf16.mxu1 %v4828_v12  ;;  %3095 = vmatpush1.bf16.msra.mxu0 %v4817_v11  ;;  %v2788_v44 = vld [vmem:[%s6969_s4 + $0x1a0] sm:$0x33]  ;;  %v4855_v14 = vld [vmem:[%s6969_s4 + $0xd4] ss:$8 sps:$4 sm:$0xff]   ;;  %v4853_v40 = vld [vmem:[%s6969_s4 + $0xd0] ss:$8 sps:$4 sm:$0xff]  }
 0x27c   : > { %3096 = vmatprep.subr.bf16.mxu0 %v4822_v34  ;;  %v4849_v56 = vld [vmem:[%s6969_s4 + $0xe4] ss:$8 sps:$4 sm:$0xff]   ;;  %v4267_v42 = vcombine.high %v2788_v44, %v2788_v44  ;;  %v4266_v63 = vcombine.low %v2788_v44, %v2788_v44  ;;  %v4847_v41 = vld [vmem:[%s6969_s4 + $0xe0] ss:$8 sps:$4 sm:$0xff]   ;;  %v4867_v21 = vld [vmem:[%s6969_s4 + $0xb4] ss:$8 sps:$4 sm:$0xff]  }
 0x27d   : > { %2421 = vmatmul.mubr.bf16.vlgmr.msra.gmra.mxu1 %v4787_v43  ;;  %v4861_v52 = vld [vmem:[%s6969_s4 + $0xc4] ss:$8 sps:$4 sm:$0xff]   ;;  %v4859_v38 = vld [vmem:[%s6969_s4 + $0xc0] ss:$8 sps:$4 sm:$0xff]   ;;  %v4865_v51 = vld [vmem:[%s6969_s4 + $0xb0] ss:$8 sps:$4 sm:$0xff]  }
 0x27e   : > { %4208 = vmatprep.mubr.msk.bf16.mxu1 %vm2359_vm7, %v4790_v53  ;;  %3192 = vmatpush1.bf16.msra.mxu1 %v4826_v33  ;;  %v3083_v45 = vsel %vm3081_vm10, %v4266_v63, 0  ;;  %v4873_v60 = vld [vmem:[%s6969_s4 + $0xa4] ss:$8 sps:$4 sm:$0xff]   ;;  %v4871_v23 = vld [vmem:[%s6969_s4 + $0xa0] ss:$8 sps:$4 sm:$0xff]  }
 0x27f   : > { %3193 = vmatprep.subr.bf16.mxu1 %v4834_v55  ;;  %3097 = vmatpush1.bf16.msra.mxu0 %v4820_v49  ;;  %v4878_v28 = vld [vmem:[%s6969_s4 + $0x94] ss:$8 sps:$4 sm:$0xff]   ;;  %v4876_v53 = vld [vmem:[%s6969_s4 + $0x90] ss:$8 sps:$4 sm:$0xff]   ;;  %v4884_v9 = vld [vmem:[%s6969_s4 + $0x84] ss:$8 sps:$4 sm:$0xff]  }
 0x280   : > { %3098 = vmatprep.subr.bf16.mxu0 %v4825_v59  ;;  %v4887_v7 = vld [vmem:[%s6969_s4 + $0x184] ss:$8 sps:$4 sm:$0xff]   ;;  %v4885_v3 = vld [vmem:[%s6969_s4 + $0x180] ss:$8 sps:$4 sm:$0xff]  }
 0x282   : > { %3194 = vmatpush1.bf16.msra.mxu1 %v4832_v24 }
 0x283   : > { %3195 = vmatprep.subr.bf16.mxu1 %v4840_v17  ;;  %3099 = vmatpush1.bf16.msra.mxu0 %v4823_v22 }
 0x284   : > { %3100 = vmatprep.subr.bf16.mxu0 %v4831_v37 }
 0x285   : > { %2429 = vmatmul.mubr.bf16.gmra.mxu1 %v4792_v46 }
 0x286   : > { %4209 = vmatprep.mubr.msk.bf16.mxu1 %vm2359_vm7, %v4793_v35  ;;  %3196 = vmatpush1.bf16.msra.mxu1 %v4838_v6 }
 0x287   : > { %3197 = vmatprep.subr.bf16.mxu1 %v4846_v1  ;;  %3101 = vmatpush1.bf16.msra.mxu0 %v4829_v31 }
 0x288   : > { %3102 = vmatprep.subr.bf16.mxu0 %v4837_v15 }
 0x28a   : > { %3198 = vmatpush1.bf16.msra.mxu1 %v4844_v0 }
 0x28b   : > { %3199 = vmatprep.subr.bf16.mxu1 %v4852_v4  ;;  %3103 = vmatpush1.bf16.msra.mxu0 %v4835_v36 }
 0x28c   : > { %3104 = vmatprep.subr.bf16.mxu0 %v4843_v18 }
 0x28d   : > { %2437 = vmatmul.mubr.bf16.gmra.mxu1 %v4795_v8 }
 0x28e   : > { %4210 = vmatprep.mubr.msk.bf16.mxu1 %vm2359_vm7, %v4796_v2  ;;  %3200 = vmatpush1.bf16.msra.mxu1 %v4850_v10 }
 0x28f   : > { %3201 = vmatprep.subr.bf16.mxu1 %v4858_v39  ;;  %3105 = vmatpush2.bf16.msra.mxu0 %v4841_v58 }
 0x290   : > { %3106 = vmatprep.subr.bf16.mxu0 %v4849_v56 }
 0x292   : > { %3202 = vmatpush1.bf16.msra.mxu1 %v4856_v29 }
 0x293   : > { %3203 = vmatprep.subr.bf16.mxu1 %v4864_v27  ;;  %3107 = vmatpush2.bf16.msra.mxu0 %v4847_v41 }
 0x294   : > { %3108 = vmatprep.subr.bf16.mxu0 %v4855_v14 }
 0x295   : > { %2445 = vmatmul.mubr.bf16.gmra.mxu1 %v4798_v5 }
 0x296   : > { %4211 = vmatprep.mubr.msk.bf16.mxu1 %vm2359_vm7, %v4799_v26  ;;  %3204 = vmatpush1.bf16.msra.mxu1 %v4862_v25  ;;  %v4881_v26 = vld [vmem:[%s6969_s4 + $0x194] ss:$8 sps:$4 sm:$0xff]  }
 0x297   : > { %3205 = vmatprep.subr.bf16.mxu1 %v4870_v16  ;;  %3109 = vmatpush2.bf16.msra.mxu0 %v4853_v40 }
 0x298   : > { %3110 = vmatprep.subr.bf16.mxu0 %v4861_v52 }
 0x29a   : > { %3206 = vmatpush1.bf16.msra.mxu1 %v4868_v32 }
 0x29b   : > { %4268 = vmatprep.subr.msk.bf16.mxu1 %vm3081_vm10, %v4267_v42  ;;  %3111 = vmatpush2.bf16.msra.mxu0 %v4859_v38 }
 0x29c   : > { %3112 = vmatprep.subr.bf16.mxu0 %v4867_v21 }
 0x29d   : > { %2453 = vmatmul.mubr.bf16.gmra.mxu1 %v4801_v13 }
 0x29e   : > { %4212 = vmatprep.mubr.msk.bf16.mxu1 %vm2359_vm7, %v4802_v20  ;;  %3218 = vmatpush2.bf16.msra.mxu1 %v3083_v45  ;;  %v4879_v20 = vld [vmem:[%s6969_s4 + $0x190] ss:$8 sps:$4 sm:$0xff]  }
 0x29f   : > { %3113 = vmatpush2.bf16.msra.mxu0 %v4865_v51  ;;  %3219 = vmatprep.subr.bf16.mxu1 %v4881_v26 }
 0x2a0   : > { %3114 = vmatprep.subr.bf16.mxu0 %v4873_v60 }
 0x2a2   : > { %3220 = vmatpush2.bf16.msra.mxu1 %v4879_v20 }
 0x2a3   : > { %3115 = vmatpush2.bf16.msra.mxu0 %v4871_v23  ;;  %3221 = vmatprep.subr.bf16.mxu1 %v4887_v7 }
 0x2a4   : > { %3116 = vmatprep.subr.bf16.mxu0 %v4878_v28 }
 0x2a5   : > { %2461 = vmatmul.mubr.bf16.gmra.mxu1 %v4804_v47 }
 0x2a6   : > { %4213 = vmatprep.mubr.msk.bf16.mxu1 %vm2359_vm7, %v4805_v48  ;;  %v4882_v48 = vld [vmem:[%s6969_s4 + $0x80] ss:$8 sps:$4 sm:$0xff]   ;;  %3222 = vmatpush2.bf16.msra.mxu1 %v4885_v3 }
 0x2a7   : > { %3117 = vmatpush2.bf16.msra.mxu0 %v4876_v53 }
 0x2a8   : > { %3118 = vmatprep.subr.bf16.mxu0 %v4884_v9 }
 0x2ab   : > { %3119 = vmatpush2.bf16.msra.mxu0 %v4882_v48 }
 0x2ad   : > { %2469 = vmatmul.mubr.bf16.gmra.mxu1 %v4807_v30 }
 0x33d   : > { %v4352_v62 = vpop.f32.mrf.mxu1 }
 0x33f   : > { %v4353_v43 = vpop.f32.mrf.mxu1 }
 0x340   : > { %v4354_v8 = vadd.f32 %v4353_v43, %v4352_v62 }
 0x341   : > { %v4355_v46 = vpop.f32.mrf.mxu1 }
 0x343   : > { %v4356_v35 = vpop.f32.mrf.mxu1 }
 0x344   : > { %v4357_v2 = vadd.f32 %v4356_v35, %v4355_v46 }
 0x345   : > { %v4358_v5 = vpop.f32.mrf.mxu1 }
 0x346   : > { %v6374_v13 = vpack.c.bf16 %v4357_v2, %v4354_v8 }
 0x347   : > { %v4359_v47 = vpop.f32.mrf.mxu1 }
 0x348   : > { %v2487_v61 = vshll.u32 %v6374_v13, 16  ;;  %v4360_v33 = vadd.f32 %v4359_v47, %v4358_v5  ;;  %v2485_v54 = vshrl.u32 %v6374_v13, 16  ;;  %v2560_v6 = vrot.slane %v6374_v13, 1 }
 0x349   : > { %v4361_v30 = vpop.f32.mrf.mxu1  ;;  %v2628_v15 = vrot.slane %v6374_v13, 2 }
 0x34a   : > { %v2489_v24 = vrot.slane %v2487_v61, 1  ;;  %v2587_v59 = vrot.slane %v2485_v54, 1  ;;  %v2588_v4 = vrot.slane %v2487_v61, 2 }
 0x34b   : > { %v4362_v50 = vpop.f32.mrf.mxu1 }
 0x34c   : > { %v4363_v12 = vadd.f32 %v4362_v50, %v4361_v30  ;;  %v2490_v0 = vor.u32 %v2489_v24, %v2485_v54  ;;  %v2589_v58 = vor.u32 %v2588_v4, %v2587_v59 }
 0x34d   : > { %v4364_v55 = vpop.f32.mrf.mxu1 }
 0x34e   : > { %v6393_v57 = vpack.c.bf16 %v4363_v12, %v4360_v33 }
 0x34f   : > { %v4365_v17 = vpop.f32.mrf.mxu1 }
 0x350   : > { %v2492_v11 = vshll.u32 %v6393_v57, 16  ;;  %v2561_v34 = vrot.slane %v6393_v57, 1  ;;  %v2496_v1 = vshrl.u32 %v6393_v57, 16  ;;  %v2629_v22 = vrot.slane %v6393_v57, 2 }
 0x351   : > { %v4367_v49 = vpop.f32.mrf.mxu1  ;;  %v4366_v27 = vadd.f32 %v4365_v17, %v4364_v55 }
 0x352   : > { %v2494_v10 = vrot.slane %v2492_v11, 1  ;;  %v2562_v37 = vsel %vm608_vm2, %v2560_v6, %v2561_v34  ;;  %v2590_v39 = vrot.slane %v2496_v1, 1  ;;  %v2591_v31 = vrot.slane %v2492_v11, 2 }
 0x353   : > { %v4368_v29 = vpop.f32.mrf.mxu1  ;;  %2573 = vrot.lane.b32.xlu1 %v2562_v37, %s4987_s13  ;;  %v2630_v32 = vsel %vm768_vm4, %v2628_v15, %v2629_v22 }
 0x354   : > { %v4369_v36 = vadd.f32 %v4368_v29, %v4367_v49  ;;  %v2495_v25 = vsel %vm448_vm0, %v2490_v0, %v2494_v10  ;;  %v2592_v18 = vor.u32 %v2591_v31, %v2590_v39  ;;  %v2498_v40 = vor.u32 %v2496_v1, %v2494_v10 }
 0x355   : > { %v4370_v16 = vpop.f32.mrf.mxu1  ;;  %2539 = vrot.lane.b32.xlu0 %v2495_v25, %s4988_s12 }
 0x356   : > { %v6405_v44 = vpack.c.bf16 %v4369_v36, %v4366_v27  ;;  %v2593_v42 = vsel %vm672_vm1, %v2589_v58, %v2592_v18 }
 0x357   : > { %v4371_v56 = vpop.f32.mrf.mxu1  ;;  %2641 = vrot.lane.b32.xlu1 %v2630_v32, %s4989_s16 }
 0x358   : > { %v2500_v63 = vshll.u32 %v6405_v44, 16  ;;  %v2563_v41 = vrot.slane %v6405_v44, 1  ;;  %v2504_v14 = vshrl.u32 %v6405_v44, 16  ;;  %v2631_v52 = vrot.slane %v6405_v44, 2 }
 0x359   : > { %v4373_v45 = vpop.f32.mrf.mxu1  ;;  %2614 = vrot.lane.b32.xlu0 %v2593_v42, %s4990_s17  ;;  %v4372_v62 = vadd.f32 %v4371_v56, %v4370_v16 }
 0x35a   : > { %v2502_v38 = vrot.slane %v2500_v63, 1  ;;  %v2564_v21 = vsel %vm608_vm2, %v2561_v34, %v2563_v41  ;;  %v2594_v51 = vrot.slane %v2504_v14, 1  ;;  %v2595_v60 = vrot.slane %v2500_v63, 2 }
 0x35b   : > { %v4374_v23 = vpop.f32.mrf.mxu1  ;;  %2575 = vrot.lane.b32.xlu1 %v2564_v21, %s4987_s13  ;;  %v2632_v8 = vsel %vm768_vm4, %v2629_v22, %v2631_v52 }
 0x35c   : > { %v4375_v28 = vadd.f32 %v4374_v23, %v4373_v45  ;;  %v2503_v43 = vsel %vm448_vm0, %v2498_v40, %v2502_v38  ;;  %v2596_v53 = vor.u32 %v2595_v60, %v2594_v51  ;;  %v2506_v30 = vor.u32 %v2504_v14, %v2502_v38 }
 0x35d   : > { %v4376_v46 = vpop.f32.mrf.mxu1  ;;  %2541 = vrot.lane.b32.xlu0 %v2503_v43, %s4988_s12 }
 0x35e   : > { %v6419_v35 = vpack.c.bf16 %v4375_v28, %v4372_v62  ;;  %v2597_v5 = vsel %vm672_vm1, %v2592_v18, %v2596_v53 }
 0x35f   : > { %v4377_v2 = vpop.f32.mrf.mxu1  ;;  %2643 = vrot.lane.b32.xlu1 %v2632_v8, %s4989_s16 }
 0x360   : > { %v2508_v26 = vshll.u32 %v6419_v35, 16  ;;  %v2565_v20 = vrot.slane %v6419_v35, 1  ;;  %v2512_v47 = vshrl.u32 %v6419_v35, 16  ;;  %v2633_v61 = vrot.slane %v6419_v35, 2 }
 0x361   : > { %v4379_v48 = vpop.f32.mrf.mxu1  ;;  %2616 = vrot.lane.b32.xlu0 %v2597_v5, %s4990_s17  ;;  %v4378_v12 = vadd.f32 %v4377_v2, %v4376_v46 }
 0x362   : > { %v2510_v9 = vrot.slane %v2508_v26, 1  ;;  %v2566_v7 = vsel %vm608_vm2, %v2563_v41, %v2565_v20  ;;  %v2598_v3 = vrot.slane %v2512_v47, 1  ;;  %v2599_v50 = vrot.slane %v2508_v26, 2 }
 0x363   : > { %v4380_v33 = vpop.f32.mrf.mxu1  ;;  %2577 = vrot.lane.b32.xlu1 %v2566_v7, %s4987_s13  ;;  %v2634_v6 = vsel %vm768_vm4, %v2631_v52, %v2633_v61 }
 0x364   : > { %v4381_v55 = vadd.f32 %v4380_v33, %v4379_v48  ;;  %v2511_v54 = vsel %vm448_vm0, %v2506_v30, %v2510_v9  ;;  %v2600_v24 = vor.u32 %v2599_v50, %v2598_v3  ;;  %v2514_v22 = vor.u32 %v2512_v47, %v2510_v9 }
 0x365   : > { %v4382_v17 = vpop.f32.mrf.mxu1  ;;  %2543 = vrot.lane.b32.xlu0 %v2511_v54, %s4988_s12 }
 0x366   : > { %v6433_v11 = vpack.c.bf16 %v4381_v55, %v4378_v12  ;;  %v2601_v1 = vsel %vm672_vm1, %v2596_v53, %v2600_v24 }
 0x367   : > { %v4383_v34 = vpop.f32.mrf.mxu1  ;;  %2645 = vrot.lane.b32.xlu1 %v2634_v6, %s4989_s16 }
 0x368   : > { %v2516_v49 = vshll.u32 %v6433_v11, 16  ;;  %v2567_v0 = vrot.slane %v6433_v11, 1  ;;  %v2520_v59 = vshrl.u32 %v6433_v11, 16  ;;  %v2635_v10 = vrot.slane %v6433_v11, 2 }
 0x369   : > { %v4385_v4 = vpop.f32.mrf.mxu1  ;;  %2618 = vrot.lane.b32.xlu0 %v2601_v1, %s4990_s17  ;;  %v4384_v27 = vadd.f32 %v4383_v34, %v4382_v17 }
 0x36a   : > { %v2518_v37 = vrot.slane %v2516_v49, 1  ;;  %v2568_v39 = vsel %vm608_vm2, %v2565_v20, %v2567_v0  ;;  %v2602_v31 = vrot.slane %v2520_v59, 1  ;;  %v2603_v29 = vrot.slane %v2516_v49, 2 }
 0x36b   : > { %v4386_v15 = vpop.f32.mrf.mxu1  ;;  %2579 = vrot.lane.b32.xlu1 %v2568_v39, %s4987_s13  ;;  %v2636_v32 = vsel %vm768_vm4, %v2633_v61, %v2635_v10 }
 0x36c   : > { %v4387_v36 = vadd.f32 %v4386_v15, %v4385_v4  ;;  %v2519_v25 = vsel %vm448_vm0, %v2514_v22, %v2518_v37  ;;  %v2604_v18 = vor.u32 %v2603_v29, %v2602_v31  ;;  %v2522_v40 = vor.u32 %v2520_v59, %v2518_v37 }
 0x36d   : > { %v4388_v16 = vpop.f32.mrf.mxu1  ;;  %2545 = vrot.lane.b32.xlu0 %v2519_v25, %s4988_s12 }
 0x36e   : > { %v6447_v58 = vpack.c.bf16 %v4387_v36, %v4384_v27  ;;  %v2605_v42 = vsel %vm672_vm1, %v2600_v24, %v2604_v18 }
 0x36f   : > { %v4389_v56 = vpop.f32.mrf.mxu1  ;;  %2647 = vrot.lane.b32.xlu1 %v2636_v32, %s4989_s16 }
 0x370   : > { %v2524_v63 = vshll.u32 %v6447_v58, 16  ;;  %v2569_v41 = vrot.slane %v6447_v58, 1  ;;  %v2528_v14 = vshrl.u32 %v6447_v58, 16  ;;  %v2637_v52 = vrot.slane %v6447_v58, 2 }
 0x371   : > { %v4391_v45 = vpop.f32.mrf.mxu1  ;;  %2620 = vrot.lane.b32.xlu0 %v2605_v42, %s4990_s17  ;;  %v4390_v62 = vadd.f32 %v4389_v56, %v4388_v16 }
 0x372   : > { %v2526_v38 = vrot.slane %v2524_v63, 1  ;;  %v2570_v21 = vsel %vm608_vm2, %v2567_v0, %v2569_v41  ;;  %v2606_v51 = vrot.slane %v2528_v14, 1  ;;  %v2607_v60 = vrot.slane %v2524_v63, 2 }
 0x373   : > { %v4392_v23 = vpop.f32.mrf.mxu1  ;;  %2581 = vrot.lane.b32.xlu1 %v2570_v21, %s4987_s13  ;;  %v2638_v8 = vsel %vm768_vm4, %v2635_v10, %v2637_v52 }
 0x374   : > { %v4393_v28 = vadd.f32 %v4392_v23, %v4391_v45  ;;  %v2527_v43 = vsel %vm448_vm0, %v2522_v40, %v2526_v38  ;;  %v2608_v53 = vor.u32 %v2607_v60, %v2606_v51  ;;  %v2530_v47 = vor.u32 %v2528_v14, %v2526_v38 }
 0x375   : > { %2547 = vrot.lane.b32.xlu0 %v2527_v43, %s4988_s12 }
 0x376   : > { %v6461_v46 = vpack.c.bf16 %v4393_v28, %v4390_v62  ;;  %v2609_v2 = vsel %vm672_vm1, %v2604_v18, %v2608_v53 }
 0x377   : > { %2649 = vrot.lane.b32.xlu1 %v2638_v8, %s4989_s16 }
 0x378   : > { %v2532_v5 = vshll.u32 %v6461_v46, 16  ;;  %v2571_v26 = vrot.slane %v6461_v46, 1  ;;  %v2536_v20 = vshrl.u32 %v6461_v46, 16  ;;  %v2639_v48 = vrot.slane %v6461_v46, 2 }
 0x379   : > { %2622 = vrot.lane.b32.xlu0 %v2609_v2, %s4990_s17 }
 0x37a   : > { %v2534_v30 = vrot.slane %v2532_v5, 1  ;;  %v2572_v61 = vsel %vm608_vm2, %v2569_v41, %v2571_v26  ;;  %v2610_v9 = vrot.slane %v2536_v20, 1  ;;  %v2611_v7 = vrot.slane %v2532_v5, 2 }
 0x37b   : > { %2583 = vrot.lane.b32.xlu1 %v2572_v61, %s4987_s13  ;;  %v2640_v33 = vsel %vm768_vm4, %v2637_v52, %v2639_v48  ;;  %vm3949_vm4 = vcmask 130048  }
 0x37c   : > { %v2535_v3 = vsel %vm448_vm0, %v2530_v47, %v2534_v30  ;;  %v2612_v50 = vor.u32 %v2611_v7, %v2610_v9  ;;  %v2538_v55 = vor.u32 %v2536_v20, %v2534_v30  ;;  %vm4993_vm0 = vmmov 0  }
 0x37d   : > { %2549 = vrot.lane.b32.xlu0 %v2535_v3, %s4988_s12  ;;  %v7076_v3 = vld [vmem:[#allocation2_spill] sm:$0xff] }
 0x37e   : > { %v2613_v12 = vsel %vm672_vm1, %v2608_v53, %v2612_v50  ;;  %vm3406_vm1 = vcmask 392192  }
 0x37f   : > { %2651 = vrot.lane.b32.xlu1 %v2640_v33, %s4989_s16  ;;  %v7077_v33 = vld [vmem:[#allocation3_spill] sm:$0xff] }
 0x381   : > { %2624 = vrot.lane.b32.xlu0 %v2613_v12, %s4990_s17 }
 0x383   : > { %2585 = vrot.lane.b32.xlu1 %v2571_v26, %s4987_s13  ;;  %s4994_s13 = smov 112  }
 0x385   : > { %2551 = vrot.lane.b32.xlu0 %v2538_v55, %s4988_s12 }
 0x387   : > { %2653 = vrot.lane.b32.xlu1 %v2639_v48, %s4989_s16 }
 0x389   : > { %2626 = vrot.lane.b32.xlu0 %v2612_v50, %s4990_s17 }
 0x3c5   : > { %v2574_v54 = vpop.permute.xlu1 %2573 }
 0x3c7   : > { %v2540_v24 = vpop.permute.xlu0 %2539 }
 0x3c8   : > { %v2679_v6 = vsel %vm2677_vm12, %v2540_v24, %v2574_v54  ;;  %v2657_v0 = vsel %vm2655_vm15, %v6374_v13, %v2540_v24 }
 0x3c9   : > { %v2642_v17 = vpop.permute.xlu1 %2641 }
 0x3ca   : > { %4269 = vmatprep.mubr.msk.bf16.mxu1 %vm3066_vm11, %v2642_v17 }
 0x3cb   : > { %v2615_v34 = vpop.permute.xlu0 %2614 }
 0x3cc   : > { %v2694_v1 = vsel %vm2692_vm13, %v2679_v6, %v2615_v34  ;;  %v2716_v49 = vsel %vm2714_vm14, %v2615_v34, %v2642_v17 }
 0x3cd   : > { %3120 = vmatprep.mubr.bf16.mxu0 %v2694_v1  ;;  %3224 = vmatmul.mubr.bf16.vlgmr.msra.gmra.mxu1 %v2716_v49  ;;  %v2576_v59 = vpop.permute.xlu1 %2575 }
 0x3ce   : > { %3121 = vmatmul.mubr.bf16.vlgmr.msra.gmra.mxu0 %v2657_v0 }
 0x3cf   : > { %v2542_v4 = vpop.permute.xlu0 %2541 }
 0x3d0   : > { %v2681_v10 = vsel %vm2677_vm12, %v2542_v4, %v2576_v59  ;;  %v2660_v29 = vsel %vm2655_vm15, %v6393_v57, %v2542_v4 }
 0x3d1   : > { %v2644_v22 = vpop.permute.xlu1 %2643 }
 0x3d2   : > { %4270 = vmatprep.mubr.msk.bf16.mxu1 %vm3066_vm11, %v2644_v22 }
 0x3d3   : > { %v2617_v37 = vpop.permute.xlu0 %2616 }
 0x3d4   : > { %v2697_v39 = vsel %vm2692_vm13, %v2681_v10, %v2617_v37  ;;  %v2719_v31 = vsel %vm2714_vm14, %v2617_v37, %v2644_v22 }
 0x3d5   : > { %3130 = vmatprep.mubr.bf16.mxu0 %v2697_v39  ;;  %3234 = vmatmul.mubr.bf16.gmra.mxu1 %v2719_v31  ;;  %v2578_v13 = vpop.permute.xlu1 %2577 }
 0x3d6   : > { %3131 = vmatmul.mubr.bf16.gmra.mxu0 %v2660_v29 }
 0x3d7   : > { %v2544_v15 = vpop.permute.xlu0 %2543 }
 0x3d8   : > { %v2683_v36 = vsel %vm2677_vm12, %v2544_v15, %v2578_v13  ;;  %v2663_v32 = vsel %vm2655_vm15, %v6405_v44, %v2544_v15 }
 0x3d9   : > { %v2646_v27 = vpop.permute.xlu1 %2645 }
 0x3da   : > { %4271 = vmatprep.mubr.msk.bf16.mxu1 %vm3066_vm11, %v2646_v27 }
 0x3db   : > { %v2619_v25 = vpop.permute.xlu0 %2618 }
 0x3dc   : > { %v2700_v18 = vsel %vm2692_vm13, %v2683_v36, %v2619_v25  ;;  %v2722_v16 = vsel %vm2714_vm14, %v2619_v25, %v2646_v27 }
 0x3dd   : > { %3140 = vmatprep.mubr.bf16.mxu0 %v2700_v18  ;;  %3244 = vmatmul.mubr.bf16.gmra.mxu1 %v2722_v16  ;;  %v2580_v57 = vpop.permute.xlu1 %2579 }
 0x3de   : > { %3141 = vmatmul.mubr.bf16.gmra.mxu0 %v2663_v32 }
 0x3df   : > { %v2546_v56 = vpop.permute.xlu0 %2545 }
 0x3e0   : > { %v2685_v63 = vsel %vm2677_vm12, %v2546_v56, %v2580_v57  ;;  %v2666_v40 = vsel %vm2655_vm15, %v6419_v35, %v2546_v56 }
 0x3e1   : > { %v2648_v42 = vpop.permute.xlu1 %2647 }
 0x3e2   : > { %4272 = vmatprep.mubr.msk.bf16.mxu1 %vm3066_vm11, %v2648_v42 }
 0x3e3   : > { %v2621_v41 = vpop.permute.xlu0 %2620 }
 0x3e4   : > { %v2703_v14 = vsel %vm2692_vm13, %v2685_v63, %v2621_v41  ;;  %v2725_v45 = vsel %vm2714_vm14, %v2621_v41, %v2648_v42 }
 0x3e5   : > { %3150 = vmatprep.mubr.bf16.mxu0 %v2703_v14  ;;  %3254 = vmatmul.mubr.bf16.gmra.mxu1 %v2725_v45  ;;  %v2582_v44 = vpop.permute.xlu1 %2581 }
 0x3e6   : > { %3151 = vmatmul.mubr.bf16.gmra.mxu0 %v2666_v40 }
 0x3e7   : > { %v2548_v52 = vpop.permute.xlu0 %2547 }
 0x3e8   : > { %v2687_v21 = vsel %vm2677_vm12, %v2548_v52, %v2582_v44  ;;  %v2669_v62 = vsel %vm2655_vm15, %v6433_v11, %v2548_v52 }
 0x3e9   : > { %v2650_v38 = vpop.permute.xlu1 %2649 }
 0x3ea   : > { %4273 = vmatprep.mubr.msk.bf16.mxu1 %vm3066_vm11, %v2650_v38 }
 0x3eb   : > { %v2623_v51 = vpop.permute.xlu0 %2622 }
 0x3ec   : > { %v2706_v60 = vsel %vm2692_vm13, %v2687_v21, %v2623_v51  ;;  %v2728_v23 = vsel %vm2714_vm14, %v2623_v51, %v2650_v38 }
 0x3ed   : > { %3160 = vmatprep.mubr.bf16.mxu0 %v2706_v60  ;;  %3264 = vmatmul.mubr.bf16.gmra.mxu1 %v2728_v23  ;;  %v2584_v35 = vpop.permute.xlu1 %2583 }
 0x3ee   : > { %3161 = vmatmul.mubr.bf16.gmra.mxu0 %v2669_v62 }
 0x3ef   : > { %v2550_v28 = vpop.permute.xlu0 %2549 }
 0x3f0   : > { %v2689_v53 = vsel %vm2677_vm12, %v2550_v28, %v2584_v35  ;;  %v2672_v26 = vsel %vm2655_vm15, %v6447_v58, %v2550_v28  ;;  %v2789_v58 = vld [vmem:[%s6970_s5] sm:$0x3] }
 0x3f1   : > { %v2652_v43 = vpop.permute.xlu1 %2651  ;;  %v6529_v50 = vrot.slane %v2789_v58, %v7076_v3  ;;  %v6532_v12 = vrot.slane %v2789_v58, %v7077_v33 }
 0x3f2   : > { %4274 = vmatprep.mubr.msk.bf16.mxu1 %vm3066_vm11, %v2652_v43 }
 0x3f3   : > { %v2625_v8 = vpop.permute.xlu0 %2624 }
 0x3f4   : > { %v2709_v2 = vsel %vm2692_vm13, %v2689_v53, %v2625_v8  ;;  %v2731_v5 = vsel %vm2714_vm14, %v2625_v8, %v2652_v43 }
 0x3f5   : > { %3170 = vmatprep.mubr.bf16.mxu0 %v2709_v2  ;;  %3274 = vmatmul.mubr.bf16.gmra.mxu1 %v2731_v5  ;;  %v2586_v11 = vpop.permute.xlu1 %2585 }
 0x3f6   : > { %3171 = vmatmul.mubr.bf16.gmra.mxu0 %v2672_v26 }
 0x3f7   : > { %v2552_v20 = vpop.permute.xlu0 %2551 }
 0x3f8   : > { %v2691_v48 = vsel %vm2677_vm12, %v2552_v20, %v2586_v11  ;;  %v2675_v7 = vsel %vm2655_vm15, %v6461_v46, %v2552_v20 }
 0x3f9   : > { %v2654_v47 = vpop.permute.xlu1 %2653 }
 0x3fa   : > { %4275 = vmatprep.mubr.msk.bf16.mxu1 %vm3066_vm11, %v2654_v47 }
 0x3fb   : > { %v2627_v30 = vpop.permute.xlu0 %2626 }
 0x3fc   : > { %v2712_v61 = vsel %vm2692_vm13, %v2691_v48, %v2627_v30  ;;  %v2734_v9 = vsel %vm2714_vm14, %v2627_v30, %v2654_v47 }
 0x3fd   : > { %3180 = vmatprep.mubr.bf16.mxu0 %v2712_v61  ;;  %3284 = vmatmul.mubr.bf16.gmra.mxu1 %v2734_v9 }
 0x3fe   : > { %3181 = vmatmul.mubr.bf16.gmra.mxu0 %v2675_v7 }
 0x48d   : > { %v3225_v55 = vpop.f32.mrf.mxu1 }
 0x48e   : > { %v3122_v54 = vpop.f32.mrf.mxu0 }
 0x48f   : > { %v3123_v24 = vadd.f32 %v3122_v54, %v6529_v50  ;;  %v3227_v17 = vpop.f32.mrf.mxu1 }
 0x490   : > { %v3124_v6 = vpop.f32.mrf.mxu0 }
 0x491   : > { %v3125_v46 = vadd.f32 %v3124_v6, %v6532_v12  ;;  %v6536_v34 = vadd.f32 %v3225_v55, %v3123_v24  ;;  %v3229_v1 = vpop.f32.mrf.mxu1 }
 0x492   : > { %v3126_v49 = vpop.f32.mrf.mxu0 }
 0x493   : > { %v3127_v0 = vadd.f32 %v3126_v49, %v6529_v50  ;;  %v6539_v59 = vadd.f32 %v3227_v17, %v3125_v46  ;;  %v3231_v4 = vpop.f32.mrf.mxu1 }
 0x494   : > { %v3128_v22 = vpop.f32.mrf.mxu0 }
 0x495   : > { %v3129_v10 = vadd.f32 %v3128_v22, %v6532_v12  ;;  %v6542_v37 = vadd.f32 %v3229_v1, %v3127_v0  ;;  %v6544_v39 = vpop.f32.mrf.mxu1 }
 0x496   : > { %v6546_v31 = vpop.f32.mrf.mxu0 }
 0x497   : > { %v6548_v29 = vadd.f32 %v3231_v4, %v3129_v10  ;;  %v6550_v13 = vpop.f32.mrf.mxu1 }
 0x498   : > { %v6552_v15 = vpop.f32.mrf.mxu0 }
 0x499   : > { %v6554_v27 = vpop.f32.mrf.mxu1 }
 0x49a   : > { %v6556_v36 = vpop.f32.mrf.mxu0 }
 0x49b   : > { %v6558_v25 = vpop.f32.mrf.mxu1 }
 0x49c   : > { %v6560_v18 = vpop.f32.mrf.mxu0 }
 0x49d   : > { %v6562_v16 = vpop.f32.mrf.mxu1 }
 0x49e   : > { %v6564_v32 = vpop.f32.mrf.mxu0 }
 0x49f   : > { %v6566_v57 = vpop.f32.mrf.mxu1 }
 0x4a0   : > { %v6568_v56 = vpop.f32.mrf.mxu0 }
 0x4a1   : > { %v6570_v42 = vpop.f32.mrf.mxu1 }
 0x4a2   : > { %v6572_v63 = vpop.f32.mrf.mxu0 }
 0x4a3   : > { %v6574_v41 = vpop.f32.mrf.mxu1 }
 0x4a4   : > { %v6576_v14 = vpop.f32.mrf.mxu0 }
 0x4a5   : > { %v6578_v45 = vpop.f32.mrf.mxu1 }
 0x4a6   : > { %v3152_v40 = vpop.f32.mrf.mxu0 }
 0x4a7   : > { %v6580_v44 = vpop.f32.mrf.mxu1 }
 0x4a8   : > { %v3154_v52 = vpop.f32.mrf.mxu0 }
 0x4a9   : > { %v6582_v38 = vpop.f32.mrf.mxu1 }
 0x4aa   : > { %v6584_v21 = vpop.f32.mrf.mxu0 }
 0x4ab   : > { %v6586_v51 = vpop.f32.mrf.mxu1 }
 0x4ac   : > { %v3158_v60 = vpop.f32.mrf.mxu0 }
 0x4ad   : > { %v3265_v23 = vpop.f32.mrf.mxu1 }
 0x4ae   : > { %v3162_v62 = vpop.f32.mrf.mxu0 }
 0x4af   : > { %v3267_v35 = vpop.f32.mrf.mxu1 }
 0x4b0   : > { %v3164_v28 = vpop.f32.mrf.mxu0 }
 0x4b1   : > { %v6588_v43 = vpop.f32.mrf.mxu1  ;;  %v3165_v1 = vadd.f32 %v3164_v28, %v6532_v12 }
 0x4b2   : > { %v3166_v53 = vpop.f32.mrf.mxu0 }
 0x4b3   : > { %v3271_v8 = vpop.f32.mrf.mxu1 }
 0x4b4   : > { %v3168_v2 = vpop.f32.mrf.mxu0 }
 0x4b5   : > { %v3275_v5 = vpop.f32.mrf.mxu1 }
 0x4b6   : > { %v3172_v26 = vpop.f32.mrf.mxu0 }
 0x4b7   : > { %v3277_v11 = vpop.f32.mrf.mxu1  ;;  %v3173_v24 = vadd.f32 %v3172_v26, %v6529_v50 }
 0x4b8   : > { %v3174_v20 = vpop.f32.mrf.mxu0 }
 0x4b9   : > { %v3279_v47 = vpop.f32.mrf.mxu1  ;;  %v3175_v58 = vadd.f32 %v3174_v20, %v6532_v12  ;;  %v6600_v33 = vadd.f32 %v3275_v5, %v3173_v24  ;;  %v3153_v24 = vadd.f32 %v3152_v40, %v6529_v50  ;;  %v3159_v40 = vadd.f32 %v3158_v60, %v6532_v12 }
 0x4ba   : > { %v3176_v48 = vpop.f32.mrf.mxu0 }
 0x4bb   : > { %v3281_v30 = vpop.f32.mrf.mxu1  ;;  %v3278_v4 = vadd.f32 %v3277_v11, %v3175_v58  ;;  %v3177_v26 = vadd.f32 %v3176_v48, %v6529_v50  ;;  %v3155_v11 = vadd.f32 %v3154_v52, %v6532_v12  ;;  %v3169_v58 = vadd.f32 %v3168_v2, %v6532_v12 }
 0x4bc   : > { %v3178_v61 = vpop.f32.mrf.mxu0  ;;  %v3145_v2 = vadd.f32 %v6568_v56, %v6532_v12  ;;  %v6633_v56 = vadd.f32 %v6578_v45, %v3153_v24 }
 0x4bd   : > { %v3285_v9 = vpop.f32.mrf.mxu1  ;;  %v3179_v22 = vadd.f32 %v3178_v61, %v6532_v12  ;;  %v3268_v61 = vadd.f32 %v3267_v35, %v3165_v1  ;;  %v3272_v1 = vadd.f32 %v3271_v8, %v3169_v58 }
 0x4be   : > { %v3182_v7 = vpop.f32.mrf.mxu0 }
 0x4bf   : > { %v3183_v55 = vadd.f32 %v3182_v7, %v6529_v50  ;;  %v3287_v54 = vpop.f32.mrf.mxu1  ;;  %v3163_v7 = vadd.f32 %v3162_v62, %v6529_v50  ;;  %v3282_v62 = vadd.f32 %v3281_v30, %v3179_v22  ;;  %v3258_v30 = vadd.f32 %v6580_v44, %v3155_v11 }
 0x4c0   : > { %v3184_v17 = vpop.f32.mrf.mxu0  ;;  %v3135_v22 = vadd.f32 %v6552_v15, %v6532_v12  ;;  %v3157_v44 = vadd.f32 %v6584_v21, %v6529_v50  ;;  %v3248_v15 = vadd.f32 %v6566_v57, %v3145_v2  ;;  %v3133_v11 = vadd.f32 %v6546_v31, %v6529_v50 }
 0x4c1   : > { %v3185_v6 = vadd.f32 %v3184_v17, %v6532_v12  ;;  %v6594_v46 = vadd.f32 %v3285_v9, %v3183_v55  ;;  %v3289_v0 = vpop.f32.mrf.mxu1  ;;  %v3307_v45 = vmax.f32 %v3258_v30, 0.0  ;;  %v3139_v31 = vadd.f32 %v6560_v18, %v6532_v12 }
 0x4c2   : > { %v3186_v49 = vpop.f32.mrf.mxu0 }
 0x4c3   : > { %v3187_v10 = vadd.f32 %v3186_v49, %v6529_v50  ;;  %v3288_v20 = vadd.f32 %v3287_v54, %v3185_v6  ;;  %v3318_v9 = vmax.f32 %v6594_v46, 0.0  ;;  %v3291_v54 = vpop.f32.mrf.mxu1  ;;  %v3315_v6 = vmax.f32 %v3278_v4, 0.0 }
 0x4c4   : > { %v3188_v3 = vpop.f32.mrf.mxu0  ;;  %v6612_v49 = vadd.f32 %v3265_v23, %v3163_v7  ;;  %v3311_v23 = vmax.f32 %v3268_v61, 0.0  ;;  %v6662_v61 = vadd.f32 %v6582_v38, %v3157_v44  ;;  %v3242_v24 = vadd.f32 %v6558_v25, %v3139_v31 }
 0x4c5   : > { %v3319_v55 = vmax.f32 %v3288_v20, 0.0  ;;  %v3189_v28 = vadd.f32 %v3188_v3, %v6532_v12  ;;  %v6605_v17 = vadd.f32 %v3289_v0, %v3187_v10  ;;  %v3167_v3 = vadd.f32 %v3166_v53, %v6529_v50 }
 0x4c6   : > { %v3314_v0 = vmax.f32 %v6600_v33, 0.0  ;;  %v6616_v10 = vadd.f32 %v3279_v47, %v3177_v26  ;;  %v3317_v47 = vmax.f32 %v3282_v62, 0.0  ;;  %v3143_v20 = vadd.f32 %v6564_v32, %v6529_v50 }
 0x4c7   : > { %v4611_v5 = vpack.i.bf16 %v3319_v55, %v3318_v9  ;;  %v3292_v48 = vadd.f32 %v3291_v54, %v3189_v28  ;;  %v3320_v52 = vmax.f32 %v6605_v17, 0.0  ;;  %v3310_v60 = vmax.f32 %v6612_v49, 0.0 }
 0x4c8   : > { %v4621_v53 = vpack.i.bf16 %v3315_v6, %v3314_v0  ;;  %v6639_v8 = vadd.f32 %v6588_v43, %v3167_v3  ;;  %v3316_v7 = vmax.f32 %v6616_v10, 0.0  ;;  %v3149_v32 = vadd.f32 %v6576_v14, %v6532_v12 }
 0x4c9   : > { %v3321_v35 = vmax.f32 %v3292_v48, 0.0  ;;  %4612 = vrot.lane.b32.xlu0 %v4611_v5, %s4991_s20  ;;  %v3262_v26 = vadd.f32 %v6586_v51, %v3159_v40  ;;  %v4631_v21 = vpack.i.bf16 %v3311_v23, %v3310_v60  ;;  %v3313_v55 = vmax.f32 %v3272_v1, 0.0 }
 0x4ca   : > { %v4626_v43 = vpack.i.bf16 %v3317_v47, %v3316_v7  ;;  %v4992_v28 = vmov 0.0   ;;  %v6656_v57 = vadd.f32 %v6562_v16, %v3143_v20  ;;  %v3147_v14 = vadd.f32 %v6572_v63, %v6529_v50 }
 0x4cb   : > { %v4616_v4 = vpack.i.bf16 %v3321_v35, %v3320_v52  ;;  %4404 = vmatprep.subr.bf16.mxu0 %v4992_v28  ;;  %v3306_v51 = vmax.f32 %v6633_v56, 0.0  ;;  %v3312_v58 = vmax.f32 %v6639_v8, 0.0  ;;  %v3238_v54 = vadd.f32 %v6550_v13, %v3135_v22  ;;  %4418 = vmatprep.mubr.msk.bf16.mxu0 %vm4993_vm0, %v4992_v28 }
 0x4cc   : > { %v3303_v16 = vmax.f32 %v3248_v15, 0.0  ;;  %v3252_v6 = vadd.f32 %v6574_v41, %v3149_v32  ;;  %v3309_v62 = vmax.f32 %v3262_v26, 0.0  ;;  %v6676_v5 = vadd.f32 %v6544_v39, %v3133_v11 }
 0x4cd   : > { %4617 = vrot.lane.b32.xlu1 %v4616_v4, %s4991_s20  ;;  %4622 = vrot.lane.b32.xlu0 %v4621_v53, %s4991_s20  ;;  %v4641_v63 = vpack.i.bf16 %v3307_v45, %v3306_v51  ;;  %v4636_v38 = vpack.i.bf16 %v3313_v55, %v3312_v58  ;;  %v3137_v48 = vadd.f32 %v6556_v36, %v6529_v50  ;;  %v3302_v13 = vmax.f32 %v6656_v57, 0.0 }
 0x4ce   : > { %v6682_v12 = vadd.f32 %v6570_v42, %v3147_v14  ;;  %v3308_v18 = vmax.f32 %v6662_v61, 0.0  ;;  %v3299_v41 = vmax.f32 %v3238_v54, 0.0  ;;  %v3305_v3 = vmax.f32 %v3252_v6, 0.0 }
 0x4cf   : > { %v4651_v39 = vpack.i.bf16 %v3303_v16, %v3302_v13  ;;  %v3298_v36 = vmax.f32 %v6676_v5, 0.0  ;;  %v6694_v42 = vadd.f32 %v6554_v27, %v3137_v48  ;;  %v3295_v25 = vmax.f32 %v6539_v59, 0.0 }
 0x4d0   : > { %v4646_v50 = vpack.i.bf16 %v3309_v62, %v3308_v18  ;;  %v3304_v35 = vmax.f32 %v6682_v12, 0.0  ;;  %v3301_v30 = vmax.f32 %v3242_v24, 0.0  ;;  %v3294_v23 = vmax.f32 %v6536_v34, 0.0 }
 0x4d1   : > { %4627 = vrot.lane.b32.xlu1 %v4626_v43, %s4991_s20  ;;  %4632 = vrot.lane.b32.xlu0 %v4631_v21, %s4991_s20  ;;  %v4661_v2 = vpack.i.bf16 %v3299_v41, %v3298_v36  ;;  %v3300_v27 = vmax.f32 %v6694_v42, 0.0  ;;  %v3297_v59 = vmax.f32 %v6548_v29, 0.0  ;;  %v3296_v47 = vmax.f32 %v6542_v37, 0.0 }
 0x4d2   : > { %v4656_v40 = vpack.i.bf16 %v3305_v3, %v3304_v35  ;;  %v4671_v1 = vpack.i.bf16 %v3295_v25, %v3294_v23 }
 0x4d3   : > { %v4666_v53 = vpack.i.bf16 %v3301_v30, %v3300_v27  ;;  %v4676_v4 = vpack.i.bf16 %v3297_v59, %v3296_v47 }
 0x4d5   : > { %4637 = vrot.lane.b32.xlu1 %v4636_v38, %s4991_s20  ;;  %4642 = vrot.lane.b32.xlu0 %v4641_v63, %s4991_s20 }
 0x4d9   : > { %4647 = vrot.lane.b32.xlu1 %v4646_v50, %s4991_s20  ;;  %4652 = vrot.lane.b32.xlu0 %v4651_v39, %s4991_s20 }
 0x4dd   : > { %4657 = vrot.lane.b32.xlu1 %v4656_v40, %s4991_s20  ;;  %4662 = vrot.lane.b32.xlu0 %v4661_v2, %s4991_s20 }
 0x4e1   : > { %4667 = vrot.lane.b32.xlu1 %v4666_v53, %s4991_s20  ;;  %4672 = vrot.lane.b32.xlu0 %v4671_v1, %s4991_s20 }
 0x4e5   : > { %4677 = vrot.lane.b32.xlu1 %v4676_v4, %s4991_s20 }
 0x53b   : > { %v4613_v29 = vpop.permute.xlu0 %4612 }
 0x53c   : > { %v4615_v22 = vunpack.i.h.bf16 %v4613_v29  ;;  %v4614_v20 = vunpack.i.l.bf16 %v4613_v29 }
 0x53e   : > { %v3419_v44 = vsel %vm3406_vm1, %v4614_v20, %v4615_v22 }
 0x53f   : > { %v4618_v15 = vpop.permute.xlu1 %4617  ;;  %v4623_v32 = vpop.permute.xlu0 %4622  ;;  %v3447_v43 = vmax.f32 %v3318_v9, %v3419_v44 }
 0x540   : > { %v4620_v45 = vunpack.i.h.bf16 %v4618_v15  ;;  %v4619_v26 = vunpack.i.l.bf16 %v4618_v15  ;;  %v4625_v21 = vunpack.i.h.bf16 %v4623_v32  ;;  %v4624_v55 = vunpack.i.l.bf16 %v4623_v32 }
 0x541   : > { %v3486_v62 = vrot.slane %v3447_v43, 1 }
 0x542   : > { %v3420_v11 = vsel %vm3406_vm1, %v4619_v26, %v4620_v45  ;;  %v3417_v54 = vsel %vm3406_vm1, %v4624_v55, %v4625_v21 }
 0x543   : > { %v3448_v14 = vmax.f32 %v3320_v52, %v3420_v11  ;;  %v4628_v31 = vpop.permute.xlu1 %4627  ;;  %v4633_v16 = vpop.permute.xlu0 %4632  ;;  %v3445_v24 = vmax.f32 %v3314_v0, %v3417_v54 }
 0x544   : > { %v4630_v6 = vunpack.i.h.bf16 %v4628_v31  ;;  %v4629_v63 = vunpack.i.l.bf16 %v4628_v31  ;;  %v4635_v48 = vunpack.i.h.bf16 %v4633_v16  ;;  %v4634_v41 = vunpack.i.l.bf16 %v4633_v16 }
 0x545   : > { %v3488_v38 = vrot.slane %v3448_v14, 1  ;;  %v3482_v33 = vrot.slane %v3445_v24, 1 }
 0x546   : > { %v3418_v46 = vsel %vm3406_vm1, %v4629_v63, %v4630_v6  ;;  %v3415_v1 = vsel %vm3406_vm1, %v4634_v41, %v4635_v48 }
 0x547   : > { %v3517_v9 = vmax.f32 %v3448_v14, %v3488_v38  ;;  %v3446_v17 = vmax.f32 %v3316_v7, %v3418_v46  ;;  %v4638_v52 = vpop.permute.xlu1 %4637  ;;  %v4643_v39 = vpop.permute.xlu0 %4642  ;;  %v3489_v3 = vsel %vm608_vm2, %v3486_v62, %v3488_v38  ;;  %v3443_v20 = vmax.f32 %v3310_v60, %v3415_v1 }
 0x548   : > { %v4640_v50 = vunpack.i.h.bf16 %v4638_v52  ;;  %v4639_v25 = vunpack.i.l.bf16 %v4638_v52  ;;  %v4645_v2 = vunpack.i.h.bf16 %v4643_v39  ;;  %v4644_v30 = vunpack.i.l.bf16 %v4643_v39 }
 0x549   : > { %v3484_v40 = vrot.slane %v3446_v17, 1  ;;  %v3516_v59 = vmax.f32 %v3447_v43, %v3489_v3  ;;  %v3478_v16 = vrot.slane %v3443_v20, 1 }
 0x54a   : > { %v3416_v0 = vsel %vm3406_vm1, %v4639_v25, %v4640_v50  ;;  %v3413_v7 = vsel %vm3406_vm1, %v4644_v30, %v4645_v2 }
 0x54b   : > { %v3487_v53 = vsel %vm608_vm2, %v3484_v40, %v3486_v62  ;;  %v3444_v10 = vmax.f32 %v3312_v58, %v3416_v0  ;;  %v4648_v4 = vpop.permute.xlu1 %4647  ;;  %v4653_v29 = vpop.permute.xlu0 %4652  ;;  %v3529_v22 = vpack.c.bf16 %v3517_v9, %v3516_v59  ;;  %v3441_v8 = vmax.f32 %v3306_v51, %v3413_v7 }
 0x54c   : > { %v4650_v44 = vunpack.i.h.bf16 %v4648_v4  ;;  %v4649_v15 = vunpack.i.l.bf16 %v4648_v4  ;;  %v4655_v32 = vunpack.i.h.bf16 %v4653_v29  ;;  %v3515_v45 = vmax.f32 %v3446_v17, %v3487_v53 }
 0x54d   : > { %v3480_v26 = vrot.slane %v3444_v10, 1  ;;  %v4654_v21 = vunpack.i.l.bf16 %v4653_v29  ;;  %v3554_v55 = vand.u32 %v3529_v22, %v5981_v19  ;;  %v3485_v43 = vsel %vm608_vm2, %v3482_v33, %v3484_v40 }
 0x54e   : > { %v3414_v58 = vsel %vm3406_vm1, %v4649_v15, %v4650_v44  ;;  %v3514_v31 = vmax.f32 %v3445_v24, %v3485_v43  ;;  %v3474_v48 = vrot.slane %v3441_v8, 1 }
 0x54f   : > { %v3483_v11 = vsel %vm608_vm2, %v3480_v26, %v3482_v33  ;;  %v3442_v49 = vmax.f32 %v3308_v18, %v3414_v58  ;;  %v3411_v60 = vsel %vm3406_vm1, %v4654_v21, %v4655_v32  ;;  %4405 = vmatpush3.bf16.msra.mxu0 %v3554_v55  ;;  %v4658_v14 = vpop.permute.xlu1 %4657  ;;  %v4663_v54 = vpop.permute.xlu0 %4662  ;;  %v3481_v41 = vsel %vm608_vm2, %v3478_v16, %v3480_v26 }
 0x550   : > { %v3513_v19 = vmax.f32 %v3444_v10, %v3483_v11  ;;  %v4660_v6 = vunpack.i.h.bf16 %v4658_v14  ;;  %v4659_v56 = vunpack.i.l.bf16 %v4658_v14  ;;  %4406 = vmatprep.subr.bf16.mxu0 %v4992_v28  ;;  %v4665_v63 = vunpack.i.h.bf16 %v4663_v54  ;;  %v4890_v14 = vld [vmem:[%s6971_s6 + $0x10] ss:$0 sps:$4 sm:$0xff]  }
 0x551   : > { %v3476_v51 = vrot.slane %v3442_v49, 1  ;;  %v4664_v62 = vunpack.i.l.bf16 %v4663_v54  ;;  %v3528_v38 = vpack.c.bf16 %v3515_v45, %v3514_v31  ;;  %v3439_v61 = vmax.f32 %v3302_v13, %v3411_v60  ;;  %v4889_v60 = vld [vmem:[%s6971_s6 + $0x8] sm:$0xff]   ;;  %v4891_v54 = vld [vmem:[%s6972_s7 + $0x70] ss:$8 sps:$4 sm:$0xff]   ;;  %v4893_v31 = vld [vmem:[%s6972_s7 + $0x74] ss:$8 sps:$4 sm:$0xff]  }
 0x552   : > { %v3412_v18 = vsel %vm3406_vm1, %v4659_v56, %v4660_v6  ;;  %v3512_v39 = vmax.f32 %v3443_v20, %v3481_v41  ;;  %3953 = vmatprep.subr.bf16.mxu1 %v4893_v31  ;;  %v4915_v6 = vld [vmem:[%s6972_s7 + $0x170] ss:$8 sps:$4 sm:$0xff]   ;;  %v4917_v56 = vld [vmem:[%s6972_s7 + $0x174] ss:$8 sps:$4 sm:$0xff]  }
 0x553   : > { %v3479_v24 = vsel %vm608_vm2, %v3476_v51, %v3478_v16  ;;  %v3440_v46 = vmax.f32 %v3304_v35, %v3412_v18  ;;  %v3409_v9 = vsel %vm3406_vm1, %v4664_v62, %v4665_v63  ;;  %4407 = vmatpush3.bf16.msra.mxu0 %v3528_v38  ;;  %v4668_v17 = vpop.permute.xlu1 %4667  ;;  %v4673_v52 = vpop.permute.xlu0 %4672  ;;  %v3470_v12 = vrot.slane %v3439_v61, 1  ;;  %v4896_v16 = vld [vmem:[%s6972_s7 + $0x64] ss:$8 sps:$4 sm:$0xff]   ;;  %3954 = vmatpush1.bf16.msra.mxu1 %v4891_v54  ;;  %v4921_v38 = vld [vmem:[%s6972_s7 + $0x160] ss:$8 sps:$4 sm:$0xff]  }
 0x554   : > { %v3511_v3 = vmax.f32 %v3442_v49, %v3479_v24  ;;  %v3437_v57 = vmax.f32 %v3298_v36, %v3409_v9  ;;  %v4670_v13 = vunpack.i.h.bf16 %v4668_v17  ;;  %v4669_v50 = vunpack.i.l.bf16 %v4668_v17  ;;  %4408 = vmatprep.subr.bf16.mxu0 %v4992_v28  ;;  %v4888_v49 = vld [vmem:[%s6971_s6] sm:$0xff]   ;;  %3955 = vmatprep.subr.bf16.mxu1 %v4896_v16  ;;  %v4905_v18 = vld [vmem:[%s6972_s7 + $0x34] ss:$8 sps:$4 sm:$0xff]   ;;  %v4927_v41 = vld [vmem:[%s6972_s7 + $0x150] ss:$8 sps:$4 sm:$0xff]  }
 0x555   : > { %v3472_v25 = vrot.slane %v3440_v46, 1  ;;  %v4675_v2 = vunpack.i.h.bf16 %v4673_v52  ;;  %v4674_v30 = vunpack.i.l.bf16 %v4673_v52  ;;  %v3527_v40 = vpack.c.bf16 %v3513_v19, %v3512_v39  ;;  %v4899_v19 = vld [vmem:[%s6972_s7 + $0x54] ss:$8 sps:$4 sm:$0xff]   ;;  %v4923_v63 = vld [vmem:[%s6972_s7 + $0x164] ss:$8 sps:$4 sm:$0xff]  }
 0x556   : > { %v3410_v35 = vsel %vm3406_vm1, %v4669_v50, %v4670_v13  ;;  %v3477_v1 = vsel %vm608_vm2, %v3474_v48, %v3476_v51  ;;  %v3466_v53 = vrot.slane %v3437_v57, 1  ;;  %v4897_v51 = vld [vmem:[%s6972_s7 + $0x50] ss:$8 sps:$4 sm:$0xff]   ;;  %v4902_v62 = vld [vmem:[%s6972_s7 + $0x44] ss:$8 sps:$4 sm:$0xff]  }
 0x557   : > { %v3475_v59 = vsel %vm608_vm2, %v3472_v25, %v3474_v48  ;;  %v3438_v33 = vmax.f32 %v3300_v27, %v3410_v35  ;;  %v3407_v5 = vsel %vm3406_vm1, %v4674_v30, %v4675_v2  ;;  %4409 = vmatpush3.bf16.msra.mxu0 %v3527_v40  ;;  %v4678_v36 = vpop.permute.xlu1 %4677  ;;  %v3510_v0 = vmax.f32 %v3441_v8, %v3477_v1  ;;  %v4929_v48 = vld [vmem:[%s6972_s7 + $0x154] ss:$8 sps:$4 sm:$0xff]   ;;  %v4935_v24 = vld [vmem:[%s6972_s7 + $0x144] ss:$8 sps:$4 sm:$0xff]   ;;  %v4933_v17 = vld [vmem:[%s6972_s7 + $0x140] ss:$8 sps:$4 sm:$0xff]  }
 0x558   : > { %v3435_v10 = vmax.f32 %v3294_v23, %v3407_v5  ;;  %v4680_v7 = vunpack.i.h.bf16 %v4678_v36  ;;  %v4679_v4 = vunpack.i.l.bf16 %v4678_v36  ;;  %4410 = vmatprep.subr.bf16.mxu0 %v4992_v28  ;;  %v3509_v29 = vmax.f32 %v3440_v46, %v3475_v59  ;;  %v4903_v46 = vld [vmem:[%s6972_s7 + $0x30] ss:$8 sps:$4 sm:$0xff]   ;;  %v4908_v9 = vld [vmem:[%s6972_s7 + $0x24] ss:$8 sps:$4 sm:$0xff]   ;;  %v4941_v52 = vld [vmem:[%s6972_s7 + $0x134] ss:$8 sps:$4 sm:$0xff]  }
 0x559   : > { %v3468_v22 = vrot.slane %v3438_v33, 1  ;;  %v3526_v20 = vpack.c.bf16 %v3511_v3, %v3510_v0  ;;  %v3473_v44 = vsel %vm608_vm2, %v3470_v12, %v3472_v25  ;;  %v4906_v39 = vld [vmem:[%s6972_s7 + $0x20] ss:$8 sps:$4 sm:$0xff]   ;;  %v4911_v3 = vld [vmem:[%s6972_s7 + $0x14] ss:$8 sps:$4 sm:$0xff]  }
 0x55a   : > { %v3408_v42 = vsel %vm3406_vm1, %v4679_v4, %v4680_v7  ;;  %v3508_v27 = vmax.f32 %v3439_v61, %v3473_v44  ;;  %v3463_v23 = vrot.slane %v3435_v10, 1  ;;  %v4900_v61 = vld [vmem:[%s6972_s7 + $0x40] ss:$8 sps:$4 sm:$0xff]   ;;  %v4947_v13 = vld [vmem:[%s6972_s7 + $0x124] ss:$8 sps:$4 sm:$0xff]  }
 0x55b   : > { %v3471_v15 = vsel %vm608_vm2, %v3468_v22, %v3470_v12  ;;  %v3436_v32 = vmax.f32 %v3296_v47, %v3408_v42  ;;  %4411 = vmatpush3.bf16.msra.mxu0 %v3526_v20  ;;  %v3469_v34 = vsel %vm608_vm2, %v3466_v53, %v3468_v22  ;;  %v4909_v50 = vld [vmem:[%s6972_s7 + $0x10] ss:$8 sps:$4 sm:$0xff]   ;;  %v4914_v25 = vld [vmem:[%s6972_s7 + $0x4] ss:$8 sps:$4 sm:$0xff]   ;;  %v4945_v2 = vld [vmem:[%s6972_s7 + $0x120] ss:$8 sps:$4 sm:$0xff]  }
 0x55c   : > { %4412 = vmatprep.subr.bf16.mxu0 %v4992_v28  ;;  %v3507_v45 = vmax.f32 %v3438_v33, %v3471_v15  ;;  %v3525_v21 = vpack.c.bf16 %v3509_v29, %v3508_v27  ;;  %v3506_v55 = vmax.f32 %v3437_v57, %v3469_v34  ;;  %v4939_v57 = vld [vmem:[%s6972_s7 + $0x130] ss:$8 sps:$4 sm:$0xff]   ;;  %v4912_v30 = vld [vmem:[%s6972_s7] ss:$8 sps:$4 sm:$0xff]   ;;  %v4920_v40 = vld [vmem:[%s6972_s7 + $0xf4] ss:$8 sps:$4 sm:$0xff]  }
 0x55d   : > { %v3464_v26 = vrot.slane %v3436_v32, 1  ;;  %v4918_v12 = vld [vmem:[%s6972_s7 + $0xf0] ss:$8 sps:$4 sm:$0xff]   ;;  %v4926_v35 = vld [vmem:[%s6972_s7 + $0xe4] ss:$8 sps:$4 sm:$0xff]  }
 0x55e   : > { %v3524_v37 = vpack.c.bf16 %v3507_v45, %v3506_v55  ;;  %v4924_v1 = vld [vmem:[%s6972_s7 + $0xe0] ss:$8 sps:$4 sm:$0xff]   ;;  %v4932_v59 = vld [vmem:[%s6972_s7 + $0xd4] ss:$8 sps:$4 sm:$0xff]   ;;  %v4930_v33 = vld [vmem:[%s6972_s7 + $0xd0] ss:$8 sps:$4 sm:$0xff]  }
 0x55f   : > { %v3467_v8 = vsel %vm608_vm2, %v3464_v26, %v3466_v53  ;;  %4413 = vmatpush3.bf16.msra.mxu0 %v3525_v21  ;;  %v3465_v58 = vsel %vm608_vm2, %v3463_v23, %v3464_v26  ;;  %v4938_v5 = vld [vmem:[%s6972_s7 + $0xc4] ss:$8 sps:$4 sm:$0xff]   ;;  %v4936_v36 = vld [vmem:[%s6972_s7 + $0xc0] ss:$8 sps:$4 sm:$0xff]   ;;  %v4944_v0 = vld [vmem:[%s6972_s7 + $0xb4] ss:$8 sps:$4 sm:$0xff]  }
 0x560   : > { %4414 = vmatprep.subr.bf16.mxu0 %v4992_v28  ;;  %v3505_v43 = vmax.f32 %v3436_v32, %v3467_v8  ;;  %v3504_v47 = vmax.f32 %v3435_v10, %v3465_v58  ;;  %v4942_v53 = vld [vmem:[%s6972_s7 + $0xb0] ss:$8 sps:$4 sm:$0xff]   ;;  %v4950_v10 = vld [vmem:[%s6972_s7 + $0xa4] ss:$8 sps:$4 sm:$0xff]   ;;  %v4948_v7 = vld [vmem:[%s6972_s7 + $0xa0] ss:$8 sps:$4 sm:$0xff]  }
 0x561   : > { %v4951_v4 = vld [vmem:[%s6972_s7 + $0x110] ss:$8 sps:$4 sm:$0xff]   ;;  %v4953_v29 = vld [vmem:[%s6972_s7 + $0x114] ss:$8 sps:$4 sm:$0xff]   ;;  %v4957_v44 = vld [vmem:[%s6972_s7 + $0x100] ss:$8 sps:$4 sm:$0xff]  }
 0x562   : > { %v3523_v11 = vpack.c.bf16 %v3505_v43, %v3504_v47  ;;  %v4956_v22 = vld [vmem:[%s6972_s7 + $0x94] ss:$8 sps:$4 sm:$0xff]   ;;  %v4954_v20 = vld [vmem:[%s6972_s7 + $0x90] ss:$8 sps:$4 sm:$0xff]   ;;  %v4959_v42 = vld [vmem:[%s6972_s7 + $0x104] ss:$8 sps:$4 sm:$0xff]  }
 0x563   : > { %4415 = vmatpush3.bf16.msra.mxu0 %v3524_v37  ;;  %v4962_v15 = vld [vmem:[%s6972_s7 + $0x84] ss:$8 sps:$4 sm:$0xff]   ;;  %v4960_v32 = vld [vmem:[%s6972_s7 + $0x80] ss:$8 sps:$4 sm:$0xff]   ;;  %vm3630_vm2 = vcmask 916480  }
 0x564   : > { %4416 = vmatprep.subr.bf16.mxu0 %v4992_v28  ;;  %v4963_v23 = vld [vmem:[%s6972_s7 + $0x180] ss:$8 sps:$4 sm:$0xff]   ;;  %v4965_v45 = vld [vmem:[%s6972_s7 + $0x184] ss:$8 sps:$4 sm:$0xff]  }
 0x567   : > { %4417 = vmatpush3.bf16.msra.mxu0 %v3523_v11 }
 0x568   : > { %3994 = vmatprep.subr.bf16.mxu0 %v4917_v56 }
 0x56a   : > { %4419 = vmatmul.mubr.msk.bf16.vlgmr.msra.gmra.mxu0 %vm3543_vm3, %v4888_v49 }
 0x56b   : > { %4422 = vmatprep.mubr.msk.bf16.mxu0 %vm4993_vm0, %v4992_v28  ;;  %3995 = vmatpush1.bf16.msra.mxu0 %v4915_v6 }
 0x56c   : > { %3996 = vmatprep.subr.bf16.mxu0 %v4923_v63 }
 0x56f   : > { %3997 = vmatpush1.bf16.msra.mxu0 %v4921_v38  ;;  %v3687_v38 = vld [vmem:[%s6973_s8] sm:$0x3] }
 0x570   : > { %3998 = vmatprep.subr.bf16.mxu0 %v4929_v48  ;;  %v7078_v48 = vld [vmem:[#allocation2_spill] sm:$0xff] }
 0x572   : > { %4423 = vmatmul.mubr.msk.bf16.gmra.mxu0 %vm3543_vm3, %v4889_v60 }
 0x573   : > { %4426 = vmatprep.mubr.msk.bf16.mxu0 %vm4993_vm0, %v4992_v28  ;;  %v4894_v28 = vld [vmem:[%s6972_s7 + $0x60] ss:$8 sps:$4 sm:$0xff]   ;;  %3999 = vmatpush1.bf16.msra.mxu0 %v4927_v41 }
 0x574   : > { %3956 = vmatpush1.bf16.msra.mxu1 %v4894_v28  ;;  %4000 = vmatprep.subr.bf16.mxu0 %v4935_v24 }
 0x575   : > { %3957 = vmatprep.subr.bf16.mxu1 %v4899_v19 }
 0x577   : > { %4001 = vmatpush1.bf16.msra.mxu0 %v4933_v17 }
 0x578   : > { %3958 = vmatpush1.bf16.msra.mxu1 %v4897_v51  ;;  %4002 = vmatprep.subr.bf16.mxu0 %v4941_v52 }
 0x579   : > { %3959 = vmatprep.subr.bf16.mxu1 %v4902_v62 }
 0x57a   : > { %4427 = vmatmul.mubr.msk.bf16.gmra.mxu0 %vm3543_vm3, %v4890_v14 }
 0x57b   : > { %4003 = vmatpush1.bf16.msra.mxu0 %v4939_v57 }
 0x57c   : > { %3960 = vmatpush1.bf16.msra.mxu1 %v4900_v61  ;;  %4004 = vmatprep.subr.bf16.mxu0 %v4947_v13  ;;  %v3692_v61 = vrot.slane %v3687_v38, %v7078_v48 }
 0x57d   : > { %3961 = vmatprep.subr.bf16.mxu1 %v4905_v18  ;;  %v7079_v18 = vld [vmem:[#allocation3_spill] sm:$0xff] }
 0x57e   : > { %v3696_v41 = vrot.slane %v3687_v38, %v7079_v18 }
 0x57f   : > { %4005 = vmatpush1.bf16.msra.mxu0 %v4945_v2 }
 0x580   : > { %3962 = vmatpush1.bf16.msra.mxu1 %v4903_v46  ;;  %4006 = vmatprep.subr.bf16.mxu0 %v4953_v29 }
 0x581   : > { %3963 = vmatprep.subr.bf16.mxu1 %v4908_v9 }
 0x583   : > { %4007 = vmatpush1.bf16.msra.mxu0 %v4951_v4 }
 0x584   : > { %3964 = vmatpush1.bf16.msra.mxu1 %v4906_v39  ;;  %4008 = vmatprep.subr.bf16.mxu0 %v4959_v42 }
 0x585   : > { %3965 = vmatprep.subr.bf16.mxu1 %v4911_v3 }
 0x587   : > { %4009 = vmatpush1.bf16.msra.mxu0 %v4957_v44 }
 0x588   : > { %3966 = vmatpush1.bf16.msra.mxu1 %v4909_v50  ;;  %4024 = vmatprep.subr.bf16.mxu0 %v4965_v45 }
 0x589   : > { %3967 = vmatprep.subr.bf16.mxu1 %v4914_v25 }
 0x58b   : > { %4025 = vmatpush2.bf16.msra.mxu0 %v4963_v23 }
 0x58c   : > { %3968 = vmatpush1.bf16.msra.mxu1 %v4912_v30 }
 0x58d   : > { %3969 = vmatprep.subr.bf16.mxu1 %v4920_v40 }
 0x590   : > { %3970 = vmatpush2.bf16.msra.mxu1 %v4918_v12 }
 0x591   : > { %3971 = vmatprep.subr.bf16.mxu1 %v4926_v35 }
 0x594   : > { %3972 = vmatpush2.bf16.msra.mxu1 %v4924_v1 }
 0x595   : > { %3973 = vmatprep.subr.bf16.mxu1 %v4932_v59 }
 0x598   : > { %3974 = vmatpush2.bf16.msra.mxu1 %v4930_v33 }
 0x599   : > { %3975 = vmatprep.subr.bf16.mxu1 %v4938_v5 }
 0x59c   : > { %3976 = vmatpush2.bf16.msra.mxu1 %v4936_v36 }
 0x59d   : > { %3977 = vmatprep.subr.bf16.mxu1 %v4944_v0 }
 0x5a0   : > { %3978 = vmatpush2.bf16.msra.mxu1 %v4942_v53 }
 0x5a1   : > { %3979 = vmatprep.subr.bf16.mxu1 %v4950_v10 }
 0x5a4   : > { %3980 = vmatpush2.bf16.msra.mxu1 %v4948_v7 }
 0x5a5   : > { %3981 = vmatprep.subr.bf16.mxu1 %v4956_v22 }
 0x5a8   : > { %3982 = vmatpush2.bf16.msra.mxu1 %v4954_v20 }
 0x5a9   : > { %3983 = vmatprep.subr.bf16.mxu1 %v4962_v15 }
 0x5ac   : > { %3984 = vmatpush2.bf16.msra.mxu1 %v4960_v32 }
 0x62a   : > { %v3590_v27 = vpop.f32.mrf.mxu0 }
 0x62c   : > { %v4420_v34 = vpop.f32.mrf.mxu0 }
 0x62e   : > { %v3593_v26 = vpop.f32.mrf.mxu0 }
 0x62f   : > { %3613 = vrot.lane.b32.xlu0 %v3593_v26, %s4989_s16  ;;  %s4335_s16 = sshll.u32 %s7083_s10, 4 }
 0x630   : > { %v4421_v21 = vpop.f32.mrf.mxu0  ;;  %s334_s18 = scalar_lea.vmem %s6974_s9, %s4335_s16 }
 0x632   : > { %v3598_v55 = vpop.f32.mrf.mxu0 }
 0x633   : > { %3617 = vrot.lane.b32.xlu1 %v3598_v55, %s4983_s14 }
 0x634   : > { %v4424_v8 = vpop.f32.mrf.mxu0 }
 0x636   : > { %v3601_v58 = vpop.f32.mrf.mxu0 }
 0x637   : > { %3621 = vrot.lane.b32.xlu0 %v3601_v58, %s4994_s13 }
 0x638   : > { %v4425_v43 = vpop.f32.mrf.mxu0 }
 0x63a   : > { %v3606_v37 = vpop.f32.mrf.mxu0 }
 0x63b   : > { %3625 = vrot.lane.b32.xlu1 %v3606_v37, %s4984_s15 }
 0x63c   : > { %v4428_v47 = vpop.f32.mrf.mxu0 }
 0x63e   : > { %v3609_v11 = vpop.f32.mrf.mxu0 }
 0x640   : > { %v4429_v49 = vpop.f32.mrf.mxu0 }
 0x6a1   : > { %v3614_v60 = vpop.permute.xlu0 %3613 }
 0x6a2   : > { %v3628_v54 = vsel %vm2714_vm14, %v3590_v27, %v3614_v60 }
 0x6a3   : > { %v3633_v6 = vpack.c.bf16 %v3628_v54, %v3628_v54 }
 0x6a5   : > { %v3618_v14 = vpop.permute.xlu1 %3617 }
 0x6a6   : > { %v3629_v31 = vsel %vm898_vm6, %v3614_v60, %v3618_v14 }
 0x6a9   : > { %v3622_v16 = vpop.permute.xlu0 %3621 }
 0x6aa   : > { %v3631_v28 = vsel %vm3630_vm2, %v3629_v31, %v3622_v16 }
 0x6ab   : > { %v3634_v19 = vpack.c.bf16 %v3631_v28, %v3631_v28 }
 0x6ad   : > { %3985 = vmatprep.mubr.bf16.mxu1 %v3634_v19  ;;  %v3626_v56 = vpop.permute.xlu1 %3625 }
 0x6ae   : > { %v3632_v51 = vsel %vm849_vm5, %v3622_v16, %v3626_v56  ;;  %v3636_v63 = vpack.c.bf16 %v3626_v56, %v3626_v56  ;;  %3986 = vmatmul.mubr.bf16.vlgmr.msra.gmra.mxu1 %v3633_v6 }
 0x6af   : > { %v3635_v62 = vpack.c.bf16 %v3632_v51, %v3632_v51 }
 0x6b0   : > { %4332 = vmatprep.mubr.msk.bf16.mxu0 %vm3949_vm4, %v3636_v63 }
 0x6b1   : > { %4027 = vmatmul.mubr.bf16.vlgmr.msra.gmra.mxu0 %v3635_v62 }
 0x76e   : > { %v3987_v24 = vpop.f32.mrf.mxu1 }
 0x76f   : > { %v3988_v46 = vadd.f32 %v3987_v24, %v3692_v61 }
 0x770   : > { %v3989_v9 = vpop.f32.mrf.mxu1 }
 0x771   : > { %v3990_v17 = vadd.f32 %v3989_v9, %v3696_v41  ;;  %v4028_v52 = vpop.f32.mrf.mxu0 }
 0x772   : > { %v4029_v39 = vadd.f32 %v4028_v52, %v3988_v46  ;;  %v3991_v3 = vpop.f32.mrf.mxu1 }
 0x773   : > { %v4030_v57 = vpop.f32.mrf.mxu0 }
 0x774   : > { %4035 = vst [vmem:[%s334_s18] sm:$0xff] %v4029_v39  ;;  %v4031_v13 = vadd.f32 %v4030_v57, %v3990_v17  ;;  %v3992_v50 = vpop.f32.mrf.mxu1 }
 0x775   : > { %v4032_v25 = vpop.f32.mrf.mxu0 }
 0x776   : > { %4036 = vst [vmem:[%s334_s18 + $0x8] sm:$0xff] %v4031_v13 }
 0x777   : > { %v4033_v2 = vpop.f32.mrf.mxu0 }
 0x778 PF: > { %s19_s30 = sadd.s32 1, %s4980_s30  }
 0x779   : > { %p16_p5 = scmp.ge.s32.totalorder %s19_s30, 5  }
 0x77b   :  { %18 = sbr.rel (!%p16_p5) target bundleno = 1 (0x1), region = 86 }

</bundles_post_ra>
